<compile_context>
chip_gen: v7x
topology: tpu7x:2x2x1
jax: 0.10.0
libtpu: 0.0.40
codegen_flags: <defaults>
</compile_context>

<pallas_src>
import jax
import jax.numpy as jnp
import numpy as np
from jax.experimental import pallas as pl
from jax.experimental.pallas import tpu as pltpu

N_CLASSES = 10
LEAKY_SLOPE = 0.2
BN_EPS = 0.8          # PyTorch: nn.BatchNorm2d(out_filters, 0.8) -> eps=0.8

IMG_SIZE = 32
CHANNELS = 3
NB = 16               # batch tile per grid step (one bf16 sublane tile)

_FILTERS = [16, 32, 64, 128]
LAYER_PLAN = []       # (H_in, W_in, C_in, C_out) per conv block
_s, _c = IMG_SIZE, CHANNELS
for _f in _FILTERS:
    LAYER_PLAN.append((_s, _s, _c, _f))
    _s, _c = _s // 2, _f
DS = LAYER_PLAN[-1][0] // 2          # final spatial size (2)
CF = LAYER_PLAN[-1][3]               # final channels (128)
FEAT = CF * DS * DS                  # 512


# ---------------- single fused Pallas kernel (one grid step = NB images) ----------------

def _fused_forward_kernel(*refs):
    nl = len(LAYER_PLAN)
    x_ref = refs[0]                      # (OH0, NB, 3*W0*C0) bf16  wide layer-0 LHS
    w_refs = refs[1:1 + nl]              # bf16 (3*W*Cin, OW*Cout) banded conv weights
    p_refs = refs[1 + nl:1 + 2 * nl]     # f32 (3, 1, OW*Cout): bias / bn_scale / bn_shift
    wh_ref = refs[1 + 2 * nl]            # bf16 (512, 128) merged head weight
    bh_ref = refs[2 + 2 * nl]            # f32 (1, 128) merged head bias
    adv_ref = refs[3 + 2 * nl]           # f32 (NB, 128)
    aux_ref = refs[4 + 2 * nl]           # f32 (NB, 128)
    s_refs = refs[5 + 2 * nl:]           # bf16 wide-LHS stages for layers 1..nl-1

    y_last = None
    lhs3 = x_ref[...]                    # layer-0 wide LHS comes pre-assembled from HBM
    for li, (H, W, Cin, Cout) in enumerate(LAYER_PLAN):
        OH, OW = H // 2, W // 2
        K = 3 * W * Cin
        OWC = OW * Cout                  # 256 for every layer in this plan
        if li > 0:
            lhs3 = s_refs[li - 1][...]   # (OH, NB, K) bf16, assembled by previous layer

        # one MXU matmul per conv block (f32 accumulation)
        acc = jnp.dot(lhs3.reshape(OH * NB, K), w_refs[li][...],
                      preferred_element_type=jnp.float32)        # (OH*NB, OWC)
        p = p_refs[li][...]                                      # (3, 1, OWC)
        y = acc + p[0]                                           # conv bias
        y = jnp.where(y >= 0.0, y, LEAKY_SLOPE * y)              # LeakyReLU(0.2)
        # TODO(synk): nn.Dropout2d(0.25) is identity in eval mode; training-mode channel dropout not implemented.
        y = y * p[1] + p[2]                                      # eval-mode BatchNorm folded affine
        y_bf = y.astype(jnp.bfloat16).reshape(OH, NB, OWC)

        if li + 1 < nl:
            # Assemble the NEXT layer's wide LHS directly: output row r feeds
            # stage[oh, kh-block] wherever 2*oh + kh - 1 == r.  Only the tiny top-pad
            # lane block needs zeroing (bottom pad row is never read with stride 2).
            nxt = s_refs[li]                                     # (OH//2, NB, 3*OWC)
            nxt[0, :, 0:OWC] = jnp.zeros((NB, OWC), jnp.bfloat16)
            for r in range(OH):
                row = y_bf[r]                                    # (NB, OWC)
                if r % 2 == 0:
                    nxt[r // 2, :, OWC:2 * OWC] = row            # kh = 1
                else:
                    m = (r - 1) // 2
                    nxt[m, :, 2 * OWC:3 * OWC] = row             # kh = 2
                    if m + 1 < OH // 2:
                        nxt[m + 1, :, 0:OWC] = row               # kh = 0
        else:
            y_last = y_bf                                        # (DS, NB, DS*CF)

    # ---------------- fused heads: single (NB, 512) x (512, 128) matmul ----------------
    lhs_h = jnp.concatenate([y_last[h] for h in range(DS)], axis=-1)   # (NB, 512) bf16
    logits = jnp.dot(lhs_h, wh_ref[...], preferred_element_type=jnp.float32) + bh_ref[...]

    # validity head: numerically-stable sigmoid on every lane; wrapper slices lane 0
    e = jnp.exp(-jnp.abs(logits))
    adv_ref[...] = jnp.where(logits >= 0.0, 1.0 / (1.0 + e), e / (1.0 + e))

    # label head: softmax over lanes 1..N_CLASSES (others masked); wrapper slices them
    col = jax.lax.broadcasted_iota(jnp.int32, logits.shape, 1)
    ll = jnp.where((col >= 1) & (col < 1 + N_CLASSES), logits, -1e30)
    mx = jnp.max(ll, axis=-1, keepdims=True)
    ex = jnp.exp(ll - mx)
    aux_ref[...] = ex / jnp.sum(ex, axis=-1, keepdims=True)


# ---------------- wrapper ----------------

def discriminator_forward(img_nchw, params):
    conv_w, conv_p, wh, bh = params
    N, C, H, W = img_nchw.shape
    assert C == CHANNELS and H == IMG_SIZE and W == IMG_SIZE
    nblk = pl.cdiv(N, NB)
    ntot = nblk * NB

    # One tiny XLA-side layout transform: NCHW -> (H, N, W*C), zero-pad rows & batch,
    # then pre-gather the three kernel-row taps of layer 0 into the wide bf16 LHS
    # (oh, n, kh*W*C + w*C + c).
    x = jnp.transpose(img_nchw, (2, 0, 3, 1)).reshape(H, N, W * C)
    x = jnp.pad(x, ((1, 1), (0, ntot - N), (0, 0)))              # (H+2, ntot, W*C)
    x_wide = jnp.concatenate([x[0:H:2], x[1:H + 1:2], x[2:H + 2:2]],
                             axis=-1).astype(jnp.bfloat16)       # (H//2, ntot, 3*W*C)

    OH0, K0 = H // 2, 3 * W * C

    in_specs = [pl.BlockSpec((OH0, NB, K0), lambda b: (0, b, 0))]
    # weights / folded params: constant index maps -> fetched once, VMEM-resident
    for wgt in conv_w:
        in_specs.append(pl.BlockSpec(tuple(wgt.shape), lambda b: (0, 0)))
    for prm in conv_p:
        in_specs.append(pl.BlockSpec(tuple(prm.shape), lambda b: (0, 0, 0)))
    in_specs.append(pl.BlockSpec(tuple(wh.shape), lambda b: (0, 0)))
    in_specs.append(pl.BlockSpec(tuple(bh.shape), lambda b: (0, 0)))

    out_specs = (pl.BlockSpec((NB, 128), lambda b: (b, 0)),
                 pl.BlockSpec((NB, 128), lambda b: (b, 0)))

    # bf16 wide-LHS stages for layers 1..3 (written before read every grid step)
    scratch = [pltpu.VMEM((h // 2, NB, 3 * w * ci), jnp.bfloat16)
               for (h, w, ci, _) in LAYER_PLAN[1:]]

    flops = 0
    for (h, w, ci, co) in LAYER_PLAN:
        flops += 2 * (h // 2) * (3 * w * ci) * ((w // 2) * co)
    flops += 2 * FEAT * 128
    flops *= ntot
    bytes_accessed = (int(x_wide.size) * 2 + int(wh.size) * 2 + int(bh.size) * 4
                      + sum(int(a.size) * 2 for a in conv_w)
                      + sum(int(a.size) * 4 for a in conv_p)
                      + 2 * ntot * 128 * 4)

    adv_full, aux_full = pl.pallas_call(
        _fused_forward_kernel,
        grid=(nblk,),
        out_shape=(jax.ShapeDtypeStruct((ntot, 128), jnp.float32),
                   jax.ShapeDtypeStruct((ntot, 128), jnp.float32)),
        in_specs=in_specs,
        out_specs=out_specs,
        scratch_shapes=scratch,
        compiler_params=pltpu.CompilerParams(dimension_semantics=("parallel",)),
        cost_estimate=pl.CostEstimate(flops=int(flops),
                                      transcendentals=int(2 * ntot * 128),
                                      bytes_accessed=int(bytes_accessed)),
    )(x_wide, *conv_w, *conv_p, wh, bh)

    return adv_full[:N, 0:1], aux_full[:N, 1:1 + N_CLASSES]


# ---------------- one-time parameter construction ----------------

def _band_conv_weight(w_conv, W_in, OW):
    """Fold vertical taps (K-concat) + horizontal taps + stride-2 into (3*W_in*Cin, OW*Cout)."""
    _, _, Cin, Cout = w_conv.shape
    K = W_in * Cin
    Wb = np.zeros((3 * K, OW * Cout), np.float32)
    for kh in range(3):
        for kw in range(3):
            for ow in range(OW):
                w = 2 * ow + kw - 1            # input column (out of range == zero pad)
                if 0 <= w < W_in:
                    Wb[kh * K + w * Cin: kh * K + (w + 1) * Cin,
                       ow * Cout:(ow + 1) * Cout] = w_conv[kh, kw]
    return Wb


def init_params(key, channels=3, img_size=32):
    plan_ch = [(channels, 16, False), (16, 32, True), (32, 64, True), (64, 128, True)]
    sizes = [img_size // (2 ** i) for i in range(4)]
    keys = jax.random.split(key, len(plan_ch) + 1)

    conv_w, conv_p = [], []
    for k, (cin, cout, bn), w_in in zip(keys[:-1], plan_ch, sizes):
        kw_, kb_, kg_, kbe_, km_, kv_ = jax.random.split(k, 6)
        fan_in = 9 * cin
        w = (jax.random.normal(kw_, (3, 3, cin, cout), jnp.float32) /
             jnp.sqrt(jnp.float32(fan_in)))
        b = 0.1 * jax.random.normal(kb_, (cout,), jnp.float32)
        if bn:
            gamma = 1.0 + 0.1 * jax.random.normal(kg_, (cout,), jnp.float32)
            beta = 0.1 * jax.random.normal(kbe_, (cout,), jnp.float32)
            rmean = 0.1 * jax.random.normal(km_, (cout,), jnp.float32)
            rvar = jax.random.uniform(kv_, (cout,), jnp.float32, 0.5, 1.5)
            scale = gamma / jnp.sqrt(rvar + BN_EPS)     # eval-mode BN folded to affine
            shift = beta - rmean * scale
        else:
            scale = jnp.ones((cout,), jnp.float32)
            shift = jnp.zeros((cout,), jnp.float32)
        ow = w_in // 2
        conv_w.append(jnp.asarray(_band_conv_weight(np.asarray(w), w_in, ow), jnp.bfloat16))
        conv_p.append(jnp.stack([jnp.tile(b, ow).reshape(1, ow * cout),
                                 jnp.tile(scale, ow).reshape(1, ow * cout),
                                 jnp.tile(shift, ow).reshape(1, ow * cout)], axis=0))

    ds = img_size // 2 ** 4
    cf = 128
    feat = cf * ds * ds                                  # 512 for img_size=32
    ka, kab, kx, kxb = jax.random.split(keys[-1], 4)
    wa = jax.random.normal(ka, (feat, 1), jnp.float32) / jnp.sqrt(jnp.float32(feat))
    ba = 0.1 * jax.random.normal(kab, (1,), jnp.float32)
    wx = jax.random.normal(kx, (feat, N_CLASSES), jnp.float32) / jnp.sqrt(jnp.float32(feat))
    bx = 0.1 * jax.random.normal(kxb, (N_CLASSES,), jnp.float32)

    # merged head weight: lane 0 = validity, lanes 1..10 = class logits, rest zero.
    wfull = np.zeros((feat, 128), np.float32)
    wfull[:, 0:1] = np.asarray(wa)
    wfull[:, 1:1 + N_CLASSES] = np.asarray(wx)
    # permute rows once so the kernel's (h*ds*cf + w*cf + c) feature order matches
    # PyTorch's NCHW .view(N, -1) order (c*ds*ds + h*ds + w) -- never per-forward.
    perm = np.zeros((feat,), np.int64)
    for h in range(ds):
        for w_ in range(ds):
            for c in range(cf):
                perm[h * ds * cf + w_ * cf + c] = (c * ds + h) * ds + w_
    wh = jnp.asarray(wfull[perm, :], jnp.bfloat16)       # (512, 128)
    bh = np.zeros((1, 128), np.float32)
    bh[0, 0] = float(np.asarray(ba)[0])
    bh[0, 1:1 + N_CLASSES] = np.asarray(bx)
    bh = jnp.asarray(bh)

    return conv_w, conv_p, wh, bh


if __name__ == "__main__":
    key = jax.random.PRNGKey(0)
    kimg, kparam = jax.random.split(key)
    img = jax.random.normal(kimg, (2, CHANNELS, IMG_SIZE, IMG_SIZE), jnp.float32)  # NCHW
    params = init_params(kparam, channels=CHANNELS, img_size=IMG_SIZE)

    fwd = jax.jit(discriminator_forward)
    validity, label = fwd(img, params)
    jax.block_until_ready((validity, label))

    assert validity.shape == (2, 1) and label.shape == (2, N_CLASSES)
    assert bool(jnp.all(jnp.isfinite(validity))) and bool(jnp.all(jnp.isfinite(label)))
    assert bool(jnp.all(validity > 0.0)) and bool(jnp.all(validity < 1.0))
    assert bool(jnp.allclose(jnp.sum(label, axis=-1), 1.0, atol=1e-4))
    print("KERNEL_OK")
</pallas_src>

<mosaic_0001>
module attributes {stable_mosaic.version = 11 : i64} {
  func.func @_fused_forward_kernel(%arg0: i32, %arg1: memref<16x16x288xbf16, #tpu.memory_space<vmem>>, %arg2: memref<288x256xbf16, #tpu.memory_space<vmem>>, %arg3: memref<768x256xbf16, #tpu.memory_space<vmem>>, %arg4: memref<768x256xbf16, #tpu.memory_space<vmem>>, %arg5: memref<768x256xbf16, #tpu.memory_space<vmem>>, %arg6: memref<3x1x256xf32, #tpu.memory_space<vmem>>, %arg7: memref<3x1x256xf32, #tpu.memory_space<vmem>>, %arg8: memref<3x1x256xf32, #tpu.memory_space<vmem>>, %arg9: memref<3x1x256xf32, #tpu.memory_space<vmem>>, %arg10: memref<512x128xbf16, #tpu.memory_space<vmem>>, %arg11: memref<1x128xf32, #tpu.memory_space<vmem>>, %arg12: memref<16x128xf32, #tpu.memory_space<vmem>>, %arg13: memref<16x128xf32, #tpu.memory_space<vmem>>, %arg14: memref<8x16x768xbf16, #tpu.memory_space<vmem>>, %arg15: memref<4x16x768xbf16, #tpu.memory_space<vmem>>, %arg16: memref<2x16x768xbf16, #tpu.memory_space<vmem>>) attributes {dimension_semantics = [#tpu.dimension_semantics<parallel>], iteration_bounds = array<i64: 1>, scalar_prefetch = 0 : i64, scratch_operands = 3 : i64, tpu.core_type = #tpu.core_type<tc>, window_params = [{transform_indices = @transform_0, window_bounds = array<i64: 16, 16, 288>}, {pipeline_mode = #tpu.pipeline_mode<synchronous>, transform_indices = @transform_1, window_bounds = array<i64: 288, 256>}, {pipeline_mode = #tpu.pipeline_mode<synchronous>, transform_indices = @transform_2, window_bounds = array<i64: 768, 256>}, {pipeline_mode = #tpu.pipeline_mode<synchronous>, transform_indices = @transform_3, window_bounds = array<i64: 768, 256>}, {pipeline_mode = #tpu.pipeline_mode<synchronous>, transform_indices = @transform_4, window_bounds = array<i64: 768, 256>}, {pipeline_mode = #tpu.pipeline_mode<synchronous>, transform_indices = @transform_5, window_bounds = array<i64: 3, 1, 256>}, {pipeline_mode = #tpu.pipeline_mode<synchronous>, transform_indices = @transform_6, window_bounds = array<i64: 3, 1, 256>}, {pipeline_mode = #tpu.pipeline_mode<synchronous>, transform_indices = @transform_7, window_bounds = array<i64: 3, 1, 256>}, {pipeline_mode = #tpu.pipeline_mode<synchronous>, transform_indices = @transform_8, window_bounds = array<i64: 3, 1, 256>}, {pipeline_mode = #tpu.pipeline_mode<synchronous>, transform_indices = @transform_9, window_bounds = array<i64: 512, 128>}, {pipeline_mode = #tpu.pipeline_mode<synchronous>, transform_indices = @transform_10, window_bounds = array<i64: 1, 128>}, {transform_indices = @transform_11, window_bounds = array<i64: 16, 128>}, {transform_indices = @transform_12, window_bounds = array<i64: 16, 128>}]} {
    %c0 = arith.constant 0 : index
    %c0_0 = arith.constant 0 : index
    %c0_1 = arith.constant 0 : index
    %0 = vector.load %arg1[%c0, %c0_0, %c0_1] : memref<16x16x288xbf16, #tpu.memory_space<vmem>>, vector<16x16x288xbf16>
    %1 = vector.shape_cast %0 : vector<16x16x288xbf16> to vector<256x288xbf16>
    %c0_2 = arith.constant 0 : index
    %c0_3 = arith.constant 0 : index
    %2 = vector.load %arg2[%c0_2, %c0_3] : memref<288x256xbf16, #tpu.memory_space<vmem>>, vector<288x256xbf16>
    %cst = arith.constant dense<0.000000e+00> : vector<256x256xf32>
    %3 = tpu.matmul %1, %2, %cst {dimension_numbers = #tpu.dot_dimension_numbers<[1], [0], [0], [1], [0, 0, 1, 1], [], []>} : vector<256x288xbf16>, vector<288x256xbf16>, vector<256x256xf32> -> vector<256x256xf32>
    %c0_4 = arith.constant 0 : index
    %c0_5 = arith.constant 0 : index
    %c0_6 = arith.constant 0 : index
    %4 = vector.load %arg6[%c0_4, %c0_5, %c0_6] : memref<3x1x256xf32, #tpu.memory_space<vmem>>, vector<3x1x256xf32>
    %5 = vector.extract_strided_slice %4 {offsets = [0, 0, 0], sizes = [1, 1, 256], strides = [1, 1, 1]} : vector<3x1x256xf32> to vector<1x1x256xf32>
    %6 = vector.shape_cast %5 : vector<1x1x256xf32> to vector<1x256xf32>
    %7 = vector.broadcast %6 : vector<1x256xf32> to vector<256x256xf32>
    %8 = arith.addf %3, %7 : vector<256x256xf32>
    %cst_7 = arith.constant 0.000000e+00 : f32
    %9 = vector.broadcast %cst_7 : f32 to vector<256x256xf32>
    %10 = arith.cmpf oge, %8, %9 : vector<256x256xf32>
    %cst_8 = arith.constant 2.000000e-01 : f32
    %11 = vector.broadcast %cst_8 : f32 to vector<256x256xf32>
    %12 = arith.mulf %11, %8 : vector<256x256xf32>
    %13 = arith.select %10, %8, %12 : vector<256x256xi1>, vector<256x256xf32>
    %14 = vector.extract_strided_slice %4 {offsets = [1, 0, 0], sizes = [1, 1, 256], strides = [1, 1, 1]} : vector<3x1x256xf32> to vector<1x1x256xf32>
    %15 = vector.shape_cast %14 : vector<1x1x256xf32> to vector<1x256xf32>
    %16 = vector.broadcast %15 : vector<1x256xf32> to vector<256x256xf32>
    %17 = arith.mulf %13, %16 : vector<256x256xf32>
    %18 = vector.extract_strided_slice %4 {offsets = [2, 0, 0], sizes = [1, 1, 256], strides = [1, 1, 1]} : vector<3x1x256xf32> to vector<1x1x256xf32>
    %19 = vector.shape_cast %18 : vector<1x1x256xf32> to vector<1x256xf32>
    %20 = vector.broadcast %19 : vector<1x256xf32> to vector<256x256xf32>
    %21 = arith.addf %17, %20 : vector<256x256xf32>
    %22 = arith.truncf %21 : vector<256x256xf32> to vector<256x256xbf16>
    %23 = vector.shape_cast %22 : vector<256x256xbf16> to vector<16x16x256xbf16>
    %cst_9 = arith.constant 0.000000e+00 : bf16
    %24 = vector.broadcast %cst_9 : bf16 to vector<16x256xbf16>
    %c0_10 = arith.constant 0 : index
    %c0_11 = arith.constant 0 : index
    %c0_12 = arith.constant 0 : index
    %25 = vector.load %arg14[%c0_10, %c0_11, %c0_12] : memref<8x16x768xbf16, #tpu.memory_space<vmem>>, vector<1x16x256xbf16>
    %26 = vector.shape_cast %25 : vector<1x16x256xbf16> to vector<16x256xbf16>
    %27 = vector.shape_cast %24 : vector<16x256xbf16> to vector<1x16x256xbf16>
    tpu.vector_store %arg14[%c0_10, %c0_11, %c0_12], %27 {strides = array<i32>} : memref<8x16x768xbf16, #tpu.memory_space<vmem>>, vector<1x16x256xbf16>,
    %28 = vector.extract_strided_slice %23 {offsets = [0, 0, 0], sizes = [1, 16, 256], strides = [1, 1, 1]} : vector<16x16x256xbf16> to vector<1x16x256xbf16>
    %29 = vector.shape_cast %28 : vector<1x16x256xbf16> to vector<16x256xbf16>
    %c0_13 = arith.constant 0 : index
    %c0_14 = arith.constant 0 : index
    %c256 = arith.constant 256 : index
    %30 = vector.load %arg14[%c0_13, %c0_14, %c256] : memref<8x16x768xbf16, #tpu.memory_space<vmem>>, vector<1x16x256xbf16>
    %31 = vector.shape_cast %30 : vector<1x16x256xbf16> to vector<16x256xbf16>
    %32 = vector.shape_cast %29 : vector<16x256xbf16> to vector<1x16x256xbf16>
    tpu.vector_store %arg14[%c0_13, %c0_14, %c256], %32 {strides = array<i32>} : memref<8x16x768xbf16, #tpu.memory_space<vmem>>, vector<1x16x256xbf16>,
    %33 = vector.extract_strided_slice %23 {offsets = [1, 0, 0], sizes = [1, 16, 256], strides = [1, 1, 1]} : vector<16x16x256xbf16> to vector<1x16x256xbf16>
    %34 = vector.shape_cast %33 : vector<1x16x256xbf16> to vector<16x256xbf16>
    %c0_15 = arith.constant 0 : index
    %c0_16 = arith.constant 0 : index
    %c512 = arith.constant 512 : index
    %35 = vector.load %arg14[%c0_15, %c0_16, %c512] : memref<8x16x768xbf16, #tpu.memory_space<vmem>>, vector<1x16x256xbf16>
    %36 = vector.shape_cast %35 : vector<1x16x256xbf16> to vector<16x256xbf16>
    %37 = vector.shape_cast %34 : vector<16x256xbf16> to vector<1x16x256xbf16>
    tpu.vector_store %arg14[%c0_15, %c0_16, %c512], %37 {strides = array<i32>} : memref<8x16x768xbf16, #tpu.memory_space<vmem>>, vector<1x16x256xbf16>,
    %c1 = arith.constant 1 : index
    %c0_17 = arith.constant 0 : index
    %c0_18 = arith.constant 0 : index
    %38 = vector.load %arg14[%c1, %c0_17, %c0_18] : memref<8x16x768xbf16, #tpu.memory_space<vmem>>, vector<1x16x256xbf16>
    %39 = vector.shape_cast %38 : vector<1x16x256xbf16> to vector<16x256xbf16>
    %40 = vector.shape_cast %34 : vector<16x256xbf16> to vector<1x16x256xbf16>
    tpu.vector_store %arg14[%c1, %c0_17, %c0_18], %40 {strides = array<i32>} : memref<8x16x768xbf16, #tpu.memory_space<vmem>>, vector<1x16x256xbf16>,
    %41 = vector.extract_strided_slice %23 {offsets = [2, 0, 0], sizes = [1, 16, 256], strides = [1, 1, 1]} : vector<16x16x256xbf16> to vector<1x16x256xbf16>
    %42 = vector.shape_cast %41 : vector<1x16x256xbf16> to vector<16x256xbf16>
    %c1_19 = arith.constant 1 : index
    %c0_20 = arith.constant 0 : index
    %c256_21 = arith.constant 256 : index
    %43 = vector.load %arg14[%c1_19, %c0_20, %c256_21] : memref<8x16x768xbf16, #tpu.memory_space<vmem>>, vector<1x16x256xbf16>
    %44 = vector.shape_cast %43 : vector<1x16x256xbf16> to vector<16x256xbf16>
    %45 = vector.shape_cast %42 : vector<16x256xbf16> to vector<1x16x256xbf16>
    tpu.vector_store %arg14[%c1_19, %c0_20, %c256_21], %45 {strides = array<i32>} : memref<8x16x768xbf16, #tpu.memory_space<vmem>>, vector<1x16x256xbf16>,
    %46 = vector.extract_strided_slice %23 {offsets = [3, 0, 0], sizes = [1, 16, 256], strides = [1, 1, 1]} : vector<16x16x256xbf16> to vector<1x16x256xbf16>
    %47 = vector.shape_cast %46 : vector<1x16x256xbf16> to vector<16x256xbf16>
    %c1_22 = arith.constant 1 : index
    %c0_23 = arith.constant 0 : index
    %c512_24 = arith.constant 512 : index
    %48 = vector.load %arg14[%c1_22, %c0_23, %c512_24] : memref<8x16x768xbf16, #tpu.memory_space<vmem>>, vector<1x16x256xbf16>
    %49 = vector.shape_cast %48 : vector<1x16x256xbf16> to vector<16x256xbf16>
    %50 = vector.shape_cast %47 : vector<16x256xbf16> to vector<1x16x256xbf16>
    tpu.vector_store %arg14[%c1_22, %c0_23, %c512_24], %50 {strides = array<i32>} : memref<8x16x768xbf16, #tpu.memory_space<vmem>>, vector<1x16x256xbf16>,
    %c2 = arith.constant 2 : index
    %c0_25 = arith.constant 0 : index
    %c0_26 = arith.constant 0 : index
    %51 = vector.load %arg14[%c2, %c0_25, %c0_26] : memref<8x16x768xbf16, #tpu.memory_space<vmem>>, vector<1x16x256xbf16>
    %52 = vector.shape_cast %51 : vector<1x16x256xbf16> to vector<16x256xbf16>
    %53 = vector.shape_cast %47 : vector<16x256xbf16> to vector<1x16x256xbf16>
    tpu.vector_store %arg14[%c2, %c0_25, %c0_26], %53 {strides = array<i32>} : memref<8x16x768xbf16, #tpu.memory_space<vmem>>, vector<1x16x256xbf16>,
    %54 = vector.extract_strided_slice %23 {offsets = [4, 0, 0], sizes = [1, 16, 256], strides = [1, 1, 1]} : vector<16x16x256xbf16> to vector<1x16x256xbf16>
    %55 = vector.shape_cast %54 : vector<1x16x256xbf16> to vector<16x256xbf16>
    %c2_27 = arith.constant 2 : index
    %c0_28 = arith.constant 0 : index
    %c256_29 = arith.constant 256 : index
    %56 = vector.load %arg14[%c2_27, %c0_28, %c256_29] : memref<8x16x768xbf16, #tpu.memory_space<vmem>>, vector<1x16x256xbf16>
    %57 = vector.shape_cast %56 : vector<1x16x256xbf16> to vector<16x256xbf16>
    %58 = vector.shape_cast %55 : vector<16x256xbf16> to vector<1x16x256xbf16>
    tpu.vector_store %arg14[%c2_27, %c0_28, %c256_29], %58 {strides = array<i32>} : memref<8x16x768xbf16, #tpu.memory_space<vmem>>, vector<1x16x256xbf16>,
    %59 = vector.extract_strided_slice %23 {offsets = [5, 0, 0], sizes = [1, 16, 256], strides = [1, 1, 1]} : vector<16x16x256xbf16> to vector<1x16x256xbf16>
    %60 = vector.shape_cast %59 : vector<1x16x256xbf16> to vector<16x256xbf16>
    %c2_30 = arith.constant 2 : index
    %c0_31 = arith.constant 0 : index
    %c512_32 = arith.constant 512 : index
    %61 = vector.load %arg14[%c2_30, %c0_31, %c512_32] : memref<8x16x768xbf16, #tpu.memory_space<vmem>>, vector<1x16x256xbf16>
    %62 = vector.shape_cast %61 : vector<1x16x256xbf16> to vector<16x256xbf16>
    %63 = vector.shape_cast %60 : vector<16x256xbf16> to vector<1x16x256xbf16>
    tpu.vector_store %arg14[%c2_30, %c0_31, %c512_32], %63 {strides = array<i32>} : memref<8x16x768xbf16, #tpu.memory_space<vmem>>, vector<1x16x256xbf16>,
    %c3 = arith.constant 3 : index
    %c0_33 = arith.constant 0 : index
    %c0_34 = arith.constant 0 : index
    %64 = vector.load %arg14[%c3, %c0_33, %c0_34] : memref<8x16x768xbf16, #tpu.memory_space<vmem>>, vector<1x16x256xbf16>
    %65 = vector.shape_cast %64 : vector<1x16x256xbf16> to vector<16x256xbf16>
    %66 = vector.shape_cast %60 : vector<16x256xbf16> to vector<1x16x256xbf16>
    tpu.vector_store %arg14[%c3, %c0_33, %c0_34], %66 {strides = array<i32>} : memref<8x16x768xbf16, #tpu.memory_space<vmem>>, vector<1x16x256xbf16>,
    %67 = vector.extract_strided_slice %23 {offsets = [6, 0, 0], sizes = [1, 16, 256], strides = [1, 1, 1]} : vector<16x16x256xbf16> to vector<1x16x256xbf16>
    %68 = vector.shape_cast %67 : vector<1x16x256xbf16> to vector<16x256xbf16>
    %c3_35 = arith.constant 3 : index
    %c0_36 = arith.constant 0 : index
    %c256_37 = arith.constant 256 : index
    %69 = vector.load %arg14[%c3_35, %c0_36, %c256_37] : memref<8x16x768xbf16, #tpu.memory_space<vmem>>, vector<1x16x256xbf16>
    %70 = vector.shape_cast %69 : vector<1x16x256xbf16> to vector<16x256xbf16>
    %71 = vector.shape_cast %68 : vector<16x256xbf16> to vector<1x16x256xbf16>
    tpu.vector_store %arg14[%c3_35, %c0_36, %c256_37], %71 {strides = array<i32>} : memref<8x16x768xbf16, #tpu.memory_space<vmem>>, vector<1x16x256xbf16>,
    %72 = vector.extract_strided_slice %23 {offsets = [7, 0, 0], sizes = [1, 16, 256], strides = [1, 1, 1]} : vector<16x16x256xbf16> to vector<1x16x256xbf16>
    %73 = vector.shape_cast %72 : vector<1x16x256xbf16> to vector<16x256xbf16>
    %c3_38 = arith.constant 3 : index
    %c0_39 = arith.constant 0 : index
    %c512_40 = arith.constant 512 : index
    %74 = vector.load %arg14[%c3_38, %c0_39, %c512_40] : memref<8x16x768xbf16, #tpu.memory_space<vmem>>, vector<1x16x256xbf16>
    %75 = vector.shape_cast %74 : vector<1x16x256xbf16> to vector<16x256xbf16>
    %76 = vector.shape_cast %73 : vector<16x256xbf16> to vector<1x16x256xbf16>
    tpu.vector_store %arg14[%c3_38, %c0_39, %c512_40], %76 {strides = array<i32>} : memref<8x16x768xbf16, #tpu.memory_space<vmem>>, vector<1x16x256xbf16>,
    %c4 = arith.constant 4 : index
    %c0_41 = arith.constant 0 : index
    %c0_42 = arith.constant 0 : index
    %77 = vector.load %arg14[%c4, %c0_41, %c0_42] : memref<8x16x768xbf16, #tpu.memory_space<vmem>>, vector<1x16x256xbf16>
    %78 = vector.shape_cast %77 : vector<1x16x256xbf16> to vector<16x256xbf16>
    %79 = vector.shape_cast %73 : vector<16x256xbf16> to vector<1x16x256xbf16>
    tpu.vector_store %arg14[%c4, %c0_41, %c0_42], %79 {strides = array<i32>} : memref<8x16x768xbf16, #tpu.memory_space<vmem>>, vector<1x16x256xbf16>,
    %80 = vector.extract_strided_slice %23 {offsets = [8, 0, 0], sizes = [1, 16, 256], strides = [1, 1, 1]} : vector<16x16x256xbf16> to vector<1x16x256xbf16>
    %81 = vector.shape_cast %80 : vector<1x16x256xbf16> to vector<16x256xbf16>
    %c4_43 = arith.constant 4 : index
    %c0_44 = arith.constant 0 : index
    %c256_45 = arith.constant 256 : index
    %82 = vector.load %arg14[%c4_43, %c0_44, %c256_45] : memref<8x16x768xbf16, #tpu.memory_space<vmem>>, vector<1x16x256xbf16>
    %83 = vector.shape_cast %82 : vector<1x16x256xbf16> to vector<16x256xbf16>
    %84 = vector.shape_cast %81 : vector<16x256xbf16> to vector<1x16x256xbf16>
    tpu.vector_store %arg14[%c4_43, %c0_44, %c256_45], %84 {strides = array<i32>} : memref<8x16x768xbf16, #tpu.memory_space<vmem>>, vector<1x16x256xbf16>,
    %85 = vector.extract_strided_slice %23 {offsets = [9, 0, 0], sizes = [1, 16, 256], strides = [1, 1, 1]} : vector<16x16x256xbf16> to vector<1x16x256xbf16>
    %86 = vector.shape_cast %85 : vector<1x16x256xbf16> to vector<16x256xbf16>
    %c4_46 = arith.constant 4 : index
    %c0_47 = arith.constant 0 : index
    %c512_48 = arith.constant 512 : index
    %87 = vector.load %arg14[%c4_46, %c0_47, %c512_48] : memref<8x16x768xbf16, #tpu.memory_space<vmem>>, vector<1x16x256xbf16>
    %88 = vector.shape_cast %87 : vector<1x16x256xbf16> to vector<16x256xbf16>
    %89 = vector.shape_cast %86 : vector<16x256xbf16> to vector<1x16x256xbf16>
    tpu.vector_store %arg14[%c4_46, %c0_47, %c512_48], %89 {strides = array<i32>} : memref<8x16x768xbf16, #tpu.memory_space<vmem>>, vector<1x16x256xbf16>,
    %c5 = arith.constant 5 : index
    %c0_49 = arith.constant 0 : index
    %c0_50 = arith.constant 0 : index
    %90 = vector.load %arg14[%c5, %c0_49, %c0_50] : memref<8x16x768xbf16, #tpu.memory_space<vmem>>, vector<1x16x256xbf16>
    %91 = vector.shape_cast %90 : vector<1x16x256xbf16> to vector<16x256xbf16>
    %92 = vector.shape_cast %86 : vector<16x256xbf16> to vector<1x16x256xbf16>
    tpu.vector_store %arg14[%c5, %c0_49, %c0_50], %92 {strides = array<i32>} : memref<8x16x768xbf16, #tpu.memory_space<vmem>>, vector<1x16x256xbf16>,
    %93 = vector.extract_strided_slice %23 {offsets = [10, 0, 0], sizes = [1, 16, 256], strides = [1, 1, 1]} : vector<16x16x256xbf16> to vector<1x16x256xbf16>
    %94 = vector.shape_cast %93 : vector<1x16x256xbf16> to vector<16x256xbf16>
    %c5_51 = arith.constant 5 : index
    %c0_52 = arith.constant 0 : index
    %c256_53 = arith.constant 256 : index
    %95 = vector.load %arg14[%c5_51, %c0_52, %c256_53] : memref<8x16x768xbf16, #tpu.memory_space<vmem>>, vector<1x16x256xbf16>
    %96 = vector.shape_cast %95 : vector<1x16x256xbf16> to vector<16x256xbf16>
    %97 = vector.shape_cast %94 : vector<16x256xbf16> to vector<1x16x256xbf16>
    tpu.vector_store %arg14[%c5_51, %c0_52, %c256_53], %97 {strides = array<i32>} : memref<8x16x768xbf16, #tpu.memory_space<vmem>>, vector<1x16x256xbf16>,
    %98 = vector.extract_strided_slice %23 {offsets = [11, 0, 0], sizes = [1, 16, 256], strides = [1, 1, 1]} : vector<16x16x256xbf16> to vector<1x16x256xbf16>
    %99 = vector.shape_cast %98 : vector<1x16x256xbf16> to vector<16x256xbf16>
    %c5_54 = arith.constant 5 : index
    %c0_55 = arith.constant 0 : index
    %c512_56 = arith.constant 512 : index
    %100 = vector.load %arg14[%c5_54, %c0_55, %c512_56] : memref<8x16x768xbf16, #tpu.memory_space<vmem>>, vector<1x16x256xbf16>
    %101 = vector.shape_cast %100 : vector<1x16x256xbf16> to vector<16x256xbf16>
    %102 = vector.shape_cast %99 : vector<16x256xbf16> to vector<1x16x256xbf16>
    tpu.vector_store %arg14[%c5_54, %c0_55, %c512_56], %102 {strides = array<i32>} : memref<8x16x768xbf16, #tpu.memory_space<vmem>>, vector<1x16x256xbf16>,
    %c6 = arith.constant 6 : index
    %c0_57 = arith.constant 0 : index
    %c0_58 = arith.constant 0 : index
    %103 = vector.load %arg14[%c6, %c0_57, %c0_58] : memref<8x16x768xbf16, #tpu.memory_space<vmem>>, vector<1x16x256xbf16>
    %104 = vector.shape_cast %103 : vector<1x16x256xbf16> to vector<16x256xbf16>
    %105 = vector.shape_cast %99 : vector<16x256xbf16> to vector<1x16x256xbf16>
    tpu.vector_store %arg14[%c6, %c0_57, %c0_58], %105 {strides = array<i32>} : memref<8x16x768xbf16, #tpu.memory_space<vmem>>, vector<1x16x256xbf16>,
    %106 = vector.extract_strided_slice %23 {offsets = [12, 0, 0], sizes = [1, 16, 256], strides = [1, 1, 1]} : vector<16x16x256xbf16> to vector<1x16x256xbf16>
    %107 = vector.shape_cast %106 : vector<1x16x256xbf16> to vector<16x256xbf16>
    %c6_59 = arith.constant 6 : index
    %c0_60 = arith.constant 0 : index
    %c256_61 = arith.constant 256 : index
    %108 = vector.load %arg14[%c6_59, %c0_60, %c256_61] : memref<8x16x768xbf16, #tpu.memory_space<vmem>>, vector<1x16x256xbf16>
    %109 = vector.shape_cast %108 : vector<1x16x256xbf16> to vector<16x256xbf16>
    %110 = vector.shape_cast %107 : vector<16x256xbf16> to vector<1x16x256xbf16>
    tpu.vector_store %arg14[%c6_59, %c0_60, %c256_61], %110 {strides = array<i32>} : memref<8x16x768xbf16, #tpu.memory_space<vmem>>, vector<1x16x256xbf16>,
    %111 = vector.extract_strided_slice %23 {offsets = [13, 0, 0], sizes = [1, 16, 256], strides = [1, 1, 1]} : vector<16x16x256xbf16> to vector<1x16x256xbf16>
    %112 = vector.shape_cast %111 : vector<1x16x256xbf16> to vector<16x256xbf16>
    %c6_62 = arith.constant 6 : index
    %c0_63 = arith.constant 0 : index
    %c512_64 = arith.constant 512 : index
    %113 = vector.load %arg14[%c6_62, %c0_63, %c512_64] : memref<8x16x768xbf16, #tpu.memory_space<vmem>>, vector<1x16x256xbf16>
    %114 = vector.shape_cast %113 : vector<1x16x256xbf16> to vector<16x256xbf16>
    %115 = vector.shape_cast %112 : vector<16x256xbf16> to vector<1x16x256xbf16>
    tpu.vector_store %arg14[%c6_62, %c0_63, %c512_64], %115 {strides = array<i32>} : memref<8x16x768xbf16, #tpu.memory_space<vmem>>, vector<1x16x256xbf16>,
    %c7 = arith.constant 7 : index
    %c0_65 = arith.constant 0 : index
    %c0_66 = arith.constant 0 : index
    %116 = vector.load %arg14[%c7, %c0_65, %c0_66] : memref<8x16x768xbf16, #tpu.memory_space<vmem>>, vector<1x16x256xbf16>
    %117 = vector.shape_cast %116 : vector<1x16x256xbf16> to vector<16x256xbf16>
    %118 = vector.shape_cast %112 : vector<16x256xbf16> to vector<1x16x256xbf16>
    tpu.vector_store %arg14[%c7, %c0_65, %c0_66], %118 {strides = array<i32>} : memref<8x16x768xbf16, #tpu.memory_space<vmem>>, vector<1x16x256xbf16>,
    %119 = vector.extract_strided_slice %23 {offsets = [14, 0, 0], sizes = [1, 16, 256], strides = [1, 1, 1]} : vector<16x16x256xbf16> to vector<1x16x256xbf16>
    %120 = vector.shape_cast %119 : vector<1x16x256xbf16> to vector<16x256xbf16>
    %c7_67 = arith.constant 7 : index
    %c0_68 = arith.constant 0 : index
    %c256_69 = arith.constant 256 : index
    %121 = vector.load %arg14[%c7_67, %c0_68, %c256_69] : memref<8x16x768xbf16, #tpu.memory_space<vmem>>, vector<1x16x256xbf16>
    %122 = vector.shape_cast %121 : vector<1x16x256xbf16> to vector<16x256xbf16>
    %123 = vector.shape_cast %120 : vector<16x256xbf16> to vector<1x16x256xbf16>
    tpu.vector_store %arg14[%c7_67, %c0_68, %c256_69], %123 {strides = array<i32>} : memref<8x16x768xbf16, #tpu.memory_space<vmem>>, vector<1x16x256xbf16>,
    %124 = vector.extract_strided_slice %23 {offsets = [15, 0, 0], sizes = [1, 16, 256], strides = [1, 1, 1]} : vector<16x16x256xbf16> to vector<1x16x256xbf16>
    %125 = vector.shape_cast %124 : vector<1x16x256xbf16> to vector<16x256xbf16>
    %c7_70 = arith.constant 7 : index
    %c0_71 = arith.constant 0 : index
    %c512_72 = arith.constant 512 : index
    %126 = vector.load %arg14[%c7_70, %c0_71, %c512_72] : memref<8x16x768xbf16, #tpu.memory_space<vmem>>, vector<1x16x256xbf16>
    %127 = vector.shape_cast %126 : vector<1x16x256xbf16> to vector<16x256xbf16>
    %128 = vector.shape_cast %125 : vector<16x256xbf16> to vector<1x16x256xbf16>
    tpu.vector_store %arg14[%c7_70, %c0_71, %c512_72], %128 {strides = array<i32>} : memref<8x16x768xbf16, #tpu.memory_space<vmem>>, vector<1x16x256xbf16>,
    %c0_73 = arith.constant 0 : index
    %c0_74 = arith.constant 0 : index
    %c0_75 = arith.constant 0 : index
    %129 = vector.load %arg14[%c0_73, %c0_74, %c0_75] : memref<8x16x768xbf16, #tpu.memory_space<vmem>>, vector<8x16x768xbf16>
    %130 = vector.shape_cast %129 : vector<8x16x768xbf16> to vector<128x768xbf16>
    %c0_76 = arith.constant 0 : index
    %c0_77 = arith.constant 0 : index
    %131 = vector.load %arg3[%c0_76, %c0_77] : memref<768x256xbf16, #tpu.memory_space<vmem>>, vector<768x256xbf16>
    %cst_78 = arith.constant dense<0.000000e+00> : vector<128x256xf32>
    %132 = tpu.matmul %130, %131, %cst_78 {dimension_numbers = #tpu.dot_dimension_numbers<[1], [0], [0], [1], [0, 0, 1, 1], [], []>} : vector<128x768xbf16>, vector<768x256xbf16>, vector<128x256xf32> -> vector<128x256xf32>
    %c0_79 = arith.constant 0 : index
    %c0_80 = arith.constant 0 : index
    %c0_81 = arith.constant 0 : index
    %133 = vector.load %arg7[%c0_79, %c0_80, %c0_81] : memref<3x1x256xf32, #tpu.memory_space<vmem>>, vector<3x1x256xf32>
    %134 = vector.extract_strided_slice %133 {offsets = [0, 0, 0], sizes = [1, 1, 256], strides = [1, 1, 1]} : vector<3x1x256xf32> to vector<1x1x256xf32>
    %135 = vector.shape_cast %134 : vector<1x1x256xf32> to vector<1x256xf32>
    %136 = vector.broadcast %135 : vector<1x256xf32> to vector<128x256xf32>
    %137 = arith.addf %132, %136 : vector<128x256xf32>
    %cst_82 = arith.constant 0.000000e+00 : f32
    %138 = vector.broadcast %cst_82 : f32 to vector<128x256xf32>
    %139 = arith.cmpf oge, %137, %138 : vector<128x256xf32>
    %cst_83 = arith.constant 2.000000e-01 : f32
    %140 = vector.broadcast %cst_83 : f32 to vector<128x256xf32>
    %141 = arith.mulf %140, %137 : vector<128x256xf32>
    %142 = arith.select %139, %137, %141 : vector<128x256xi1>, vector<128x256xf32>
    %143 = vector.extract_strided_slice %133 {offsets = [1, 0, 0], sizes = [1, 1, 256], strides = [1, 1, 1]} : vector<3x1x256xf32> to vector<1x1x256xf32>
    %144 = vector.shape_cast %143 : vector<1x1x256xf32> to vector<1x256xf32>
    %145 = vector.broadcast %144 : vector<1x256xf32> to vector<128x256xf32>
    %146 = arith.mulf %142, %145 : vector<128x256xf32>
    %147 = vector.extract_strided_slice %133 {offsets = [2, 0, 0], sizes = [1, 1, 256], strides = [1, 1, 1]} : vector<3x1x256xf32> to vector<1x1x256xf32>
    %148 = vector.shape_cast %147 : vector<1x1x256xf32> to vector<1x256xf32>
    %149 = vector.broadcast %148 : vector<1x256xf32> to vector<128x256xf32>
    %150 = arith.addf %146, %149 : vector<128x256xf32>
    %151 = arith.truncf %150 : vector<128x256xf32> to vector<128x256xbf16>
    %152 = vector.shape_cast %151 : vector<128x256xbf16> to vector<8x16x256xbf16>
    %cst_84 = arith.constant 0.000000e+00 : bf16
    %153 = vector.broadcast %cst_84 : bf16 to vector<16x256xbf16>
    %c0_85 = arith.constant 0 : index
    %c0_86 = arith.constant 0 : index
    %c0_87 = arith.constant 0 : index
    %154 = vector.load %arg15[%c0_85, %c0_86, %c0_87] : memref<4x16x768xbf16, #tpu.memory_space<vmem>>, vector<1x16x256xbf16>
    %155 = vector.shape_cast %154 : vector<1x16x256xbf16> to vector<16x256xbf16>
    %156 = vector.shape_cast %153 : vector<16x256xbf16> to vector<1x16x256xbf16>
    tpu.vector_store %arg15[%c0_85, %c0_86, %c0_87], %156 {strides = array<i32>} : memref<4x16x768xbf16, #tpu.memory_space<vmem>>, vector<1x16x256xbf16>,
    %157 = vector.extract_strided_slice %152 {offsets = [0, 0, 0], sizes = [1, 16, 256], strides = [1, 1, 1]} : vector<8x16x256xbf16> to vector<1x16x256xbf16>
    %158 = vector.shape_cast %157 : vector<1x16x256xbf16> to vector<16x256xbf16>
    %c0_88 = arith.constant 0 : index
    %c0_89 = arith.constant 0 : index
    %c256_90 = arith.constant 256 : index
    %159 = vector.load %arg15[%c0_88, %c0_89, %c256_90] : memref<4x16x768xbf16, #tpu.memory_space<vmem>>, vector<1x16x256xbf16>
    %160 = vector.shape_cast %159 : vector<1x16x256xbf16> to vector<16x256xbf16>
    %161 = vector.shape_cast %158 : vector<16x256xbf16> to vector<1x16x256xbf16>
    tpu.vector_store %arg15[%c0_88, %c0_89, %c256_90], %161 {strides = array<i32>} : memref<4x16x768xbf16, #tpu.memory_space<vmem>>, vector<1x16x256xbf16>,
    %162 = vector.extract_strided_slice %152 {offsets = [1, 0, 0], sizes = [1, 16, 256], strides = [1, 1, 1]} : vector<8x16x256xbf16> to vector<1x16x256xbf16>
    %163 = vector.shape_cast %162 : vector<1x16x256xbf16> to vector<16x256xbf16>
    %c0_91 = arith.constant 0 : index
    %c0_92 = arith.constant 0 : index
    %c512_93 = arith.constant 512 : index
    %164 = vector.load %arg15[%c0_91, %c0_92, %c512_93] : memref<4x16x768xbf16, #tpu.memory_space<vmem>>, vector<1x16x256xbf16>
    %165 = vector.shape_cast %164 : vector<1x16x256xbf16> to vector<16x256xbf16>
    %166 = vector.shape_cast %163 : vector<16x256xbf16> to vector<1x16x256xbf16>
    tpu.vector_store %arg15[%c0_91, %c0_92, %c512_93], %166 {strides = array<i32>} : memref<4x16x768xbf16, #tpu.memory_space<vmem>>, vector<1x16x256xbf16>,
    %c1_94 = arith.constant 1 : index
    %c0_95 = arith.constant 0 : index
    %c0_96 = arith.constant 0 : index
    %167 = vector.load %arg15[%c1_94, %c0_95, %c0_96] : memref<4x16x768xbf16, #tpu.memory_space<vmem>>, vector<1x16x256xbf16>
    %168 = vector.shape_cast %167 : vector<1x16x256xbf16> to vector<16x256xbf16>
    %169 = vector.shape_cast %163 : vector<16x256xbf16> to vector<1x16x256xbf16>
    tpu.vector_store %arg15[%c1_94, %c0_95, %c0_96], %169 {strides = array<i32>} : memref<4x16x768xbf16, #tpu.memory_space<vmem>>, vector<1x16x256xbf16>,
    %170 = vector.extract_strided_slice %152 {offsets = [2, 0, 0], sizes = [1, 16, 256], strides = [1, 1, 1]} : vector<8x16x256xbf16> to vector<1x16x256xbf16>
    %171 = vector.shape_cast %170 : vector<1x16x256xbf16> to vector<16x256xbf16>
    %c1_97 = arith.constant 1 : index
    %c0_98 = arith.constant 0 : index
    %c256_99 = arith.constant 256 : index
    %172 = vector.load %arg15[%c1_97, %c0_98, %c256_99] : memref<4x16x768xbf16, #tpu.memory_space<vmem>>, vector<1x16x256xbf16>
    %173 = vector.shape_cast %172 : vector<1x16x256xbf16> to vector<16x256xbf16>
    %174 = vector.shape_cast %171 : vector<16x256xbf16> to vector<1x16x256xbf16>
    tpu.vector_store %arg15[%c1_97, %c0_98, %c256_99], %174 {strides = array<i32>} : memref<4x16x768xbf16, #tpu.memory_space<vmem>>, vector<1x16x256xbf16>,
    %175 = vector.extract_strided_slice %152 {offsets = [3, 0, 0], sizes = [1, 16, 256], strides = [1, 1, 1]} : vector<8x16x256xbf16> to vector<1x16x256xbf16>
    %176 = vector.shape_cast %175 : vector<1x16x256xbf16> to vector<16x256xbf16>
    %c1_100 = arith.constant 1 : index
    %c0_101 = arith.constant 0 : index
    %c512_102 = arith.constant 512 : index
    %177 = vector.load %arg15[%c1_100, %c0_101, %c512_102] : memref<4x16x768xbf16, #tpu.memory_space<vmem>>, vector<1x16x256xbf16>
    %178 = vector.shape_cast %177 : vector<1x16x256xbf16> to vector<16x256xbf16>
    %179 = vector.shape_cast %176 : vector<16x256xbf16> to vector<1x16x256xbf16>
    tpu.vector_store %arg15[%c1_100, %c0_101, %c512_102], %179 {strides = array<i32>} : memref<4x16x768xbf16, #tpu.memory_space<vmem>>, vector<1x16x256xbf16>,
    %c2_103 = arith.constant 2 : index
    %c0_104 = arith.constant 0 : index
    %c0_105 = arith.constant 0 : index
    %180 = vector.load %arg15[%c2_103, %c0_104, %c0_105] : memref<4x16x768xbf16, #tpu.memory_space<vmem>>, vector<1x16x256xbf16>
    %181 = vector.shape_cast %180 : vector<1x16x256xbf16> to vector<16x256xbf16>
    %182 = vector.shape_cast %176 : vector<16x256xbf16> to vector<1x16x256xbf16>
    tpu.vector_store %arg15[%c2_103, %c0_104, %c0_105], %182 {strides = array<i32>} : memref<4x16x768xbf16, #tpu.memory_space<vmem>>, vector<1x16x256xbf16>,
    %183 = vector.extract_strided_slice %152 {offsets = [4, 0, 0], sizes = [1, 16, 256], strides = [1, 1, 1]} : vector<8x16x256xbf16> to vector<1x16x256xbf16>
    %184 = vector.shape_cast %183 : vector<1x16x256xbf16> to vector<16x256xbf16>
    %c2_106 = arith.constant 2 : index
    %c0_107 = arith.constant 0 : index
    %c256_108 = arith.constant 256 : index
    %185 = vector.load %arg15[%c2_106, %c0_107, %c256_108] : memref<4x16x768xbf16, #tpu.memory_space<vmem>>, vector<1x16x256xbf16>
    %186 = vector.shape_cast %185 : vector<1x16x256xbf16> to vector<16x256xbf16>
    %187 = vector.shape_cast %184 : vector<16x256xbf16> to vector<1x16x256xbf16>
    tpu.vector_store %arg15[%c2_106, %c0_107, %c256_108], %187 {strides = array<i32>} : memref<4x16x768xbf16, #tpu.memory_space<vmem>>, vector<1x16x256xbf16>,
    %188 = vector.extract_strided_slice %152 {offsets = [5, 0, 0], sizes = [1, 16, 256], strides = [1, 1, 1]} : vector<8x16x256xbf16> to vector<1x16x256xbf16>
    %189 = vector.shape_cast %188 : vector<1x16x256xbf16> to vector<16x256xbf16>
    %c2_109 = arith.constant 2 : index
    %c0_110 = arith.constant 0 : index
    %c512_111 = arith.constant 512 : index
    %190 = vector.load %arg15[%c2_109, %c0_110, %c512_111] : memref<4x16x768xbf16, #tpu.memory_space<vmem>>, vector<1x16x256xbf16>
    %191 = vector.shape_cast %190 : vector<1x16x256xbf16> to vector<16x256xbf16>
    %192 = vector.shape_cast %189 : vector<16x256xbf16> to vector<1x16x256xbf16>
    tpu.vector_store %arg15[%c2_109, %c0_110, %c512_111], %192 {strides = array<i32>} : memref<4x16x768xbf16, #tpu.memory_space<vmem>>, vector<1x16x256xbf16>,
    %c3_112 = arith.constant 3 : index
    %c0_113 = arith.constant 0 : index
    %c0_114 = arith.constant 0 : index
    %193 = vector.load %arg15[%c3_112, %c0_113, %c0_114] : memref<4x16x768xbf16, #tpu.memory_space<vmem>>, vector<1x16x256xbf16>
    %194 = vector.shape_cast %193 : vector<1x16x256xbf16> to vector<16x256xbf16>
    %195 = vector.shape_cast %189 : vector<16x256xbf16> to vector<1x16x256xbf16>
    tpu.vector_store %arg15[%c3_112, %c0_113, %c0_114], %195 {strides = array<i32>} : memref<4x16x768xbf16, #tpu.memory_space<vmem>>, vector<1x16x256xbf16>,
    %196 = vector.extract_strided_slice %152 {offsets = [6, 0, 0], sizes = [1, 16, 256], strides = [1, 1, 1]} : vector<8x16x256xbf16> to vector<1x16x256xbf16>
    %197 = vector.shape_cast %196 : vector<1x16x256xbf16> to vector<16x256xbf16>
    %c3_115 = arith.constant 3 : index
    %c0_116 = arith.constant 0 : index
    %c256_117 = arith.constant 256 : index
    %198 = vector.load %arg15[%c3_115, %c0_116, %c256_117] : memref<4x16x768xbf16, #tpu.memory_space<vmem>>, vector<1x16x256xbf16>
    %199 = vector.shape_cast %198 : vector<1x16x256xbf16> to vector<16x256xbf16>
    %200 = vector.shape_cast %197 : vector<16x256xbf16> to vector<1x16x256xbf16>
    tpu.vector_store %arg15[%c3_115, %c0_116, %c256_117], %200 {strides = array<i32>} : memref<4x16x768xbf16, #tpu.memory_space<vmem>>, vector<1x16x256xbf16>,
    %201 = vector.extract_strided_slice %152 {offsets = [7, 0, 0], sizes = [1, 16, 256], strides = [1, 1, 1]} : vector<8x16x256xbf16> to vector<1x16x256xbf16>
    %202 = vector.shape_cast %201 : vector<1x16x256xbf16> to vector<16x256xbf16>
    %c3_118 = arith.constant 3 : index
    %c0_119 = arith.constant 0 : index
    %c512_120 = arith.constant 512 : index
    %203 = vector.load %arg15[%c3_118, %c0_119, %c512_120] : memref<4x16x768xbf16, #tpu.memory_space<vmem>>, vector<1x16x256xbf16>
    %204 = vector.shape_cast %203 : vector<1x16x256xbf16> to vector<16x256xbf16>
    %205 = vector.shape_cast %202 : vector<16x256xbf16> to vector<1x16x256xbf16>
    tpu.vector_store %arg15[%c3_118, %c0_119, %c512_120], %205 {strides = array<i32>} : memref<4x16x768xbf16, #tpu.memory_space<vmem>>, vector<1x16x256xbf16>,
    %c0_121 = arith.constant 0 : index
    %c0_122 = arith.constant 0 : index
    %c0_123 = arith.constant 0 : index
    %206 = vector.load %arg15[%c0_121, %c0_122, %c0_123] : memref<4x16x768xbf16, #tpu.memory_space<vmem>>, vector<4x16x768xbf16>
    %207 = vector.shape_cast %206 : vector<4x16x768xbf16> to vector<64x768xbf16>
    %c0_124 = arith.constant 0 : index
    %c0_125 = arith.constant 0 : index
    %208 = vector.load %arg4[%c0_124, %c0_125] : memref<768x256xbf16, #tpu.memory_space<vmem>>, vector<768x256xbf16>
    %cst_126 = arith.constant dense<0.000000e+00> : vector<64x256xf32>
    %209 = tpu.matmul %207, %208, %cst_126 {dimension_numbers = #tpu.dot_dimension_numbers<[1], [0], [0], [1], [0, 0, 1, 1], [], []>} : vector<64x768xbf16>, vector<768x256xbf16>, vector<64x256xf32> -> vector<64x256xf32>
    %c0_127 = arith.constant 0 : index
    %c0_128 = arith.constant 0 : index
    %c0_129 = arith.constant 0 : index
    %210 = vector.load %arg8[%c0_127, %c0_128, %c0_129] : memref<3x1x256xf32, #tpu.memory_space<vmem>>, vector<3x1x256xf32>
    %211 = vector.extract_strided_slice %210 {offsets = [0, 0, 0], sizes = [1, 1, 256], strides = [1, 1, 1]} : vector<3x1x256xf32> to vector<1x1x256xf32>
    %212 = vector.shape_cast %211 : vector<1x1x256xf32> to vector<1x256xf32>
    %213 = vector.broadcast %212 : vector<1x256xf32> to vector<64x256xf32>
    %214 = arith.addf %209, %213 : vector<64x256xf32>
    %cst_130 = arith.constant 0.000000e+00 : f32
    %215 = vector.broadcast %cst_130 : f32 to vector<64x256xf32>
    %216 = arith.cmpf oge, %214, %215 : vector<64x256xf32>
    %cst_131 = arith.constant 2.000000e-01 : f32
    %217 = vector.broadcast %cst_131 : f32 to vector<64x256xf32>
    %218 = arith.mulf %217, %214 : vector<64x256xf32>
    %219 = arith.select %216, %214, %218 : vector<64x256xi1>, vector<64x256xf32>
    %220 = vector.extract_strided_slice %210 {offsets = [1, 0, 0], sizes = [1, 1, 256], strides = [1, 1, 1]} : vector<3x1x256xf32> to vector<1x1x256xf32>
    %221 = vector.shape_cast %220 : vector<1x1x256xf32> to vector<1x256xf32>
    %222 = vector.broadcast %221 : vector<1x256xf32> to vector<64x256xf32>
    %223 = arith.mulf %219, %222 : vector<64x256xf32>
    %224 = vector.extract_strided_slice %210 {offsets = [2, 0, 0], sizes = [1, 1, 256], strides = [1, 1, 1]} : vector<3x1x256xf32> to vector<1x1x256xf32>
    %225 = vector.shape_cast %224 : vector<1x1x256xf32> to vector<1x256xf32>
    %226 = vector.broadcast %225 : vector<1x256xf32> to vector<64x256xf32>
    %227 = arith.addf %223, %226 : vector<64x256xf32>
    %228 = arith.truncf %227 : vector<64x256xf32> to vector<64x256xbf16>
    %229 = vector.shape_cast %228 : vector<64x256xbf16> to vector<4x16x256xbf16>
    %cst_132 = arith.constant 0.000000e+00 : bf16
    %230 = vector.broadcast %cst_132 : bf16 to vector<16x256xbf16>
    %c0_133 = arith.constant 0 : index
    %c0_134 = arith.constant 0 : index
    %c0_135 = arith.constant 0 : index
    %231 = vector.load %arg16[%c0_133, %c0_134, %c0_135] : memref<2x16x768xbf16, #tpu.memory_space<vmem>>, vector<1x16x256xbf16>
    %232 = vector.shape_cast %231 : vector<1x16x256xbf16> to vector<16x256xbf16>
    %233 = vector.shape_cast %230 : vector<16x256xbf16> to vector<1x16x256xbf16>
    tpu.vector_store %arg16[%c0_133, %c0_134, %c0_135], %233 {strides = array<i32>} : memref<2x16x768xbf16, #tpu.memory_space<vmem>>, vector<1x16x256xbf16>,
    %234 = vector.extract_strided_slice %229 {offsets = [0, 0, 0], sizes = [1, 16, 256], strides = [1, 1, 1]} : vector<4x16x256xbf16> to vector<1x16x256xbf16>
    %235 = vector.shape_cast %234 : vector<1x16x256xbf16> to vector<16x256xbf16>
    %c0_136 = arith.constant 0 : index
    %c0_137 = arith.constant 0 : index
    %c256_138 = arith.constant 256 : index
    %236 = vector.load %arg16[%c0_136, %c0_137, %c256_138] : memref<2x16x768xbf16, #tpu.memory_space<vmem>>, vector<1x16x256xbf16>
    %237 = vector.shape_cast %236 : vector<1x16x256xbf16> to vector<16x256xbf16>
    %238 = vector.shape_cast %235 : vector<16x256xbf16> to vector<1x16x256xbf16>
    tpu.vector_store %arg16[%c0_136, %c0_137, %c256_138], %238 {strides = array<i32>} : memref<2x16x768xbf16, #tpu.memory_space<vmem>>, vector<1x16x256xbf16>,
    %239 = vector.extract_strided_slice %229 {offsets = [1, 0, 0], sizes = [1, 16, 256], strides = [1, 1, 1]} : vector<4x16x256xbf16> to vector<1x16x256xbf16>
    %240 = vector.shape_cast %239 : vector<1x16x256xbf16> to vector<16x256xbf16>
    %c0_139 = arith.constant 0 : index
    %c0_140 = arith.constant 0 : index
    %c512_141 = arith.constant 512 : index
    %241 = vector.load %arg16[%c0_139, %c0_140, %c512_141] : memref<2x16x768xbf16, #tpu.memory_space<vmem>>, vector<1x16x256xbf16>
    %242 = vector.shape_cast %241 : vector<1x16x256xbf16> to vector<16x256xbf16>
    %243 = vector.shape_cast %240 : vector<16x256xbf16> to vector<1x16x256xbf16>
    tpu.vector_store %arg16[%c0_139, %c0_140, %c512_141], %243 {strides = array<i32>} : memref<2x16x768xbf16, #tpu.memory_space<vmem>>, vector<1x16x256xbf16>,
    %c1_142 = arith.constant 1 : index
    %c0_143 = arith.constant 0 : index
    %c0_144 = arith.constant 0 : index
    %244 = vector.load %arg16[%c1_142, %c0_143, %c0_144] : memref<2x16x768xbf16, #tpu.memory_space<vmem>>, vector<1x16x256xbf16>
    %245 = vector.shape_cast %244 : vector<1x16x256xbf16> to vector<16x256xbf16>
    %246 = vector.shape_cast %240 : vector<16x256xbf16> to vector<1x16x256xbf16>
    tpu.vector_store %arg16[%c1_142, %c0_143, %c0_144], %246 {strides = array<i32>} : memref<2x16x768xbf16, #tpu.memory_space<vmem>>, vector<1x16x256xbf16>,
    %247 = vector.extract_strided_slice %229 {offsets = [2, 0, 0], sizes = [1, 16, 256], strides = [1, 1, 1]} : vector<4x16x256xbf16> to vector<1x16x256xbf16>
    %248 = vector.shape_cast %247 : vector<1x16x256xbf16> to vector<16x256xbf16>
    %c1_145 = arith.constant 1 : index
    %c0_146 = arith.constant 0 : index
    %c256_147 = arith.constant 256 : index
    %249 = vector.load %arg16[%c1_145, %c0_146, %c256_147] : memref<2x16x768xbf16, #tpu.memory_space<vmem>>, vector<1x16x256xbf16>
    %250 = vector.shape_cast %249 : vector<1x16x256xbf16> to vector<16x256xbf16>
    %251 = vector.shape_cast %248 : vector<16x256xbf16> to vector<1x16x256xbf16>
    tpu.vector_store %arg16[%c1_145, %c0_146, %c256_147], %251 {strides = array<i32>} : memref<2x16x768xbf16, #tpu.memory_space<vmem>>, vector<1x16x256xbf16>,
    %252 = vector.extract_strided_slice %229 {offsets = [3, 0, 0], sizes = [1, 16, 256], strides = [1, 1, 1]} : vector<4x16x256xbf16> to vector<1x16x256xbf16>
    %253 = vector.shape_cast %252 : vector<1x16x256xbf16> to vector<16x256xbf16>
    %c1_148 = arith.constant 1 : index
    %c0_149 = arith.constant 0 : index
    %c512_150 = arith.constant 512 : index
    %254 = vector.load %arg16[%c1_148, %c0_149, %c512_150] : memref<2x16x768xbf16, #tpu.memory_space<vmem>>, vector<1x16x256xbf16>
    %255 = vector.shape_cast %254 : vector<1x16x256xbf16> to vector<16x256xbf16>
    %256 = vector.shape_cast %253 : vector<16x256xbf16> to vector<1x16x256xbf16>
    tpu.vector_store %arg16[%c1_148, %c0_149, %c512_150], %256 {strides = array<i32>} : memref<2x16x768xbf16, #tpu.memory_space<vmem>>, vector<1x16x256xbf16>,
    %c0_151 = arith.constant 0 : index
    %c0_152 = arith.constant 0 : index
    %c0_153 = arith.constant 0 : index
    %257 = vector.load %arg16[%c0_151, %c0_152, %c0_153] : memref<2x16x768xbf16, #tpu.memory_space<vmem>>, vector<2x16x768xbf16>
    %258 = vector.shape_cast %257 : vector<2x16x768xbf16> to vector<32x768xbf16>
    %c0_154 = arith.constant 0 : index
    %c0_155 = arith.constant 0 : index
    %259 = vector.load %arg5[%c0_154, %c0_155] : memref<768x256xbf16, #tpu.memory_space<vmem>>, vector<768x256xbf16>
    %cst_156 = arith.constant dense<0.000000e+00> : vector<32x256xf32>
    %260 = tpu.matmul %258, %259, %cst_156 {dimension_numbers = #tpu.dot_dimension_numbers<[1], [0], [0], [1], [0, 0, 1, 1], [], []>} : vector<32x768xbf16>, vector<768x256xbf16>, vector<32x256xf32> -> vector<32x256xf32>
    %c0_157 = arith.constant 0 : index
    %c0_158 = arith.constant 0 : index
    %c0_159 = arith.constant 0 : index
    %261 = vector.load %arg9[%c0_157, %c0_158, %c0_159] : memref<3x1x256xf32, #tpu.memory_space<vmem>>, vector<3x1x256xf32>
    %262 = vector.extract_strided_slice %261 {offsets = [0, 0, 0], sizes = [1, 1, 256], strides = [1, 1, 1]} : vector<3x1x256xf32> to vector<1x1x256xf32>
    %263 = vector.shape_cast %262 : vector<1x1x256xf32> to vector<1x256xf32>
    %264 = vector.broadcast %263 : vector<1x256xf32> to vector<32x256xf32>
    %265 = arith.addf %260, %264 : vector<32x256xf32>
    %cst_160 = arith.constant 0.000000e+00 : f32
    %266 = vector.broadcast %cst_160 : f32 to vector<32x256xf32>
    %267 = arith.cmpf oge, %265, %266 : vector<32x256xf32>
    %cst_161 = arith.constant 2.000000e-01 : f32
    %268 = vector.broadcast %cst_161 : f32 to vector<32x256xf32>
    %269 = arith.mulf %268, %265 : vector<32x256xf32>
    %270 = arith.select %267, %265, %269 : vector<32x256xi1>, vector<32x256xf32>
    %271 = vector.extract_strided_slice %261 {offsets = [1, 0, 0], sizes = [1, 1, 256], strides = [1, 1, 1]} : vector<3x1x256xf32> to vector<1x1x256xf32>
    %272 = vector.shape_cast %271 : vector<1x1x256xf32> to vector<1x256xf32>
    %273 = vector.broadcast %272 : vector<1x256xf32> to vector<32x256xf32>
    %274 = arith.mulf %270, %273 : vector<32x256xf32>
    %275 = vector.extract_strided_slice %261 {offsets = [2, 0, 0], sizes = [1, 1, 256], strides = [1, 1, 1]} : vector<3x1x256xf32> to vector<1x1x256xf32>
    %276 = vector.shape_cast %275 : vector<1x1x256xf32> to vector<1x256xf32>
    %277 = vector.broadcast %276 : vector<1x256xf32> to vector<32x256xf32>
    %278 = arith.addf %274, %277 : vector<32x256xf32>
    %279 = arith.truncf %278 : vector<32x256xf32> to vector<32x256xbf16>
    %280 = vector.shape_cast %279 : vector<32x256xbf16> to vector<2x16x256xbf16>
    %281 = vector.extract_strided_slice %280 {offsets = [0, 0, 0], sizes = [1, 16, 256], strides = [1, 1, 1]} : vector<2x16x256xbf16> to vector<1x16x256xbf16>
    %282 = vector.shape_cast %281 : vector<1x16x256xbf16> to vector<16x256xbf16>
    %283 = vector.extract_strided_slice %280 {offsets = [1, 0, 0], sizes = [1, 16, 256], strides = [1, 1, 1]} : vector<2x16x256xbf16> to vector<1x16x256xbf16>
    %284 = vector.shape_cast %283 : vector<1x16x256xbf16> to vector<16x256xbf16>
    %285 = tpu.concatenate %282, %284 in 1 : vector<16x256xbf16>, vector<16x256xbf16> -> vector<16x512xbf16>
    %c0_162 = arith.constant 0 : index
    %c0_163 = arith.constant 0 : index
    %286 = vector.load %arg10[%c0_162, %c0_163] : memref<512x128xbf16, #tpu.memory_space<vmem>>, vector<512x128xbf16>
    %cst_164 = arith.constant dense<0.000000e+00> : vector<16x128xf32>
    %287 = tpu.matmul %285, %286, %cst_164 {dimension_numbers = #tpu.dot_dimension_numbers<[1], [0], [0], [1], [0, 0, 1, 1], [], []>} : vector<16x512xbf16>, vector<512x128xbf16>, vector<16x128xf32> -> vector<16x128xf32>
    %c0_165 = arith.constant 0 : index
    %c0_166 = arith.constant 0 : index
    %288 = vector.load %arg11[%c0_165, %c0_166] : memref<1x128xf32, #tpu.memory_space<vmem>>, vector<1x128xf32>
    %289 = vector.broadcast %288 : vector<1x128xf32> to vector<16x128xf32>
    %290 = arith.addf %287, %289 : vector<16x128xf32>
    %291 = math.absf %290 : vector<16x128xf32>
    %cst_167 = arith.constant 0.000000e+00 : f32
    %292 = vector.broadcast %cst_167 : f32 to vector<16x128xf32>
    %293 = arith.subf %292, %291 : vector<16x128xf32>
    %294 = math.exp %293 : vector<16x128xf32>
    %cst_168 = arith.constant 0.000000e+00 : f32
    %295 = vector.broadcast %cst_168 : f32 to vector<16x128xf32>
    %296 = arith.cmpf oge, %290, %295 : vector<16x128xf32>
    %cst_169 = arith.constant 1.000000e+00 : f32
    %297 = vector.broadcast %cst_169 : f32 to vector<16x128xf32>
    %298 = arith.addf %297, %294 : vector<16x128xf32>
    %cst_170 = arith.constant 1.000000e+00 : f32
    %299 = vector.broadcast %cst_170 : f32 to vector<16x128xf32>
    %300 = arith.divf %299, %298 : vector<16x128xf32>
    %cst_171 = arith.constant 1.000000e+00 : f32
    %301 = vector.broadcast %cst_171 : f32 to vector<16x128xf32>
    %302 = arith.addf %301, %294 : vector<16x128xf32>
    %303 = arith.divf %294, %302 : vector<16x128xf32>
    %304 = arith.select %296, %300, %303 : vector<16x128xi1>, vector<16x128xf32>
    %c0_172 = arith.constant 0 : index
    %c0_173 = arith.constant 0 : index
    %305 = vector.load %arg12[%c0_172, %c0_173] : memref<16x128xf32, #tpu.memory_space<vmem>>, vector<16x128xf32>
    tpu.vector_store %arg12[%c0_172, %c0_173], %304 {strides = array<i32>} : memref<16x128xf32, #tpu.memory_space<vmem>>, vector<16x128xf32>,
    %306 = tpu.iota {dimensions = array<i32: 1>} : vector<16x128xi32>
    %c1_i32 = arith.constant 1 : i32
    %307 = vector.broadcast %c1_i32 : i32 to vector<16x128xi32>
    %308 = arith.cmpi sge, %306, %307 : vector<16x128xi32>
    %c11_i32 = arith.constant 11 : i32
    %309 = vector.broadcast %c11_i32 : i32 to vector<16x128xi32>
    %310 = arith.cmpi slt, %306, %309 : vector<16x128xi32>
    %311 = arith.andi %308, %310 : vector<16x128xi1>
    %cst_174 = arith.constant -1.000000e+30 : f32
    %312 = vector.broadcast %cst_174 : f32 to vector<16x128xf32>
    %313 = arith.select %311, %290, %312 : vector<16x128xi1>, vector<16x128xf32>
    %cst_175 = arith.constant dense<0xFF800000> : vector<16xf32>
    %314 = vector.multi_reduction <maximumf>, %313, %cst_175 [1] : vector<16x128xf32> to vector<16xf32>
    %315 = vector.shape_cast %314 : vector<16xf32> to vector<16x1xf32>
    %316 = vector.broadcast %315 : vector<16x1xf32> to vector<16x128xf32>
    %317 = arith.subf %313, %316 : vector<16x128xf32>
    %318 = math.exp %317 : vector<16x128xf32>
    %cst_176 = arith.constant dense<0.000000e+00> : vector<16xf32>
    %319 = vector.multi_reduction <add>, %318, %cst_176 [1] : vector<16x128xf32> to vector<16xf32>
    %320 = vector.shape_cast %319 : vector<16xf32> to vector<16x1xf32>
    %321 = vector.broadcast %320 : vector<16x1xf32> to vector<16x128xf32>
    %322 = arith.divf %318, %321 : vector<16x128xf32>
    %c0_177 = arith.constant 0 : index
    %c0_178 = arith.constant 0 : index
    %323 = vector.load %arg13[%c0_177, %c0_178] : memref<16x128xf32, #tpu.memory_space<vmem>>, vector<16x128xf32>
    tpu.vector_store %arg13[%c0_177, %c0_178], %322 {strides = array<i32>} : memref<16x128xf32, #tpu.memory_space<vmem>>, vector<16x128xf32>,
    return
  }
  func.func @transform_0(%arg0: i32) -> (i32, i32, i32) {
    %c0_i32 = arith.constant 0 : i32
    %c0_i32_0 = arith.constant 0 : i32
    %c0_i32_1 = arith.constant 0 : i32
    return %c0_i32, %arg0, %c0_i32_0 : i32, i32, i32
  }
  func.func @transform_1(%arg0: i32) -> (i32, i32) {
    %c0_i32 = arith.constant 0 : i32
    %c0_i32_0 = arith.constant 0 : i32
    %c0_i32_1 = arith.constant 0 : i32
    return %c0_i32, %c0_i32_0 : i32, i32
  }
  func.func @transform_2(%arg0: i32) -> (i32, i32) {
    %c0_i32 = arith.constant 0 : i32
    %c0_i32_0 = arith.constant 0 : i32
    %c0_i32_1 = arith.constant 0 : i32
    return %c0_i32, %c0_i32_0 : i32, i32
  }
  func.func @transform_3(%arg0: i32) -> (i32, i32) {
    %c0_i32 = arith.constant 0 : i32
    %c0_i32_0 = arith.constant 0 : i32
    %c0_i32_1 = arith.constant 0 : i32
    return %c0_i32, %c0_i32_0 : i32, i32
  }
  func.func @transform_4(%arg0: i32) -> (i32, i32) {
    %c0_i32 = arith.constant 0 : i32
    %c0_i32_0 = arith.constant 0 : i32
    %c0_i32_1 = arith.constant 0 : i32
    return %c0_i32, %c0_i32_0 : i32, i32
  }
  func.func @transform_5(%arg0: i32) -> (i32, i32, i32) {
    %c0_i32 = arith.constant 0 : i32
    %c0_i32_0 = arith.constant 0 : i32
    %c0_i32_1 = arith.constant 0 : i32
    %c0_i32_2 = arith.constant 0 : i32
    return %c0_i32, %c0_i32_0, %c0_i32_1 : i32, i32, i32
  }
  func.func @transform_6(%arg0: i32) -> (i32, i32, i32) {
    %c0_i32 = arith.constant 0 : i32
    %c0_i32_0 = arith.constant 0 : i32
    %c0_i32_1 = arith.constant 0 : i32
    %c0_i32_2 = arith.constant 0 : i32
    return %c0_i32, %c0_i32_0, %c0_i32_1 : i32, i32, i32
  }
  func.func @transform_7(%arg0: i32) -> (i32, i32, i32) {
    %c0_i32 = arith.constant 0 : i32
    %c0_i32_0 = arith.constant 0 : i32
    %c0_i32_1 = arith.constant 0 : i32
    %c0_i32_2 = arith.constant 0 : i32
    return %c0_i32, %c0_i32_0, %c0_i32_1 : i32, i32, i32
  }
  func.func @transform_8(%arg0: i32) -> (i32, i32, i32) {
    %c0_i32 = arith.constant 0 : i32
    %c0_i32_0 = arith.constant 0 : i32
    %c0_i32_1 = arith.constant 0 : i32
    %c0_i32_2 = arith.constant 0 : i32
    return %c0_i32, %c0_i32_0, %c0_i32_1 : i32, i32, i32
  }
  func.func @transform_9(%arg0: i32) -> (i32, i32) {
    %c0_i32 = arith.constant 0 : i32
    %c0_i32_0 = arith.constant 0 : i32
    %c0_i32_1 = arith.constant 0 : i32
    return %c0_i32, %c0_i32_0 : i32, i32
  }
  func.func @transform_10(%arg0: i32) -> (i32, i32) {
    %c0_i32 = arith.constant 0 : i32
    %c0_i32_0 = arith.constant 0 : i32
    %c0_i32_1 = arith.constant 0 : i32
    return %c0_i32, %c0_i32_0 : i32, i32
  }
  func.func @transform_11(%arg0: i32) -> (i32, i32) {
    %c0_i32 = arith.constant 0 : i32
    %c0_i32_0 = arith.constant 0 : i32
    return %arg0, %c0_i32 : i32, i32
  }
  func.func @transform_12(%arg0: i32) -> (i32, i32) {
    %c0_i32 = arith.constant 0 : i32
    %c0_i32_0 = arith.constant 0 : i32
    return %arg0, %c0_i32 : i32, i32
  }
}

</mosaic_0001>

<bundles_post_ra>
// kernel: discriminator_forward.1
= control target key start
LH: loop header
LB: loop body
LE: loop exit
PB: predicated region body
PF: predicated region fallthrough
CT: control target
= control target key end

     0   :  { %18 = vsyncpa [#allocation6], 0  ;;  %s6228_s21 = smov [#allocation5]   ;;  %s8075_s0 = inlined_call_operand.vmem [shape: bf16[16,16,288], index: 0, kind: input, shape index: {}]   ;;  %s8076_s1 = inlined_call_operand.vmem [shape: bf16[288,256], index: 1, kind: input, shape index: {}]   ;;  %s8077_s2 = inlined_call_operand.vmem [shape: bf16[768,256], index: 2, kind: input, shape index: {}]   ;;  %s8078_s3 = inlined_call_operand.vmem [shape: bf16[768,256], index: 3, kind: input, shape index: {}]   ;;  %s8079_s4 = inlined_call_operand.hbm [shape: bf16[768,256], index: 4, kind: input, shape index: {}]   ;;  %s8080_s5 = inlined_call_operand.vmem [shape: f32[3,1,256], index: 5, kind: input, shape index: {}]   ;;  %s8081_s6 = inlined_call_operand.vmem [shape: f32[3,1,256], index: 6, kind: input, shape index: {}]   ;;  %s8082_s7 = inlined_call_operand.vmem [shape: f32[3,1,256], index: 7, kind: input, shape index: {}]   ;;  %s8083_s8 = inlined_call_operand.vmem [shape: f32[3,1,256], index: 8, kind: input, shape index: {}]   ;;  %s8084_s9 = inlined_call_operand.vmem [shape: bf16[512,128], index: 9, kind: input, shape index: {}]   ;;  %s8085_s10 = inlined_call_operand.vmem [shape: f32[1,128], index: 10, kind: input, shape index: {}]   ;;  %s8086_s11 = inlined_call_operand.vmem [shape: f32[16,128], index: 11, kind: output, shape index: {0}]   ;;  %s8087_s12 = inlined_call_operand.vmem [shape: f32[16,128], index: 12, kind: output, shape index: {1}]  }
   0x1   :  { %s32_s22 = sshll.u32 %s6228_s21, 4  ;;  %s6204_s25 = scalar_lea.hbm %s8079_s4, 12288  ;;  %s33_s22 = int_to_ptr.vmem [resolvable:$true] %s32_s22 }
   0x2   :  { %p6205_p0 = scmp.ne.s32.totalorder %s8079_s4, %s6204_s25  ;;  %p6208_p1 = scmp.lt.u32.totalorder %s6204_s25, %s8079_s4 }
   0x4   :  { %p6210_p2 = pnand %p6208_p1, %p6205_p0 }
   0x6   :  { %6213 = shalt.err (!%p6210_p2)
}
   0x7   :  { %s6214_s30 = scalar_lea.vmem %s33_s22, 12288  ;;  %p6219_p4 = scmp.lt.s32.totalorder %s33_s22, %s33_s22 }
   0x8   :  { %p6215_p3 = scmp.ne.s32.totalorder %s33_s22, %s6214_s30  ;;  %p6220_p5 = scmp.lt.s32.totalorder %s6214_s30, %s6214_s30 }
   0xa   :  { %p6221_p6 = por %p6220_p5, %p6219_p4 }
   0xc   :  { %p6222_p7 = pnand %p6221_p6, %p6215_p3 }
   0xe   :  { %6225 = shalt.err (!%p6222_p7)
}
   0xf   :  { %s6229_s13 = smov 128   ;;  %s6230_s14 = smov 8  }
  0x10   :  { %38 = dma.hbm_to_vmem [thread:$0]  %s8079_s4, 12288, %s33_s22, [#allocation6], %s6229_s13, %s6229_s13, %s6230_s14  }
  0x11   :  { %6226 = dma.done.wait [#allocation6], 12288  }
  0x12   :  { %6227 = vsyncadd [#allocation6], 4294955008  ;;  %v5606_v0 = vld [vmem:[%s8076_s1 + $0x4] ss:$8 sps:$4 sm:$0xff]   ;;  %v5608_v1 = vld [vmem:[%s8076_s1] ss:$8 sps:$4 sm:$0xff]  }
  0x13   :  { %638 = vmatprep.subr.bf16.mxu0 %v5606_v0  ;;  %v5609_v2 = vld [vmem:[%s8076_s1 + $0x14] ss:$8 sps:$4 sm:$0xff]   ;;  %v5611_v3 = vld [vmem:[%s8076_s1 + $0x10] ss:$8 sps:$4 sm:$0xff]   ;;  %v5612_v4 = vld [vmem:[%s8076_s1 + $0x24] ss:$8 sps:$4 sm:$0xff]  }
  0x14   :  { %639 = vmatpush1.bf16.msra.mxu0 %v5608_v1  ;;  %v5614_v5 = vld [vmem:[%s8076_s1 + $0x20] ss:$8 sps:$4 sm:$0xff]   ;;  %v5615_v6 = vld [vmem:[%s8076_s1 + $0x34] ss:$8 sps:$4 sm:$0xff]   ;;  %v5617_v7 = vld [vmem:[%s8076_s1 + $0x30] ss:$8 sps:$4 sm:$0xff]  }
  0x15   :  { %640 = vmatprep.subr.bf16.mxu0 %v5609_v2  ;;  %v5618_v8 = vld [vmem:[%s8076_s1 + $0x44] ss:$8 sps:$4 sm:$0xff]   ;;  %v5620_v9 = vld [vmem:[%s8076_s1 + $0x40] ss:$8 sps:$4 sm:$0xff]   ;;  %v5621_v10 = vld [vmem:[%s8076_s1 + $0x54] ss:$8 sps:$4 sm:$0xff]  }
  0x16   :  { %v5623_v11 = vld [vmem:[%s8076_s1 + $0x50] ss:$8 sps:$4 sm:$0xff]   ;;  %v5624_v12 = vld [vmem:[%s8076_s1 + $0x64] ss:$8 sps:$4 sm:$0xff]   ;;  %v5626_v14 = vld [vmem:[%s8076_s1 + $0x60] ss:$8 sps:$4 sm:$0xff]  }
  0x17   :  { %v5656_v13 = vld [vmem:[%s8075_s0 + $0x4] ss:$12 sps:$4 sm:$0xff]   ;;  %v5627_v15 = vld [vmem:[%s8076_s1 + $0x74] ss:$8 sps:$4 sm:$0xff]   ;;  %v5632_v18 = vld [vmem:[%s8076_s1 + $0x80] ss:$8 sps:$4 sm:$0xff]  }
  0x18   :  { %641 = vmatpush1.bf16.msra.mxu0 %v5611_v3  ;;  %670 = vmatprep.mubr.bf16.mxu0 %v5656_v13  ;;  %v5629_v16 = vld [vmem:[%s8076_s1 + $0x70] ss:$8 sps:$4 sm:$0xff]   ;;  %v5630_v17 = vld [vmem:[%s8076_s1 + $0x84] ss:$8 sps:$4 sm:$0xff]   ;;  %v5633_v19 = vld [vmem:[%s8076_s1 + $0x94] ss:$8 sps:$4 sm:$0xff]  }
  0x19   :  { %642 = vmatprep.subr.bf16.mxu0 %v5612_v4  ;;  %v5635_v20 = vld [vmem:[%s8076_s1 + $0x90] ss:$8 sps:$4 sm:$0xff]   ;;  %v5636_v21 = vld [vmem:[%s8076_s1 + $0xa4] ss:$8 sps:$4 sm:$0xff]   ;;  %v5638_v22 = vld [vmem:[%s8076_s1 + $0xa0] ss:$8 sps:$4 sm:$0xff]  }
  0x1a   :  { %v5639_v23 = vld [vmem:[%s8076_s1 + $0xb4] ss:$8 sps:$4 sm:$0xff]   ;;  %v5641_v24 = vld [vmem:[%s8076_s1 + $0xb0] ss:$8 sps:$4 sm:$0xff]   ;;  %v5642_v25 = vld [vmem:[%s8076_s1 + $0xc4] ss:$8 sps:$4 sm:$0xff]  }
  0x1b   :  { %v5644_v26 = vld [vmem:[%s8076_s1 + $0xc0] ss:$8 sps:$4 sm:$0xff]   ;;  %v5645_v27 = vld [vmem:[%s8076_s1 + $0xd4] ss:$8 sps:$4 sm:$0xff]   ;;  %v5647_v28 = vld [vmem:[%s8076_s1 + $0xd0] ss:$8 sps:$4 sm:$0xff]  }
  0x1c   :  { %643 = vmatpush1.bf16.msra.mxu0 %v5614_v5  ;;  %v5648_v29 = vld [vmem:[%s8076_s1 + $0xe4] ss:$8 sps:$4 sm:$0xff]   ;;  %v5650_v30 = vld [vmem:[%s8076_s1 + $0xe0] ss:$8 sps:$4 sm:$0xff]   ;;  %v5651_v31 = vld [vmem:[%s8076_s1 + $0xf4] ss:$8 sps:$4 sm:$0xff]  }
  0x1d   :  { %644 = vmatprep.subr.bf16.mxu0 %v5615_v6  ;;  %v5653_v32 = vld [vmem:[%s8076_s1 + $0xf0] ss:$8 sps:$4 sm:$0xff]   ;;  %v5659_v33 = vld [vmem:[%s8076_s1 + $0x104] ss:$8 sps:$4 sm:$0xff]   ;;  %v8089_v34 = vmov 0   ;;  %vm589_vm0 = vcmask 261120  }
  0x1e   :  { %2123 = vmatprep.mubr.bf16.mxu1 %v8089_v34  ;;  %v5654_v35 = vld [vmem:[%s8075_s0] ss:$12 sps:$4 sm:$0xff]   ;;  %v5660_v37 = vld [vmem:[%s8075_s0 + $0x1c] ss:$12 sps:$4 sm:$0xff]   ;;  %v5684_v39 = vld [vmem:[%s8076_s1 + $0x110] ss:$8 sps:$4 sm:$0xff]  }
  0x1f   :  { %v5657_v36 = vld [vmem:[%s8076_s1 + $0x100] ss:$8 sps:$4 sm:$0xff]   ;;  %v5686_v38 = vld [vmem:[%s8076_s1 + $0x114] ss:$8 sps:$4 sm:$0xff]   ;;  %v5662_v40 = vld [vmem:[%s8075_s0 + $0x18] ss:$12 sps:$4 sm:$0xff]  }
  0x20   :  { %645 = vmatpush1.bf16.msra.mxu0 %v5617_v7  ;;  %v5663_v41 = vld [vmem:[%s8075_s0 + $0x34] ss:$12 sps:$4 sm:$0xff]   ;;  %v5665_v42 = vld [vmem:[%s8075_s0 + $0x30] ss:$12 sps:$4 sm:$0xff]   ;;  %v5666_v43 = vld [vmem:[%s8075_s0 + $0x4c] ss:$12 sps:$4 sm:$0xff]  }
  0x21   :  { %646 = vmatprep.subr.bf16.mxu0 %v5618_v8  ;;  %v5668_v44 = vld [vmem:[%s8075_s0 + $0x48] ss:$12 sps:$4 sm:$0xff]   ;;  %v5669_v45 = vld [vmem:[%s8075_s0 + $0x64] ss:$12 sps:$4 sm:$0xff]   ;;  %v5671_v46 = vld [vmem:[%s8075_s0 + $0x60] ss:$12 sps:$4 sm:$0xff]  }
  0x22   :  { %v5672_v47 = vld [vmem:[%s8075_s0 + $0x7c] ss:$12 sps:$4 sm:$0xff]   ;;  %v5674_v48 = vld [vmem:[%s8075_s0 + $0x78] ss:$12 sps:$4 sm:$0xff]   ;;  %v5675_v49 = vld [vmem:[%s8075_s0 + $0x94] ss:$12 sps:$4 sm:$0xff]  }
  0x23   :  { %v5677_v50 = vld [vmem:[%s8075_s0 + $0x90] ss:$12 sps:$4 sm:$0xff]   ;;  %v5678_v51 = vld [vmem:[%s8075_s0 + $0xac] ss:$12 sps:$4 sm:$0xff]   ;;  %v5680_v52 = vld [vmem:[%s8075_s0 + $0xa8] ss:$12 sps:$4 sm:$0xff]  }
  0x24   :  { %647 = vmatpush1.bf16.msra.mxu0 %v5620_v9  ;;  %v5681_v53 = vld [vmem:[%s8075_s0 + $0xc4] ss:$12 sps:$4 sm:$0xff]   ;;  %v5683_v54 = vld [vmem:[%s8075_s0 + $0xc0] ss:$12 sps:$4 sm:$0xff]   ;;  %v5687_v55 = vld [vmem:[%s8075_s0 + $0xdc] ss:$12 sps:$4 sm:$0xff]  }
  0x25   :  { %648 = vmatprep.subr.bf16.mxu0 %v5621_v10  ;;  %v5689_v56 = vld [vmem:[%s8075_s0 + $0xd8] ss:$12 sps:$4 sm:$0xff]   ;;  %v5690_v57 = vld [vmem:[%s8075_s0 + $0xf4] ss:$12 sps:$4 sm:$0xff]   ;;  %v5692_v58 = vld [vmem:[%s8075_s0 + $0xf0] ss:$12 sps:$4 sm:$0xff]  }
  0x26   :  { %v5693_v59 = vld [vmem:[%s8075_s0 + $0x10c] ss:$12 sps:$4 sm:$0xff]   ;;  %v5695_v60 = vld [vmem:[%s8075_s0 + $0x108] ss:$12 sps:$4 sm:$0xff]   ;;  %v5696_v61 = vld [vmem:[%s8075_s0 + $0x124] ss:$12 sps:$4 sm:$0xff]  }
  0x27   :  { %v5698_v62 = vld [vmem:[%s8075_s0 + $0x120] ss:$12 sps:$4 sm:$0xff]   ;;  %v5699_v63 = vld [vmem:[%s8075_s0 + $0x13c] ss:$12 sps:$4 sm:$0xff]   ;;  %v5701_v0 = vld [vmem:[%s8075_s0 + $0x138] ss:$12 sps:$4 sm:$0xff]  }
  0x28   :  { %649 = vmatpush1.bf16.msra.mxu0 %v5623_v11  ;;  %v5702_v1 = vld [vmem:[%s8075_s0 + $0x154] ss:$12 sps:$4 sm:$0xff]   ;;  %v5704_v2 = vld [vmem:[%s8075_s0 + $0x150] ss:$12 sps:$4 sm:$0xff]   ;;  %v5705_v3 = vld [vmem:[%s8075_s0 + $0x16c] ss:$12 sps:$4 sm:$0xff]  }
  0x29   :  { %650 = vmatprep.subr.bf16.mxu0 %v5624_v12  ;;  %v5707_v4 = vld [vmem:[%s8075_s0 + $0x168] ss:$12 sps:$4 sm:$0xff]   ;;  %v5724_v5 = vld [vmem:[%s8077_s2 + $0x4] ss:$8 sps:$4 sm:$0xff]   ;;  %v5729_v8 = vld [vmem:[%s8077_s2 + $0x10] ss:$8 sps:$4 sm:$0xff]  }
  0x2a   :  { %v5726_v6 = vld [vmem:[%s8077_s2] ss:$8 sps:$4 sm:$0xff]   ;;  %v5727_v7 = vld [vmem:[%s8077_s2 + $0x14] ss:$8 sps:$4 sm:$0xff]   ;;  %2091 = vmatprep.subr.bf16.mxu1 %v5724_v5  ;;  %v5730_v10 = vld [vmem:[%s8077_s2 + $0x24] ss:$8 sps:$4 sm:$0xff]  }
  0x2b   :  { %2092 = vmatpush1.bf16.msra.mxu1 %v5726_v6  ;;  %v5708_v9 = vld [vmem:[%s8075_s0 + $0x8] ss:$12 sps:$4 sm:$0xff]   ;;  %v5735_v13 = vld [vmem:[%s8077_s2 + $0x30] ss:$8 sps:$4 sm:$0xff]   ;;  %v5798_v6 = vld [vmem:[%s8077_s2 + $0x184] ss:$8 sps:$4 sm:$0xff]  }
  0x2c   :  { %651 = vmatpush1.bf16.msra.mxu0 %v5626_v14  ;;  %2093 = vmatprep.subr.bf16.mxu1 %v5727_v7  ;;  %v5732_v11 = vld [vmem:[%s8077_s2 + $0x20] ss:$8 sps:$4 sm:$0xff]   ;;  %v5733_v12 = vld [vmem:[%s8077_s2 + $0x34] ss:$8 sps:$4 sm:$0xff]   ;;  %v5793_v5 = vld [vmem:[%s8077_s2 + $0x170] ss:$8 sps:$4 sm:$0xff]  }
  0x2d   :  { %652 = vmatprep.subr.bf16.mxu0 %v5627_v15  ;;  %v5709_v14 = vld [vmem:[%s8075_s0 + $0x20] ss:$12 sps:$4 sm:$0xff]  }
  0x2e   :  { %v5736_v15 = vld [vmem:[%s8077_s2 + $0x44] ss:$8 sps:$4 sm:$0xff]   ;;  %v5796_v7 = vld [vmem:[%s8077_s2 + $0x180] ss:$8 sps:$4 sm:$0xff]  }
  0x2f   :  { %2094 = vmatpush1.bf16.msra.mxu1 %v5729_v8  ;;  %v5801_v8 = vld [vmem:[%s8077_s2 + $0x194] ss:$8 sps:$4 sm:$0xff]  }
  0x30   :  { %653 = vmatpush1.bf16.msra.mxu0 %v5629_v16  ;;  %2095 = vmatprep.subr.bf16.mxu1 %v5730_v10  ;;  %v5738_v16 = vld [vmem:[%s8077_s2 + $0x40] ss:$8 sps:$4 sm:$0xff]   ;;  %v5804_v10 = vld [vmem:[%s8077_s2 + $0x1a4] ss:$8 sps:$4 sm:$0xff]  }
  0x31   :  { %654 = vmatprep.subr.bf16.mxu0 %v5630_v17  ;;  %v5739_v17 = vld [vmem:[%s8077_s2 + $0x54] ss:$8 sps:$4 sm:$0xff]  }
  0x33   :  { %2096 = vmatpush1.bf16.msra.mxu1 %v5732_v11  ;;  %v5802_v11 = vld [vmem:[%s8077_s2 + $0x1a0] ss:$8 sps:$4 sm:$0xff]  }
  0x34   :  { %655 = vmatpush1.bf16.msra.mxu0 %v5632_v18  ;;  %2097 = vmatprep.subr.bf16.mxu1 %v5733_v12  ;;  %v5741_v18 = vld [vmem:[%s8077_s2 + $0x50] ss:$8 sps:$4 sm:$0xff]   ;;  %v5807_v12 = vld [vmem:[%s8077_s2 + $0x1b4] ss:$8 sps:$4 sm:$0xff]  }
  0x35   :  { %656 = vmatprep.subr.bf16.mxu0 %v5633_v19  ;;  %v5710_v19 = vld [vmem:[%s8075_s0 + $0x38] ss:$12 sps:$4 sm:$0xff]  }
  0x37   :  { %2098 = vmatpush1.bf16.msra.mxu1 %v5735_v13  ;;  %v5805_v13 = vld [vmem:[%s8077_s2 + $0x1b0] ss:$8 sps:$4 sm:$0xff]  }
  0x38   :  { %657 = vmatpush1.bf16.msra.mxu0 %v5635_v20  ;;  %2099 = vmatprep.subr.bf16.mxu1 %v5736_v15  ;;  %v5742_v20 = vld [vmem:[%s8077_s2 + $0x64] ss:$8 sps:$4 sm:$0xff]   ;;  %v5808_v15 = vld [vmem:[%s8077_s2 + $0x1c0] ss:$8 sps:$4 sm:$0xff]  }
  0x39   :  { %658 = vmatprep.subr.bf16.mxu0 %v5636_v21  ;;  %v5744_v21 = vld [vmem:[%s8077_s2 + $0x60] ss:$8 sps:$4 sm:$0xff]  }
  0x3b   :  { %2100 = vmatpush1.bf16.msra.mxu1 %v5738_v16  ;;  %v8088_v16 = vlaneseq }
  0x3c   :  { %659 = vmatpush1.bf16.msra.mxu0 %v5638_v22  ;;  %2101 = vmatprep.subr.bf16.mxu1 %v5739_v17  ;;  %v5745_v22 = vld [vmem:[%s8077_s2 + $0x74] ss:$8 sps:$4 sm:$0xff]  }
  0x3d   :  { %660 = vmatprep.subr.bf16.mxu0 %v5639_v23  ;;  %v5747_v23 = vld [vmem:[%s8077_s2 + $0x70] ss:$8 sps:$4 sm:$0xff]   ;;  %v5813_v17 = vld [vmem:[%s8077_s2 + $0x1d4] ss:$8 sps:$4 sm:$0xff]  }
  0x3f   :  { %2102 = vmatpush1.bf16.msra.mxu1 %v5741_v18  ;;  %v5811_v18 = vld [vmem:[%s8077_s2 + $0x1d0] ss:$8 sps:$4 sm:$0xff]  }
  0x40   :  { %661 = vmatpush1.bf16.msra.mxu0 %v5641_v24  ;;  %2103 = vmatprep.subr.bf16.mxu1 %v5742_v20  ;;  %v5711_v24 = vld [vmem:[%s8075_s0 + $0x50] ss:$12 sps:$4 sm:$0xff]   ;;  %v5816_v20 = vld [vmem:[%s8077_s2 + $0x1e4] ss:$8 sps:$4 sm:$0xff]  }
  0x41   :  { %662 = vmatprep.subr.bf16.mxu0 %v5642_v25  ;;  %v5748_v25 = vld [vmem:[%s8077_s2 + $0x84] ss:$8 sps:$4 sm:$0xff]  }
  0x43   :  { %2104 = vmatpush1.bf16.msra.mxu1 %v5744_v21  ;;  %v5814_v21 = vld [vmem:[%s8077_s2 + $0x1e0] ss:$8 sps:$4 sm:$0xff]  }
  0x44   :  { %663 = vmatpush1.bf16.msra.mxu0 %v5644_v26  ;;  %2105 = vmatprep.subr.bf16.mxu1 %v5745_v22  ;;  %v5750_v26 = vld [vmem:[%s8077_s2 + $0x80] ss:$8 sps:$4 sm:$0xff]  }
  0x45   :  { %664 = vmatprep.subr.bf16.mxu0 %v5645_v27  ;;  %v5751_v27 = vld [vmem:[%s8077_s2 + $0x94] ss:$8 sps:$4 sm:$0xff]  }
  0x47   :  { %2106 = vmatpush1.bf16.msra.mxu1 %v5747_v23  ;;  %v155_v23 = vld [vmem:[%s8080_s5] sm:$0x3] }
  0x48   :  { %665 = vmatpush1.bf16.msra.mxu0 %v5647_v28  ;;  %2107 = vmatprep.subr.bf16.mxu1 %v5748_v25  ;;  %v5753_v28 = vld [vmem:[%s8077_s2 + $0x90] ss:$8 sps:$4 sm:$0xff]   ;;  %v5819_v25 = vld [vmem:[%s8077_s2 + $0x1f4] ss:$8 sps:$4 sm:$0xff]  }
  0x49   :  { %666 = vmatprep.subr.bf16.mxu0 %v5648_v29  ;;  %v5712_v29 = vld [vmem:[%s8075_s0 + $0x68] ss:$12 sps:$4 sm:$0xff]  }
  0x4b   :  { %2108 = vmatpush1.bf16.msra.mxu1 %v5750_v26  ;;  %v5817_v26 = vld [vmem:[%s8077_s2 + $0x1f0] ss:$8 sps:$4 sm:$0xff]  }
  0x4c   :  { %667 = vmatpush1.bf16.msra.mxu0 %v5650_v30  ;;  %2109 = vmatprep.subr.bf16.mxu1 %v5751_v27  ;;  %v5754_v30 = vld [vmem:[%s8077_s2 + $0xa4] ss:$8 sps:$4 sm:$0xff]  }
  0x4d   :  { %668 = vmatprep.subr.bf16.mxu0 %v5651_v31  ;;  %v5756_v31 = vld [vmem:[%s8077_s2 + $0xa0] ss:$8 sps:$4 sm:$0xff]  }
  0x4f   :  { %2110 = vmatpush1.bf16.msra.mxu1 %v5753_v28 }
  0x50   :  { %669 = vmatpush1.bf16.msra.mxu0 %v5653_v32  ;;  %2111 = vmatprep.subr.bf16.mxu1 %v5754_v30  ;;  %v5757_v32 = vld [vmem:[%s8077_s2 + $0xb4] ss:$8 sps:$4 sm:$0xff]   ;;  %v156_v30 = vld [vmem:[%s8080_s5 + $0x2] sm:$0x3] }
  0x51   :  { %831 = vmatprep.subr.bf16.mxu0 %v5659_v33  ;;  %v5759_v33 = vld [vmem:[%s8077_s2 + $0xb0] ss:$8 sps:$4 sm:$0xff]  }
  0x53   :  { %671 = vmatmul.mubr.bf16.vlgmr.msra.gmra.mrb[0].mxu0 %v5654_v35  ;;  %2112 = vmatpush1.bf16.msra.mxu1 %v5756_v31  ;;  %v5713_v35 = vld [vmem:[%s8075_s0 + $0x80] ss:$12 sps:$4 sm:$0xff]  }
  0x54   :  { %832 = vmatpush1.bf16.msra.mxu0 %v5657_v36  ;;  %680 = vmatprep.mubr.bf16.mxu0 %v5660_v37  ;;  %v5714_v36 = vld [vmem:[%s8075_s0 + $0x98] ss:$12 sps:$4 sm:$0xff]   ;;  %v5715_v37 = vld [vmem:[%s8075_s0 + $0xb0] ss:$12 sps:$4 sm:$0xff]  }
  0x55   :  { %833 = vmatprep.subr.bf16.mxu0 %v5686_v38  ;;  %2113 = vmatprep.subr.bf16.mxu1 %v5757_v32  ;;  %v5716_v38 = vld [vmem:[%s8075_s0 + $0xc8] ss:$12 sps:$4 sm:$0xff]   ;;  %v157_v32 = vld [vmem:[%s8080_s5 + $0x4] sm:$0x3] }
  0x57   :  { %2114 = vmatpush1.bf16.msra.mxu1 %v5759_v33 }
  0x58   :  { %834 = vmatpush1.bf16.msra.mxu0 %v5684_v39  ;;  %v5717_v39 = vld [vmem:[%s8075_s0 + $0xe0] ss:$12 sps:$4 sm:$0xff]  }
  0x5b   :  { %681 = vmatmul.mubr.bf16.gmra.mrb[4].mxu0 %v5662_v40  ;;  %v5718_v40 = vld [vmem:[%s8075_s0 + $0xf8] ss:$12 sps:$4 sm:$0xff]  }
  0x5c   :  { %690 = vmatprep.mubr.bf16.mxu0 %v5663_v41  ;;  %v5760_v41 = vld [vmem:[%s8077_s2 + $0xc4] ss:$8 sps:$4 sm:$0xff]  }
  0x5d   :  { %2115 = vmatprep.subr.bf16.mxu1 %v5760_v41 }
  0x63   :  { %691 = vmatmul.mubr.bf16.gmra.mrb[8].mxu0 %v5665_v42  ;;  %v5762_v42 = vld [vmem:[%s8077_s2 + $0xc0] ss:$8 sps:$4 sm:$0xff]  }
  0x64   :  { %700 = vmatprep.mubr.bf16.mxu0 %v5666_v43  ;;  %v5719_v43 = vld [vmem:[%s8075_s0 + $0x110] ss:$12 sps:$4 sm:$0xff]   ;;  %2116 = vmatpush1.bf16.msra.mxu1 %v5762_v42 }
  0x6b   :  { %701 = vmatmul.mubr.bf16.gmra.mrb[12].mxu0 %v5668_v44  ;;  %v5763_v44 = vld [vmem:[%s8077_s2 + $0xd4] ss:$8 sps:$4 sm:$0xff]  }
  0x6c   :  { %710 = vmatprep.mubr.bf16.mxu0 %v5669_v45  ;;  %v5765_v45 = vld [vmem:[%s8077_s2 + $0xd0] ss:$8 sps:$4 sm:$0xff]   ;;  %2117 = vmatprep.subr.bf16.mxu1 %v5763_v44 }
  0x6d   :  { %2118 = vmatpush1.bf16.msra.mxu1 %v5765_v45 }
  0x73   :  { %711 = vmatmul.mubr.bf16.gmra.mrb[16].mxu0 %v5671_v46  ;;  %v5766_v46 = vld [vmem:[%s8077_s2 + $0xe4] ss:$8 sps:$4 sm:$0xff]  }
  0x74   :  { %720 = vmatprep.mubr.bf16.mxu0 %v5672_v47  ;;  %v5768_v47 = vld [vmem:[%s8077_s2 + $0xe0] ss:$8 sps:$4 sm:$0xff]   ;;  %2119 = vmatprep.subr.bf16.mxu1 %v5766_v46 }
  0x75   :  { %2120 = vmatpush1.bf16.msra.mxu1 %v5768_v47 }
  0x7b   :  { %721 = vmatmul.mubr.bf16.gmra.mrb[20].mxu0 %v5674_v48  ;;  %v5720_v48 = vld [vmem:[%s8075_s0 + $0x128] ss:$12 sps:$4 sm:$0xff]  }
  0x7c   :  { %730 = vmatprep.mubr.bf16.mxu0 %v5675_v49  ;;  %v5769_v49 = vld [vmem:[%s8077_s2 + $0xf4] ss:$8 sps:$4 sm:$0xff]  }
  0x7d   :  { %2121 = vmatprep.subr.bf16.mxu1 %v5769_v49 }
  0x83   :  { %731 = vmatmul.mubr.bf16.gmra.mrb[24].mxu0 %v5677_v50  ;;  %v5771_v50 = vld [vmem:[%s8077_s2 + $0xf0] ss:$8 sps:$4 sm:$0xff]  }
  0x84   :  { %740 = vmatprep.mubr.bf16.mxu0 %v5678_v51  ;;  %2122 = vmatpush1.bf16.msra.mxu1 %v5771_v50  ;;  %v5721_v51 = vld [vmem:[%s8075_s0 + $0x140] ss:$12 sps:$4 sm:$0xff]  }
  0x87   :  { %2124 = vmatmul.mubr.bf16.vlgmr.msra.gmra.mrb[0].mxu1 %v8089_v34 }
  0x8b   :  { %741 = vmatmul.mubr.bf16.gmra.mrb[28].mxu0 %v5680_v52  ;;  %v5722_v52 = vld [vmem:[%s8075_s0 + $0x158] ss:$12 sps:$4 sm:$0xff]  }
  0x8c   :  { %750 = vmatprep.mubr.bf16.mxu0 %v5681_v53  ;;  %v5723_v53 = vld [vmem:[%s8075_s0 + $0x170] ss:$12 sps:$4 sm:$0xff]  }
  0x93   :  { %751 = vmatmul.mubr.bf16.gmra.mrb[32].mxu0 %v5683_v54  ;;  %v5774_v54 = vld [vmem:[%s8077_s2 + $0x104] ss:$8 sps:$4 sm:$0xff]  }
  0x94   :  { %760 = vmatprep.mubr.bf16.mxu0 %v5687_v55  ;;  %v5772_v55 = vld [vmem:[%s8077_s2 + $0x100] ss:$8 sps:$4 sm:$0xff]   ;;  %2204 = vmatprep.subr.bf16.mxu1 %v5774_v54 }
  0x95   :  { %2205 = vmatpush1.bf16.msra.mxu1 %v5772_v55 }
  0x9b   :  { %761 = vmatmul.mubr.bf16.gmra.mrb[36].mxu0 %v5689_v56  ;;  %v5777_v56 = vld [vmem:[%s8077_s2 + $0x114] ss:$8 sps:$4 sm:$0xff]  }
  0x9c   :  { %770 = vmatprep.mubr.bf16.mxu0 %v5690_v57  ;;  %v5775_v57 = vld [vmem:[%s8077_s2 + $0x110] ss:$8 sps:$4 sm:$0xff]   ;;  %2206 = vmatprep.subr.bf16.mxu1 %v5777_v56 }
  0x9d   :  { %2207 = vmatpush1.bf16.msra.mxu1 %v5775_v57 }
  0xa3   :  { %771 = vmatmul.mubr.bf16.gmra.mrb[40].mxu0 %v5692_v58  ;;  %v5780_v58 = vld [vmem:[%s8077_s2 + $0x124] ss:$8 sps:$4 sm:$0xff]  }
  0xa4   :  { %780 = vmatprep.mubr.bf16.mxu0 %v5693_v59  ;;  %v5778_v59 = vld [vmem:[%s8077_s2 + $0x120] ss:$8 sps:$4 sm:$0xff]   ;;  %2208 = vmatprep.subr.bf16.mxu1 %v5780_v58 }
  0xa5   :  { %2209 = vmatpush1.bf16.msra.mxu1 %v5778_v59 }
  0xab   :  { %781 = vmatmul.mubr.bf16.gmra.mrb[44].mxu0 %v5695_v60  ;;  %v5783_v60 = vld [vmem:[%s8077_s2 + $0x134] ss:$8 sps:$4 sm:$0xff]  }
  0xac   :  { %790 = vmatprep.mubr.bf16.mxu0 %v5696_v61  ;;  %v5781_v61 = vld [vmem:[%s8077_s2 + $0x130] ss:$8 sps:$4 sm:$0xff]   ;;  %2210 = vmatprep.subr.bf16.mxu1 %v5783_v60 }
  0xad   :  { %2211 = vmatpush1.bf16.msra.mxu1 %v5781_v61 }
  0xb3   :  { %791 = vmatmul.mubr.bf16.gmra.mrb[48].mxu0 %v5698_v62  ;;  %v5786_v62 = vld [vmem:[%s8077_s2 + $0x144] ss:$8 sps:$4 sm:$0xff]  }
  0xb4   :  { %800 = vmatprep.mubr.bf16.mxu0 %v5699_v63  ;;  %v5784_v63 = vld [vmem:[%s8077_s2 + $0x140] ss:$8 sps:$4 sm:$0xff]   ;;  %2212 = vmatprep.subr.bf16.mxu1 %v5786_v62 }
  0xb5   :  { %2213 = vmatpush1.bf16.msra.mxu1 %v5784_v63 }
  0xbb   :  { %801 = vmatmul.mubr.bf16.gmra.mrb[52].mxu0 %v5701_v0  ;;  %v5789_v0 = vld [vmem:[%s8077_s2 + $0x154] ss:$8 sps:$4 sm:$0xff]  }
  0xbc   :  { %810 = vmatprep.mubr.bf16.mxu0 %v5702_v1  ;;  %v5787_v1 = vld [vmem:[%s8077_s2 + $0x150] ss:$8 sps:$4 sm:$0xff]   ;;  %2214 = vmatprep.subr.bf16.mxu1 %v5789_v0 }
  0xbd   :  { %2215 = vmatpush1.bf16.msra.mxu1 %v5787_v1 }
  0xc3   :  { %811 = vmatmul.mubr.bf16.gmra.mrb[56].mxu0 %v5704_v2  ;;  %v5792_v2 = vld [vmem:[%s8077_s2 + $0x164] ss:$8 sps:$4 sm:$0xff]  }
  0xc4   :  { %820 = vmatprep.mubr.bf16.mxu0 %v5705_v3  ;;  %v5790_v3 = vld [vmem:[%s8077_s2 + $0x160] ss:$8 sps:$4 sm:$0xff]   ;;  %2216 = vmatprep.subr.bf16.mxu1 %v5792_v2 }
  0xc5   :  { %2217 = vmatpush1.bf16.msra.mxu1 %v5790_v3 }
  0xcb   :  { %821 = vmatmul.mubr.bf16.gmra.mrb[60].mxu0 %v5707_v4  ;;  %v5795_v4 = vld [vmem:[%s8077_s2 + $0x174] ss:$8 sps:$4 sm:$0xff]  }
  0xcc   :  { %863 = vmatprep.mubr.bf16.mxu0 %v8089_v34  ;;  %2218 = vmatprep.subr.bf16.mxu1 %v5795_v4 }
  0xcd   :  { %2219 = vmatpush1.bf16.msra.mxu1 %v5793_v5 }
  0xce   :  { %2220 = vmatprep.subr.bf16.mxu1 %v5798_v6 }
  0xd1   :  { %2221 = vmatpush1.bf16.msra.mxu1 %v5796_v7 }
  0xd2   :  { %2222 = vmatprep.subr.bf16.mxu1 %v5801_v8 }
  0xd3   :  { %4925 = vmatmul.mubr.msk.bf16.vlgmr.msra.gmra.mrb[0].mxu0 %vm589_vm0, %v5708_v9  ;;  %v5799_v9 = vld [vmem:[%s8077_s2 + $0x190] ss:$8 sps:$4 sm:$0xff]  }
  0xd4   :  { %873 = vmatprep.mubr.bf16.mxu0 %v8089_v34 }
  0xd5   :  { %2223 = vmatpush1.bf16.msra.mxu1 %v5799_v9 }
  0xd6   :  { %2224 = vmatprep.subr.bf16.mxu1 %v5804_v10 }
  0xd9   :  { %2225 = vmatpush1.bf16.msra.mxu1 %v5802_v11 }
  0xda   :  { %2226 = vmatprep.subr.bf16.mxu1 %v5807_v12 }
  0xdb   :  { %4926 = vmatmul.mubr.msk.bf16.gmra.mrb[4].mxu0 %vm589_vm0, %v5709_v14  ;;  %v5810_v14 = vld [vmem:[%s8077_s2 + $0x1c4] ss:$8 sps:$4 sm:$0xff]  }
  0xdc   :  { %883 = vmatprep.mubr.bf16.mxu0 %v8089_v34 }
  0xdd   :  { %2227 = vmatpush1.bf16.msra.mxu1 %v5805_v13 }
  0xde   :  { %2228 = vmatprep.subr.bf16.mxu1 %v5810_v14 }
  0xe1   :  { %2229 = vmatpush1.bf16.msra.mxu1 %v5808_v15 }
  0xe2   :  { %2230 = vmatprep.subr.bf16.mxu1 %v5813_v17 }
  0xe3   :  { %4927 = vmatmul.mubr.msk.bf16.gmra.mrb[8].mxu0 %vm589_vm0, %v5710_v19  ;;  %v160_v19 = vshrl.u32 %v8088_v16, 7 }
  0xe4   :  { %893 = vmatprep.mubr.bf16.mxu0 %v8089_v34 }
  0xe5   :  { %2231 = vmatpush1.bf16.msra.mxu1 %v5811_v18  ;;  %v6783_v22 = vsub.s32 0, %v160_v19 }
  0xe6   :  { %2232 = vmatprep.subr.bf16.mxu1 %v5816_v20 }
  0xe7   :  { %8098 = vst [vmem:[#allocation8_spill] sm:$0xff] %v6783_v22  ;;  %v6797_v27 = vrot.slane %v155_v23, %v6783_v22 }
  0xe9   :  { %2233 = vmatpush1.bf16.msra.mxu1 %v5814_v21 }
  0xea   :  { %2234 = vmatprep.subr.bf16.mxu1 %v5819_v25 }
  0xeb   :  { %4928 = vmatmul.mubr.msk.bf16.gmra.mrb[12].mxu0 %vm589_vm0, %v5711_v24  ;;  %v6788_v24 = vsub.s32 1, %v160_v19 }
  0xec   :  { %903 = vmatprep.mubr.bf16.mxu0 %v8089_v34 }
  0xed   :  { %8099 = vst [vmem:[#allocation9_spill] sm:$0xff] %v6788_v24  ;;  %2235 = vmatpush1.bf16.msra.mxu1 %v5817_v26  ;;  %v6800_v28 = vrot.slane %v155_v23, %v6788_v24 }
  0xf3   :  { %4929 = vmatmul.mubr.msk.bf16.gmra.mrb[16].mxu0 %vm589_vm0, %v5712_v29  ;;  %v5822_v29 = vld [vmem:[%s8077_s2 + $0x204] ss:$8 sps:$4 sm:$0xff]  }
  0xf4   :  { %913 = vmatprep.mubr.bf16.mxu0 %v8089_v34  ;;  %2317 = vmatprep.subr.bf16.mxu1 %v5822_v29 }
  0xfb   :  { %4930 = vmatmul.mubr.msk.bf16.gmra.mrb[20].mxu0 %vm589_vm0, %v5713_v35 }
  0xfc   :  { %923 = vmatprep.mubr.bf16.mxu0 %v8089_v34 }
 0x103   :  { %4931 = vmatmul.mubr.msk.bf16.gmra.mrb[24].mxu0 %vm589_vm0, %v5714_v36  ;;  %v6813_v36 = vrot.slane %v156_v30, %v6783_v22 }
 0x104   :  { %933 = vmatprep.mubr.bf16.mxu0 %v8089_v34 }
 0x10b   :  { %4932 = vmatmul.mubr.msk.bf16.gmra.mrb[28].mxu0 %vm589_vm0, %v5715_v37 }
 0x10c   :  { %943 = vmatprep.mubr.bf16.mxu0 %v8089_v34 }
 0x113   :  { %4933 = vmatmul.mubr.msk.bf16.gmra.mrb[32].mxu0 %vm589_vm0, %v5716_v38 }
 0x114   :  { %953 = vmatprep.mubr.bf16.mxu0 %v8089_v34 }
 0x11b   :  { %4934 = vmatmul.mubr.msk.bf16.gmra.mrb[36].mxu0 %vm589_vm0, %v5717_v39 }
 0x11c   :  { %963 = vmatprep.mubr.bf16.mxu0 %v8089_v34 }
 0x123   :  { %4935 = vmatmul.mubr.msk.bf16.gmra.mrb[40].mxu0 %vm589_vm0, %v5718_v40  ;;  %v6817_v40 = vrot.slane %v156_v30, %v6788_v24 }
 0x124   :  { %973 = vmatprep.mubr.bf16.mxu0 %v8089_v34 }
 0x12b   :  { %4936 = vmatmul.mubr.msk.bf16.gmra.mrb[44].mxu0 %vm589_vm0, %v5719_v43  ;;  %v6821_v43 = vrot.slane %v157_v32, %v6783_v22 }
 0x12c   :  { %983 = vmatprep.mubr.bf16.mxu0 %v8089_v34 }
 0x133   :  { %4937 = vmatmul.mubr.msk.bf16.gmra.mrb[48].mxu0 %vm589_vm0, %v5720_v48  ;;  %v6825_v48 = vrot.slane %v157_v32, %v6788_v24 }
 0x134   :  { %993 = vmatprep.mubr.bf16.mxu0 %v8089_v34 }
 0x13b   :  { %4938 = vmatmul.mubr.msk.bf16.gmra.mrb[52].mxu0 %vm589_vm0, %v5721_v51 }
 0x13c   :  { %1003 = vmatprep.mubr.bf16.mxu0 %v8089_v34 }
 0x143   :  { %4939 = vmatmul.mubr.msk.bf16.gmra.mrb[56].mxu0 %vm589_vm0, %v5722_v52 }
 0x144   :  { %1013 = vmatprep.mubr.bf16.mxu0 %v8089_v34 }
 0x14b   :  { %4940 = vmatmul.mubr.msk.bf16.gmra.mrb[60].mxu0 %vm589_vm0, %v5723_v53 }
 0x14c   :  { %4245 = vmatprep.mubr.bf16.mxu0 %v8089_v34 }
 0x1a6   :  { %v865_v31 = vpop.f32.mrb[0].mxu0 }
 0x1a7   :  { %v5306_v33 = vadd.f32 %v865_v31, %v6797_v27  ;;  %v867_v35 = vpop.f32.mrb[1].mxu0 }
 0x1a8   :  { %v5307_v37 = vadd.f32 %v867_v35, %v6800_v28  ;;  %v869_v38 = vpop.f32.mrb[2].mxu0 }
 0x1a9   :  { %vm1024_vm1 = vcmp.ge.f32.partialorder %v5306_v33, 0.0  ;;  %v1088_v39 = vmul.f32 0.2, %v5306_v33  ;;  %v5308_v41 = vadd.f32 %v869_v38, %v6797_v27  ;;  %v871_v42 = vpop.f32.mrb[3].mxu0 }
 0x1aa   :  { %vm1025_vm2 = vcmp.ge.f32.partialorder %v5307_v37, 0.0  ;;  %v1089_v44 = vmul.f32 0.2, %v5307_v37  ;;  %v5309_v45 = vadd.f32 %v871_v42, %v6800_v28 }
 0x1ab   :  { %v1152_v46 = vsel %vm1024_vm1, %v5306_v33, %v1088_v39  ;;  %vm1026_vm3 = vcmp.ge.f32.partialorder %v5308_v41, 0.0  ;;  %v1090_v47 = vmul.f32 0.2, %v5308_v41 }
 0x1ac   :  { %v1227_v49 = vmul.f32 %v6813_v36, %v1152_v46  ;;  %v1153_v50 = vsel %vm1025_vm2, %v5307_v37, %v1089_v44  ;;  %vm1027_vm4 = vcmp.ge.f32.partialorder %v5309_v45, 0.0  ;;  %v1091_v51 = vmul.f32 0.2, %v5309_v45 }
 0x1ad   :  { %v1228_v52 = vmul.f32 %v6817_v40, %v1153_v50  ;;  %v1154_v53 = vsel %vm1026_vm3, %v5308_v41, %v1090_v47 }
 0x1ae   :  { %v1229_v54 = vmul.f32 %v6813_v36, %v1154_v53  ;;  %v1155_v55 = vsel %vm1027_vm4, %v5309_v45, %v1091_v51  ;;  %v875_v56 = vpop.f32.mrb[4].mxu0  ;;  %v6833_v60 = vadd.f32 %v6821_v43, %v1227_v49 }
 0x1af   :  { %v1230_v57 = vmul.f32 %v6817_v40, %v1155_v55  ;;  %v5310_v58 = vadd.f32 %v875_v56, %v6797_v27  ;;  %v877_v59 = vpop.f32.mrb[5].mxu0  ;;  %v6840_v0 = vadd.f32 %v6825_v48, %v1228_v52 }
 0x1b0   :  { %v6836_v61 = vadd.f32 %v6821_v43, %v1229_v54  ;;  %v5311_v62 = vadd.f32 %v877_v59, %v6800_v28  ;;  %v879_v63 = vpop.f32.mrb[6].mxu0 }
 0x1b1   :  { %vm1028_vm5 = vcmp.ge.f32.partialorder %v5310_v58, 0.0  ;;  %v1092_v1 = vmul.f32 0.2, %v5310_v58  ;;  %v5312_v2 = vadd.f32 %v879_v63, %v6797_v27  ;;  %v881_v3 = vpop.f32.mrb[7].mxu0  ;;  %v6844_v4 = vadd.f32 %v6825_v48, %v1230_v57 }
 0x1b2   :  { %vm1029_vm6 = vcmp.ge.f32.partialorder %v5311_v62, 0.0  ;;  %v1093_v6 = vmul.f32 0.2, %v5311_v62  ;;  %v5313_v7 = vadd.f32 %v881_v3, %v6800_v28 }
 0x1b3   :  { %v1156_v8 = vsel %vm1028_vm5, %v5310_v58, %v1092_v1  ;;  %vm1030_vm7 = vcmp.ge.f32.partialorder %v5312_v2, 0.0  ;;  %v1094_v9 = vmul.f32 0.2, %v5312_v2 }
 0x1b4   :  { %v1231_v11 = vmul.f32 %v6813_v36, %v1156_v8  ;;  %v1157_v12 = vsel %vm1029_vm6, %v5311_v62, %v1093_v6  ;;  %vm1031_vm8 = vcmp.ge.f32.partialorder %v5313_v7, 0.0  ;;  %v1095_v13 = vmul.f32 0.2, %v5313_v7 }
 0x1b5   :  { %v1232_v14 = vmul.f32 %v6817_v40, %v1157_v12  ;;  %v1158_v15 = vsel %vm1030_vm7, %v5312_v2, %v1094_v9 }
 0x1b6   :  { %v1233_v17 = vmul.f32 %v6813_v36, %v1158_v15  ;;  %v1159_v18 = vsel %vm1031_vm8, %v5313_v7, %v1095_v13  ;;  %v885_v19 = vpop.f32.mrb[8].mxu0  ;;  %v1306_v30 = vadd.f32 %v6821_v43, %v1231_v11 }
 0x1b7   :  { %v1234_v20 = vmul.f32 %v6817_v40, %v1159_v18  ;;  %v5314_v21 = vadd.f32 %v885_v19, %v6797_v27  ;;  %v887_v23 = vpop.f32.mrb[9].mxu0  ;;  %v1307_v29 = vadd.f32 %v6825_v48, %v1232_v14 }
 0x1b8   :  { %v5315_v25 = vadd.f32 %v887_v23, %v6800_v28  ;;  %v889_v26 = vpop.f32.mrb[10].mxu0  ;;  %v1308_v31 = vadd.f32 %v6821_v43, %v1233_v17 }
 0x1b9   :  { %vm1032_vm9 = vcmp.ge.f32.partialorder %v5314_v21, 0.0  ;;  %v1096_v32 = vmul.f32 0.2, %v5314_v21  ;;  %v5316_v33 = vadd.f32 %v889_v26, %v6797_v27  ;;  %v891_v35 = vpop.f32.mrb[11].mxu0  ;;  %v1309_v37 = vadd.f32 %v6825_v48, %v1234_v20 }
 0x1ba   :  { %vm1033_vm10 = vcmp.ge.f32.partialorder %v5315_v25, 0.0  ;;  %v1097_v38 = vmul.f32 0.2, %v5315_v25  ;;  %v5317_v39 = vadd.f32 %v891_v35, %v6800_v28  ;;  %v6863_v41 = vpack.c.bf16 %v1308_v31, %v1306_v30 }
 0x1bb   :  { %v1160_v42 = vsel %vm1032_vm9, %v5314_v21, %v1096_v32  ;;  %vm1034_vm11 = vcmp.ge.f32.partialorder %v5316_v33, 0.0  ;;  %v1098_v44 = vmul.f32 0.2, %v5316_v33  ;;  %v6865_v45 = vpack.c.bf16 %v1309_v37, %v1307_v29 }
 0x1bc   :  { %v1235_v46 = vmul.f32 %v6813_v36, %v1160_v42  ;;  %v1161_v47 = vsel %vm1033_vm10, %v5315_v25, %v1097_v38  ;;  %vm1035_vm12 = vcmp.ge.f32.partialorder %v5317_v39, 0.0  ;;  %v1099_v49 = vmul.f32 0.2, %v5317_v39 }
 0x1bd   :  { %v1236_v50 = vmul.f32 %v6817_v40, %v1161_v47  ;;  %v1162_v51 = vsel %vm1034_vm11, %v5316_v33, %v1098_v44  ;;  %2133 = vmatprep.mubr.bf16.mxu1 %v6865_v45 }
 0x1be   :  { %v1237_v52 = vmul.f32 %v6813_v36, %v1162_v51  ;;  %v1163_v53 = vsel %vm1035_vm12, %v5317_v39, %v1099_v49  ;;  %v895_v54 = vpop.f32.mrb[12].mxu0  ;;  %2134 = vmatmul.mubr.bf16.gmra.mrb[4].mxu1 %v6863_v41  ;;  %v6879_v63 = vadd.f32 %v6821_v43, %v1235_v46 }
 0x1bf   :  { %v1238_v55 = vmul.f32 %v6817_v40, %v1163_v53  ;;  %v5318_v56 = vadd.f32 %v895_v54, %v6797_v27  ;;  %v897_v57 = vpop.f32.mrb[13].mxu0  ;;  %v6876_v62 = vadd.f32 %v6825_v48, %v1236_v50 }
 0x1c0   :  { %v5319_v58 = vadd.f32 %v897_v57, %v6800_v28  ;;  %v899_v59 = vpop.f32.mrb[14].mxu0  ;;  %v6882_v1 = vadd.f32 %v6821_v43, %v1237_v52 }
 0x1c1   :  { %vm1036_vm13 = vcmp.ge.f32.partialorder %v5318_v56, 0.0  ;;  %v1100_v2 = vmul.f32 0.2, %v5318_v56  ;;  %v5320_v3 = vadd.f32 %v899_v59, %v6797_v27  ;;  %v901_v6 = vpop.f32.mrb[15].mxu0  ;;  %v6886_v7 = vadd.f32 %v6825_v48, %v1238_v55 }
 0x1c2   :  { %vm1037_vm14 = vcmp.ge.f32.partialorder %v5319_v58, 0.0  ;;  %v1101_v8 = vmul.f32 0.2, %v5319_v58  ;;  %v5321_v9 = vadd.f32 %v901_v6, %v6800_v28 }
 0x1c3   :  { %v1164_v12 = vsel %vm1036_vm13, %v5318_v56, %v1100_v2  ;;  %vm1038_vm15 = vcmp.ge.f32.partialorder %v5320_v3, 0.0  ;;  %v1102_v13 = vmul.f32 0.2, %v5320_v3 }
 0x1c4   :  { %v1239_v15 = vmul.f32 %v6813_v36, %v1164_v12  ;;  %v1165_v17 = vsel %vm1037_vm14, %v5319_v58, %v1101_v8  ;;  %vm1039_vm0 = vcmp.ge.f32.partialorder %v5321_v9, 0.0  ;;  %v1103_v18 = vmul.f32 0.2, %v5321_v9 }
 0x1c5   :  { %v1240_v19 = vmul.f32 %v6817_v40, %v1165_v17  ;;  %v1166_v20 = vsel %vm1038_vm15, %v5320_v3, %v1102_v13 }
 0x1c6   :  { %v1241_v21 = vmul.f32 %v6813_v36, %v1166_v20  ;;  %v1167_v23 = vsel %vm1039_vm0, %v5321_v9, %v1103_v18  ;;  %v905_v25 = vpop.f32.mrb[16].mxu0  ;;  %v1314_v35 = vadd.f32 %v6821_v43, %v1239_v15 }
 0x1c7   :  { %v1242_v26 = vmul.f32 %v6817_v40, %v1167_v23  ;;  %v5322_v29 = vadd.f32 %v905_v25, %v6797_v27  ;;  %v907_v30 = vpop.f32.mrb[17].mxu0  ;;  %v1315_v33 = vadd.f32 %v6825_v48, %v1240_v19 }
 0x1c8   :  { %v5323_v31 = vadd.f32 %v907_v30, %v6800_v28  ;;  %v909_v32 = vpop.f32.mrb[18].mxu0  ;;  %v1316_v37 = vadd.f32 %v6821_v43, %v1241_v21 }
 0x1c9   :  { %vm1040_vm1 = vcmp.ge.f32.partialorder %v5322_v29, 0.0  ;;  %v1104_v38 = vmul.f32 0.2, %v5322_v29  ;;  %v5324_v39 = vadd.f32 %v909_v32, %v6797_v27  ;;  %v911_v42 = vpop.f32.mrb[19].mxu0  ;;  %v1317_v44 = vadd.f32 %v6825_v48, %v1242_v26 }
 0x1ca   :  { %vm1041_vm2 = vcmp.ge.f32.partialorder %v5323_v31, 0.0  ;;  %v1105_v46 = vmul.f32 0.2, %v5323_v31  ;;  %v5325_v47 = vadd.f32 %v911_v42, %v6800_v28  ;;  %v6905_v49 = vpack.c.bf16 %v1316_v37, %v1314_v35 }
 0x1cb   :  { %v1168_v50 = vsel %vm1040_vm1, %v5322_v29, %v1104_v38  ;;  %vm1042_vm3 = vcmp.ge.f32.partialorder %v5324_v39, 0.0  ;;  %v1106_v51 = vmul.f32 0.2, %v5324_v39  ;;  %v6907_v52 = vpack.c.bf16 %v1317_v44, %v1315_v33 }
 0x1cc   :  { %v1243_v53 = vmul.f32 %v6813_v36, %v1168_v50  ;;  %v1169_v54 = vsel %vm1041_vm2, %v5323_v31, %v1105_v46  ;;  %vm1043_vm4 = vcmp.ge.f32.partialorder %v5325_v47, 0.0  ;;  %v1107_v55 = vmul.f32 0.2, %v5325_v47 }
 0x1cd   :  { %v1244_v56 = vmul.f32 %v6817_v40, %v1169_v54  ;;  %v1170_v57 = vsel %vm1042_vm3, %v5324_v39, %v1106_v51  ;;  %2143 = vmatprep.mubr.bf16.mxu1 %v6907_v52 }
 0x1ce   :  { %v1245_v58 = vmul.f32 %v6813_v36, %v1170_v57  ;;  %v1171_v59 = vsel %vm1043_vm4, %v5325_v47, %v1107_v55  ;;  %v915_v2 = vpop.f32.mrb[20].mxu0  ;;  %2144 = vmatmul.mubr.bf16.gmra.mrb[8].mxu1 %v6905_v49  ;;  %v6921_v15 = vadd.f32 %v6821_v43, %v1243_v53 }
 0x1cf   :  { %v1246_v3 = vmul.f32 %v6817_v40, %v1171_v59  ;;  %v5326_v6 = vadd.f32 %v915_v2, %v6797_v27  ;;  %v917_v8 = vpop.f32.mrb[21].mxu0  ;;  %v6918_v13 = vadd.f32 %v6825_v48, %v1244_v56 }
 0x1d0   :  { %v5327_v9 = vadd.f32 %v917_v8, %v6800_v28  ;;  %v919_v12 = vpop.f32.mrb[22].mxu0  ;;  %v6924_v17 = vadd.f32 %v6821_v43, %v1245_v58 }
 0x1d1   :  { %vm1044_vm5 = vcmp.ge.f32.partialorder %v5326_v6, 0.0  ;;  %v1108_v18 = vmul.f32 0.2, %v5326_v6  ;;  %v5328_v19 = vadd.f32 %v919_v12, %v6797_v27  ;;  %v921_v20 = vpop.f32.mrb[23].mxu0  ;;  %v6928_v21 = vadd.f32 %v6825_v48, %v1246_v3 }
 0x1d2   :  { %vm1045_vm6 = vcmp.ge.f32.partialorder %v5327_v9, 0.0  ;;  %v1109_v23 = vmul.f32 0.2, %v5327_v9  ;;  %v5329_v25 = vadd.f32 %v921_v20, %v6800_v28 }
 0x1d3   :  { %v1172_v29 = vsel %vm1044_vm5, %v5326_v6, %v1108_v18  ;;  %vm1046_vm7 = vcmp.ge.f32.partialorder %v5328_v19, 0.0  ;;  %v1110_v30 = vmul.f32 0.2, %v5328_v19 }
 0x1d4   :  { %v1247_v32 = vmul.f32 %v6813_v36, %v1172_v29  ;;  %v1173_v33 = vsel %vm1045_vm6, %v5327_v9, %v1109_v23  ;;  %vm1047_vm8 = vcmp.ge.f32.partialorder %v5329_v25, 0.0  ;;  %v1111_v35 = vmul.f32 0.2, %v5329_v25 }
 0x1d5   :  { %v1248_v37 = vmul.f32 %v6817_v40, %v1173_v33  ;;  %v1174_v38 = vsel %vm1046_vm7, %v5328_v19, %v1110_v30 }
 0x1d6   :  { %v1249_v39 = vmul.f32 %v6813_v36, %v1174_v38  ;;  %v1175_v42 = vsel %vm1047_vm8, %v5329_v25, %v1111_v35  ;;  %v925_v44 = vpop.f32.mrb[24].mxu0  ;;  %v1322_v55 = vadd.f32 %v6821_v43, %v1247_v32 }
 0x1d7   :  { %v1250_v46 = vmul.f32 %v6817_v40, %v1175_v42  ;;  %v5330_v47 = vadd.f32 %v925_v44, %v6797_v27  ;;  %v927_v50 = vpop.f32.mrb[25].mxu0  ;;  %v1323_v54 = vadd.f32 %v6825_v48, %v1248_v37 }
 0x1d8   :  { %v5331_v51 = vadd.f32 %v927_v50, %v6800_v28  ;;  %v929_v53 = vpop.f32.mrb[26].mxu0  ;;  %v1324_v56 = vadd.f32 %v6821_v43, %v1249_v39 }
 0x1d9   :  { %vm1048_vm9 = vcmp.ge.f32.partialorder %v5330_v47, 0.0  ;;  %v1112_v57 = vmul.f32 0.2, %v5330_v47  ;;  %v5332_v58 = vadd.f32 %v929_v53, %v6797_v27  ;;  %v931_v59 = vpop.f32.mrb[27].mxu0  ;;  %v1325_v2 = vadd.f32 %v6825_v48, %v1250_v46 }
 0x1da   :  { %vm1049_vm10 = vcmp.ge.f32.partialorder %v5331_v51, 0.0  ;;  %v1113_v3 = vmul.f32 0.2, %v5331_v51  ;;  %v5333_v6 = vadd.f32 %v931_v59, %v6800_v28  ;;  %v6947_v8 = vpack.c.bf16 %v1324_v56, %v1322_v55 }
 0x1db   :  { %v1176_v9 = vsel %vm1048_vm9, %v5330_v47, %v1112_v57  ;;  %vm1050_vm11 = vcmp.ge.f32.partialorder %v5332_v58, 0.0  ;;  %v1114_v12 = vmul.f32 0.2, %v5332_v58  ;;  %v6949_v18 = vpack.c.bf16 %v1325_v2, %v1323_v54 }
 0x1dc   :  { %v1251_v19 = vmul.f32 %v6813_v36, %v1176_v9  ;;  %v1177_v20 = vsel %vm1049_vm10, %v5331_v51, %v1113_v3  ;;  %vm1051_vm12 = vcmp.ge.f32.partialorder %v5333_v6, 0.0  ;;  %v1115_v23 = vmul.f32 0.2, %v5333_v6 }
 0x1dd   :  { %v1252_v25 = vmul.f32 %v6817_v40, %v1177_v20  ;;  %v1178_v29 = vsel %vm1050_vm11, %v5332_v58, %v1114_v12  ;;  %2153 = vmatprep.mubr.bf16.mxu1 %v6949_v18 }
 0x1de   :  { %v1253_v30 = vmul.f32 %v6813_v36, %v1178_v29  ;;  %v1179_v32 = vsel %vm1051_vm12, %v5333_v6, %v1115_v23  ;;  %v935_v33 = vpop.f32.mrb[28].mxu0  ;;  %2154 = vmatmul.mubr.bf16.gmra.mrb[12].mxu1 %v6947_v8  ;;  %v6963_v46 = vadd.f32 %v6821_v43, %v1251_v19 }
 0x1df   :  { %v1254_v35 = vmul.f32 %v6817_v40, %v1179_v32  ;;  %v5334_v37 = vadd.f32 %v935_v33, %v6797_v27  ;;  %v937_v38 = vpop.f32.mrb[29].mxu0  ;;  %v6960_v44 = vadd.f32 %v6825_v48, %v1252_v25 }
 0x1e0   :  { %v5335_v39 = vadd.f32 %v937_v38, %v6800_v28  ;;  %v939_v42 = vpop.f32.mrb[30].mxu0  ;;  %v6966_v47 = vadd.f32 %v6821_v43, %v1253_v30 }
 0x1e1   :  { %vm1052_vm13 = vcmp.ge.f32.partialorder %v5334_v37, 0.0  ;;  %v1116_v50 = vmul.f32 0.2, %v5334_v37  ;;  %v5336_v51 = vadd.f32 %v939_v42, %v6797_v27  ;;  %v941_v53 = vpop.f32.mrb[31].mxu0  ;;  %v6970_v54 = vadd.f32 %v6825_v48, %v1254_v35 }
 0x1e2   :  { %vm1053_vm14 = vcmp.ge.f32.partialorder %v5335_v39, 0.0  ;;  %v1117_v55 = vmul.f32 0.2, %v5335_v39  ;;  %v5337_v56 = vadd.f32 %v941_v53, %v6800_v28 }
 0x1e3   :  { %v1180_v58 = vsel %vm1052_vm13, %v5334_v37, %v1116_v50  ;;  %vm1054_vm15 = vcmp.ge.f32.partialorder %v5336_v51, 0.0  ;;  %v1118_v59 = vmul.f32 0.2, %v5336_v51 }
 0x1e4   :  { %v1255_v3 = vmul.f32 %v6813_v36, %v1180_v58  ;;  %v1181_v6 = vsel %vm1053_vm14, %v5335_v39, %v1117_v55  ;;  %vm1055_vm0 = vcmp.ge.f32.partialorder %v5337_v56, 0.0  ;;  %v1119_v9 = vmul.f32 0.2, %v5337_v56 }
 0x1e5   :  { %v1256_v12 = vmul.f32 %v6817_v40, %v1181_v6  ;;  %v1182_v19 = vsel %vm1054_vm15, %v5336_v51, %v1118_v59 }
 0x1e6   :  { %v1257_v20 = vmul.f32 %v6813_v36, %v1182_v19  ;;  %v1183_v23 = vsel %vm1055_vm0, %v5337_v56, %v1119_v9  ;;  %v945_v25 = vpop.f32.mrb[32].mxu0  ;;  %v1330_v38 = vadd.f32 %v6821_v43, %v1255_v3 }
 0x1e7   :  { %v1258_v29 = vmul.f32 %v6817_v40, %v1183_v23  ;;  %v5338_v30 = vadd.f32 %v945_v25, %v6797_v27  ;;  %v947_v32 = vpop.f32.mrb[33].mxu0  ;;  %v1331_v37 = vadd.f32 %v6825_v48, %v1256_v12 }
 0x1e8   :  { %v5339_v33 = vadd.f32 %v947_v32, %v6800_v28  ;;  %v949_v35 = vpop.f32.mrb[34].mxu0  ;;  %v1332_v39 = vadd.f32 %v6821_v43, %v1257_v20 }
 0x1e9   :  { %vm1056_vm1 = vcmp.ge.f32.partialorder %v5338_v30, 0.0  ;;  %v1120_v42 = vmul.f32 0.2, %v5338_v30  ;;  %v5340_v50 = vadd.f32 %v949_v35, %v6797_v27  ;;  %v951_v51 = vpop.f32.mrb[35].mxu0  ;;  %v1333_v53 = vadd.f32 %v6825_v48, %v1258_v29 }
 0x1ea   :  { %vm1057_vm2 = vcmp.ge.f32.partialorder %v5339_v33, 0.0  ;;  %v1121_v55 = vmul.f32 0.2, %v5339_v33  ;;  %v5341_v56 = vadd.f32 %v951_v51, %v6800_v28  ;;  %v6989_v58 = vpack.c.bf16 %v1332_v39, %v1330_v38 }
 0x1eb   :  { %v1184_v59 = vsel %vm1056_vm1, %v5338_v30, %v1120_v42  ;;  %vm1058_vm3 = vcmp.ge.f32.partialorder %v5340_v50, 0.0  ;;  %v1122_v6 = vmul.f32 0.2, %v5340_v50  ;;  %v6991_v9 = vpack.c.bf16 %v1333_v53, %v1331_v37 }
 0x1ec   :  { %v1259_v3 = vmul.f32 %v6813_v36, %v1184_v59  ;;  %v1185_v12 = vsel %vm1057_vm2, %v5339_v33, %v1121_v55  ;;  %vm1059_vm4 = vcmp.ge.f32.partialorder %v5341_v56, 0.0  ;;  %v1123_v19 = vmul.f32 0.2, %v5341_v56 }
 0x1ed   :  { %v1260_v20 = vmul.f32 %v6817_v40, %v1185_v12  ;;  %v1186_v23 = vsel %vm1058_vm3, %v5340_v50, %v1122_v6  ;;  %2163 = vmatprep.mubr.bf16.mxu1 %v6991_v9 }
 0x1ee   :  { %v1261_v25 = vmul.f32 %v6813_v36, %v1186_v23  ;;  %v1187_v29 = vsel %vm1059_vm4, %v5341_v56, %v1123_v19  ;;  %v955_v32 = vpop.f32.mrb[36].mxu0  ;;  %2164 = vmatmul.mubr.bf16.gmra.mrb[16].mxu1 %v6989_v58  ;;  %v7005_v42 = vadd.f32 %v6821_v43, %v1259_v3 }
 0x1ef   :  { %v1262_v30 = vmul.f32 %v6817_v40, %v1187_v29  ;;  %v5342_v35 = vadd.f32 %v955_v32, %v6797_v27  ;;  %v957_v37 = vpop.f32.mrb[37].mxu0  ;;  %v7002_v39 = vadd.f32 %v6825_v48, %v1260_v20 }
 0x1f0   :  { %v5343_v33 = vadd.f32 %v957_v37, %v6800_v28  ;;  %v959_v38 = vpop.f32.mrb[38].mxu0  ;;  %v7008_v50 = vadd.f32 %v6821_v43, %v1261_v25 }
 0x1f1   :  { %vm1060_vm5 = vcmp.ge.f32.partialorder %v5342_v35, 0.0  ;;  %v1124_v51 = vmul.f32 0.2, %v5342_v35  ;;  %v5344_v53 = vadd.f32 %v959_v38, %v6797_v27  ;;  %v961_v55 = vpop.f32.mrb[39].mxu0  ;;  %v7012_v56 = vadd.f32 %v6825_v48, %v1262_v30 }
 0x1f2   :  { %vm1061_vm6 = vcmp.ge.f32.partialorder %v5343_v33, 0.0  ;;  %v1125_v59 = vmul.f32 0.2, %v5343_v33  ;;  %v5345_v6 = vadd.f32 %v961_v55, %v6800_v28 }
 0x1f3   :  { %v1188_v3 = vsel %vm1060_vm5, %v5342_v35, %v1124_v51  ;;  %vm1062_vm7 = vcmp.ge.f32.partialorder %v5344_v53, 0.0  ;;  %v1126_v19 = vmul.f32 0.2, %v5344_v53 }
 0x1f4   :  { %v1263_v23 = vmul.f32 %v6813_v36, %v1188_v3  ;;  %v1189_v25 = vsel %vm1061_vm6, %v5343_v33, %v1125_v59  ;;  %vm1063_vm8 = vcmp.ge.f32.partialorder %v5345_v6, 0.0  ;;  %v1127_v29 = vmul.f32 0.2, %v5345_v6 }
 0x1f5   :  { %v1264_v32 = vmul.f32 %v6817_v40, %v1189_v25  ;;  %v1190_v30 = vsel %vm1062_vm7, %v5344_v53, %v1126_v19 }
 0x1f6   :  { %v1265_v37 = vmul.f32 %v6813_v36, %v1190_v30  ;;  %v1191_v38 = vsel %vm1063_vm8, %v5345_v6, %v1127_v29  ;;  %v965_v55 = vpop.f32.mrb[40].mxu0  ;;  %v1338_v33 = vadd.f32 %v6821_v43, %v1263_v23 }
 0x1f7   :  { %v1266_v16 = vmul.f32 %v6817_v40, %v1191_v38  ;;  %v5346_v35 = vadd.f32 %v965_v55, %v6797_v27  ;;  %v967_v51 = vpop.f32.mrb[41].mxu0  ;;  %v1339_v3 = vadd.f32 %v6825_v48, %v1264_v32 }
 0x1f8   :  { %v5347_v34 = vadd.f32 %v967_v51, %v6800_v28  ;;  %v969_v12 = vpop.f32.mrb[42].mxu0  ;;  %v1340_v59 = vadd.f32 %v6821_v43, %v1265_v37 }
 0x1f9   :  { %vm1064_vm9 = vcmp.ge.f32.partialorder %v5346_v35, 0.0  ;;  %v1128_v53 = vmul.f32 0.2, %v5346_v35  ;;  %v5348_v19 = vadd.f32 %v969_v12, %v6797_v27  ;;  %v971_v6 = vpop.f32.mrb[43].mxu0  ;;  %v1341_v25 = vadd.f32 %v6825_v48, %v1266_v16 }
 0x1fa   :  { %vm1065_vm10 = vcmp.ge.f32.partialorder %v5347_v34, 0.0  ;;  %v1129_v29 = vmul.f32 0.2, %v5347_v34  ;;  %v5349_v30 = vadd.f32 %v971_v6, %v6800_v28  ;;  %v7031_v38 = vpack.c.bf16 %v1340_v59, %v1338_v33 }
 0x1fb   :  { %v1192_v55 = vsel %vm1064_vm9, %v5346_v35, %v1128_v53  ;;  %vm1066_vm11 = vcmp.ge.f32.partialorder %v5348_v19, 0.0  ;;  %v1130_v32 = vmul.f32 0.2, %v5348_v19  ;;  %v7033_v51 = vpack.c.bf16 %v1341_v25, %v1339_v3 }
 0x1fc   :  { %8100 = vst [vmem:[#allocation10_spill] sm:$0xff] %v7031_v38  ;;  %v1267_v23 = vmul.f32 %v6813_v36, %v1192_v55  ;;  %v1193_v37 = vsel %vm1065_vm10, %v5347_v34, %v1129_v29  ;;  %vm1067_vm12 = vcmp.ge.f32.partialorder %v5349_v30, 0.0  ;;  %v1131_v20 = vmul.f32 0.2, %v5349_v30 }
 0x1fd   :  { %v1268_v12 = vmul.f32 %v6817_v40, %v1193_v37  ;;  %v1194_v57 = vsel %vm1066_vm11, %v5348_v19, %v1130_v32  ;;  %2173 = vmatprep.mubr.bf16.mxu1 %v7033_v51 }
 0x1fe   :  { %v1269_v16 = vmul.f32 %v6813_v36, %v1194_v57  ;;  %v1195_v6 = vsel %vm1067_vm12, %v5349_v30, %v1131_v20  ;;  %v975_v33 = vpop.f32.mrb[44].mxu0  ;;  %2174 = vmatmul.mubr.bf16.gmra.mrb[20].mxu1 %v7031_v38  ;;  %v7047_v19 = vadd.f32 %v6821_v43, %v1267_v23 }
 0x1ff   :  { %v1270_v35 = vmul.f32 %v6817_v40, %v1195_v6  ;;  %v5350_v3 = vadd.f32 %v975_v33, %v6797_v27  ;;  %v977_v59 = vpop.f32.mrb[45].mxu0  ;;  %v7044_v25 = vadd.f32 %v6825_v48, %v1268_v12 }
 0x200   :  { %v5351_v34 = vadd.f32 %v977_v59, %v6800_v28  ;;  %v979_v53 = vpop.f32.mrb[46].mxu0  ;;  %v7050_v57 = vadd.f32 %v6821_v43, %v1269_v16 }
 0x201   :  { %vm1068_vm13 = vcmp.ge.f32.partialorder %v5350_v3, 0.0  ;;  %v1132_v20 = vmul.f32 0.2, %v5350_v3  ;;  %v5352_v29 = vadd.f32 %v979_v53, %v6797_v27  ;;  %v981_v30 = vpop.f32.mrb[47].mxu0  ;;  %v7054_v55 = vadd.f32 %v6825_v48, %v1270_v35 }
 0x202   :  { %vm1069_vm14 = vcmp.ge.f32.partialorder %v5351_v34, 0.0  ;;  %v1133_v32 = vmul.f32 0.2, %v5351_v34  ;;  %v5353_v37 = vadd.f32 %v981_v30, %v6800_v28 }
 0x203   :  { %v1196_v23 = vsel %vm1068_vm13, %v5350_v3, %v1132_v20  ;;  %vm1070_vm15 = vcmp.ge.f32.partialorder %v5352_v29, 0.0  ;;  %v1134_v6 = vmul.f32 0.2, %v5352_v29 }
 0x204   :  { %v1271_v33 = vmul.f32 %v6813_v36, %v1196_v23  ;;  %v1197_v59 = vsel %vm1069_vm14, %v5351_v34, %v1133_v32  ;;  %vm1071_vm0 = vcmp.ge.f32.partialorder %v5353_v37, 0.0  ;;  %v1135_v53 = vmul.f32 0.2, %v5353_v37 }
 0x205   :  { %v1272_v35 = vmul.f32 %v6817_v40, %v1197_v59  ;;  %v1198_v2 = vsel %vm1070_vm15, %v5352_v29, %v1134_v6 }
 0x206   :  { %v1273_v26 = vmul.f32 %v6813_v36, %v1198_v2  ;;  %v1199_v30 = vsel %vm1071_vm0, %v5353_v37, %v1135_v53  ;;  %v985_v31 = vpop.f32.mrb[48].mxu0  ;;  %v1346_v34 = vadd.f32 %v6821_v43, %v1271_v33 }
 0x207   :  { %v1274_v12 = vmul.f32 %v6817_v40, %v1199_v30  ;;  %v5354_v3 = vadd.f32 %v985_v31, %v6797_v27  ;;  %v987_v20 = vpop.f32.mrb[49].mxu0  ;;  %v1347_v23 = vadd.f32 %v6825_v48, %v1272_v35 }
 0x208   :  { %v5355_v11 = vadd.f32 %v987_v20, %v6800_v28  ;;  %v989_v16 = vpop.f32.mrb[50].mxu0  ;;  %v1348_v32 = vadd.f32 %v6821_v43, %v1273_v26 }
 0x209   :  { %vm1072_vm1 = vcmp.ge.f32.partialorder %v5354_v3, 0.0  ;;  %v1136_v29 = vmul.f32 0.2, %v5354_v3  ;;  %v5356_v2 = vadd.f32 %v989_v16, %v6797_v27  ;;  %v991_v37 = vpop.f32.mrb[51].mxu0  ;;  %v1349_v6 = vadd.f32 %v6825_v48, %v1274_v12 }
 0x20a   :  { %vm1073_vm2 = vcmp.ge.f32.partialorder %v5355_v11, 0.0  ;;  %v1137_v59 = vmul.f32 0.2, %v5355_v11  ;;  %v5357_v31 = vadd.f32 %v991_v37, %v6800_v28  ;;  %v7073_v53 = vpack.c.bf16 %v1348_v32, %v1346_v34 }
 0x20b   :  { %v1200_v30 = vsel %vm1072_vm1, %v5354_v3, %v1136_v29  ;;  %vm1074_vm3 = vcmp.ge.f32.partialorder %v5356_v2, 0.0  ;;  %v1138_v35 = vmul.f32 0.2, %v5356_v2  ;;  %v7075_v20 = vpack.c.bf16 %v1349_v6, %v1347_v23 }
 0x20c   :  { %8101 = vst [vmem:[#allocation11_spill] sm:$0xff] %v7073_v53  ;;  %v1275_v26 = vmul.f32 %v6813_v36, %v1200_v30  ;;  %v1201_v33 = vsel %vm1073_vm2, %v5355_v11, %v1137_v59  ;;  %vm1075_vm4 = vcmp.ge.f32.partialorder %v5357_v31, 0.0  ;;  %v1139_v14 = vmul.f32 0.2, %v5357_v31 }
 0x20d   :  { %8102 = vst [vmem:[#allocation12_spill] sm:$0xff] %v7075_v20  ;;  %v1276_v16 = vmul.f32 %v6817_v40, %v1201_v33  ;;  %v1202_v5 = vsel %vm1074_vm3, %v5356_v2, %v1138_v35  ;;  %2183 = vmatprep.mubr.bf16.mxu1 %v7075_v20 }
 0x20e   :  { %v1277_v12 = vmul.f32 %v6813_v36, %v1202_v5  ;;  %v1203_v37 = vsel %vm1075_vm4, %v5357_v31, %v1139_v14  ;;  %v995_v34 = vpop.f32.mrb[52].mxu0  ;;  %2184 = vmatmul.mubr.bf16.gmra.mrb[24].mxu1 %v7073_v53  ;;  %v7089_v2 = vadd.f32 %v6821_v43, %v1275_v26 }
 0x20f   :  { %v1278_v3 = vmul.f32 %v6817_v40, %v1203_v37  ;;  %v5358_v23 = vadd.f32 %v995_v34, %v6797_v27  ;;  %v997_v32 = vpop.f32.mrb[53].mxu0  ;;  %v7086_v6 = vadd.f32 %v6825_v48, %v1276_v16 }
 0x210   :  { %v5359_v11 = vadd.f32 %v997_v32, %v6800_v28  ;;  %v999_v29 = vpop.f32.mrb[54].mxu0  ;;  %v7092_v5 = vadd.f32 %v6821_v43, %v1277_v12 }
 0x211   :  { %vm1076_vm5 = vcmp.ge.f32.partialorder %v5358_v23, 0.0  ;;  %v1140_v14 = vmul.f32 0.2, %v5358_v23  ;;  %v5360_v59 = vadd.f32 %v999_v29, %v6797_v27  ;;  %v1001_v31 = vpop.f32.mrb[55].mxu0  ;;  %v7096_v30 = vadd.f32 %v6825_v48, %v1278_v3 }
 0x212   :  { %vm1077_vm6 = vcmp.ge.f32.partialorder %v5359_v11, 0.0  ;;  %v1141_v35 = vmul.f32 0.2, %v5359_v11  ;;  %v5361_v33 = vadd.f32 %v1001_v31, %v6800_v28 }
 0x213   :  { %v1204_v26 = vsel %vm1076_vm5, %v5358_v23, %v1140_v14  ;;  %vm1078_vm7 = vcmp.ge.f32.partialorder %v5360_v59, 0.0  ;;  %v1142_v37 = vmul.f32 0.2, %v5360_v59 }
 0x214   :  { %v1279_v34 = vmul.f32 %v6813_v36, %v1204_v26  ;;  %v1205_v32 = vsel %vm1077_vm6, %v5359_v11, %v1141_v35  ;;  %vm1079_vm8 = vcmp.ge.f32.partialorder %v5361_v33, 0.0  ;;  %v1143_v29 = vmul.f32 0.2, %v5361_v33 }
 0x215   :  { %v1280_v3 = vmul.f32 %v6817_v40, %v1205_v32  ;;  %v1206_v10 = vsel %vm1078_vm7, %v5360_v59, %v1142_v37 }
 0x216   :  { %v1281_v24 = vmul.f32 %v6813_v36, %v1206_v10  ;;  %v1207_v31 = vsel %vm1079_vm8, %v5361_v33, %v1143_v29  ;;  %v1005_v22 = vpop.f32.mrb[56].mxu0  ;;  %v1354_v11 = vadd.f32 %v6821_v43, %v1279_v34 }
 0x217   :  { %v1282_v16 = vmul.f32 %v6817_v40, %v1207_v31  ;;  %v5362_v23 = vadd.f32 %v1005_v22, %v6797_v27  ;;  %v1007_v14 = vpop.f32.mrb[57].mxu0  ;;  %v1355_v26 = vadd.f32 %v6825_v48, %v1280_v3 }
 0x218   :  { %v5363_v53 = vadd.f32 %v1007_v14, %v6800_v28  ;;  %v1009_v12 = vpop.f32.mrb[58].mxu0  ;;  %v1356_v35 = vadd.f32 %v6821_v43, %v1281_v24 }
 0x219   :  { %vm1080_vm9 = vcmp.ge.f32.partialorder %v5362_v23, 0.0  ;;  %v1144_v59 = vmul.f32 0.2, %v5362_v23  ;;  %v5364_v10 = vadd.f32 %v1009_v12, %v6797_v27  ;;  %v1011_v33 = vpop.f32.mrb[59].mxu0  ;;  %v1357_v37 = vadd.f32 %v6825_v48, %v1282_v16 }
 0x21a   :  { %vm1081_vm10 = vcmp.ge.f32.partialorder %v5363_v53, 0.0  ;;  %v1145_v32 = vmul.f32 0.2, %v5363_v53  ;;  %v5365_v22 = vadd.f32 %v1011_v33, %v6800_v28  ;;  %v7115_v29 = vpack.c.bf16 %v1356_v35, %v1354_v11 }
 0x21b   :  { %v1208_v31 = vsel %vm1080_vm9, %v5362_v23, %v1144_v59  ;;  %vm1082_vm11 = vcmp.ge.f32.partialorder %v5364_v10, 0.0  ;;  %v1146_v3 = vmul.f32 0.2, %v5364_v10  ;;  %v7117_v14 = vpack.c.bf16 %v1357_v37, %v1355_v26 }
 0x21c   :  { %v1283_v24 = vmul.f32 %v6813_v36, %v1208_v31  ;;  %v1209_v34 = vsel %vm1081_vm10, %v5363_v53, %v1145_v32  ;;  %vm1083_vm12 = vcmp.ge.f32.partialorder %v5365_v22, 0.0  ;;  %v1147_v20 = vmul.f32 0.2, %v5365_v22 }
 0x21d   :  { %v1284_v12 = vmul.f32 %v6817_v40, %v1209_v34  ;;  %v1210_v38 = vsel %vm1082_vm11, %v5364_v10, %v1146_v3  ;;  %2193 = vmatprep.mubr.bf16.mxu1 %v7117_v14  ;;  %v8103_v53 = vpack.c.bf16 %v6844_v4, %v6840_v0 }
 0x21e   :  { %v1285_v16 = vmul.f32 %v6813_v36, %v1210_v38  ;;  %v1211_v33 = vsel %vm1083_vm12, %v5365_v22, %v1147_v20  ;;  %v1015_v11 = vpop.f32.mrb[60].mxu0  ;;  %2194 = vmatmul.mubr.bf16.gmra.mrb[28].mxu1 %v7115_v29  ;;  %v7134_v38 = vadd.f32 %v6821_v43, %v1283_v24 }
 0x21f   :  { %v1286_v23 = vmul.f32 %v6817_v40, %v1211_v33  ;;  %v5366_v26 = vadd.f32 %v1015_v11, %v6797_v27  ;;  %v1017_v35 = vpop.f32.mrb[61].mxu0  ;;  %2236 = vmatprep.mubr.bf16.mxu1 %v8103_v53  ;;  %v7131_v37 = vadd.f32 %v6825_v48, %v1284_v12 }
 0x220   :  { %v5367_v59 = vadd.f32 %v1017_v35, %v6800_v28  ;;  %v1019_v10 = vpop.f32.mrb[62].mxu0  ;;  %v7137_v20 = vadd.f32 %v6821_v43, %v1285_v16  ;;  %v5820_v16 = vld [vmem:[%s8077_s2 + $0x200] ss:$8 sps:$4 sm:$0xff]  }
 0x221   :  { %vm1084_vm13 = vcmp.ge.f32.partialorder %v5366_v26, 0.0  ;;  %v1148_v32 = vmul.f32 0.2, %v5366_v26  ;;  %v5368_v22 = vadd.f32 %v1019_v10, %v6797_v27  ;;  %v1021_v31 = vpop.f32.mrb[63].mxu0  ;;  %v7141_v0 = vadd.f32 %v6825_v48, %v1286_v23 }
 0x222   :  { %vm1085_vm14 = vcmp.ge.f32.partialorder %v5367_v59, 0.0  ;;  %v1149_v4 = vmul.f32 0.2, %v5367_v59  ;;  %v5369_v3 = vadd.f32 %v1021_v31, %v6800_v28  ;;  %v1394_v34 = vpack.c.bf16 %v7137_v20, %v7134_v38  ;;  %v5825_v28 = vld [vmem:[%s8077_s2 + $0x214] ss:$8 sps:$4 sm:$0xff]  }
 0x223   :  { %v1212_v24 = vsel %vm1084_vm13, %v5366_v26, %v1148_v32  ;;  %vm1086_vm15 = vcmp.ge.f32.partialorder %v5368_v22, 0.0  ;;  %v1150_v12 = vmul.f32 0.2, %v5368_v22  ;;  %v1395_v27 = vpack.c.bf16 %v7141_v0, %v7131_v37  ;;  %v5865_v37 = vld [vmem:[%s8077_s2 + $0x2f0] ss:$8 sps:$4 sm:$0xff]  }
 0x224   :  { %v1287_v33 = vmul.f32 %v6813_v36, %v1212_v24  ;;  %v1213_v11 = vsel %vm1085_vm14, %v5367_v59, %v1149_v4  ;;  %vm1087_vm0 = vcmp.ge.f32.partialorder %v5369_v3, 0.0  ;;  %v1151_v23 = vmul.f32 0.2, %v5369_v3  ;;  %v5823_v4 = vld [vmem:[%s8077_s2 + $0x210] ss:$8 sps:$4 sm:$0xff]  }
 0x225   :  { %v1288_v26 = vmul.f32 %v6817_v40, %v1213_v11  ;;  %v1214_v35 = vsel %vm1086_vm15, %v5368_v22, %v1150_v12  ;;  %v8104_v32 = vpack.c.bf16 %v6836_v61, %v6833_v60  ;;  %v8105_v59 = vpack.c.bf16 %v6886_v7, %v6876_v62  ;;  %v5826_v7 = vld [vmem:[%s8077_s2 + $0x220] ss:$8 sps:$4 sm:$0xff]   ;;  %v5829_v12 = vld [vmem:[%s8077_s2 + $0x230] ss:$8 sps:$4 sm:$0xff]   ;;  %v5840_v11 = vld [vmem:[%s8077_s2 + $0x264] ss:$8 sps:$4 sm:$0xff]  }
 0x226   :  { %v1289_v53 = vmul.f32 %v6813_v36, %v1214_v35  ;;  %v1215_v10 = vsel %vm1087_vm0, %v5369_v3, %v1151_v23  ;;  %v5828_v36 = vld [vmem:[%s8077_s2 + $0x224] ss:$8 sps:$4 sm:$0xff]   ;;  %v7171_v22 = vadd.f32 %v6821_v43, %v1287_v33  ;;  %v8107_v24 = vpack.c.bf16 %v6928_v21, %v6918_v13  ;;  %v5835_v33 = vld [vmem:[%s8077_s2 + $0x250] ss:$8 sps:$4 sm:$0xff]   ;;  %v5873_v38 = vld [vmem:[%s8078_s3 + $0x14] ss:$8 sps:$4 sm:$0xff]  }
 0x227   :  { %2237 = vmatmul.mubr.bf16.vlgmr.msra.gmra.mrb[0].mxu1 %v8104_v32  ;;  %v1290_v31 = vmul.f32 %v6817_v40, %v1215_v10  ;;  %v7177_v40 = vadd.f32 %v6825_v48, %v1288_v26  ;;  %v8108_v13 = vpack.c.bf16 %v6924_v17, %v6921_v15  ;;  %v8109_v21 = vpack.c.bf16 %v6970_v54, %v6960_v44  ;;  %v5838_v15 = vld [vmem:[%s8077_s2 + $0x260] ss:$8 sps:$4 sm:$0xff]   ;;  %v5843_v17 = vld [vmem:[%s8077_s2 + $0x274] ss:$8 sps:$4 sm:$0xff]   ;;  %v5841_v23 = vld [vmem:[%s8077_s2 + $0x270] ss:$8 sps:$4 sm:$0xff]  }
 0x228   :  { %2246 = vmatprep.mubr.bf16.mxu1 %v8105_v59  ;;  %2318 = vmatpush1.bf16.msra.mxu1 %v5820_v16  ;;  %v7174_v60 = vadd.f32 %v6821_v43, %v1289_v53  ;;  %v5831_v43 = vld [vmem:[%s8077_s2 + $0x234] ss:$8 sps:$4 sm:$0xff]   ;;  %v5834_v16 = vld [vmem:[%s8077_s2 + $0x244] ss:$8 sps:$4 sm:$0xff]   ;;  %v8110_v44 = vpack.c.bf16 %v6966_v47, %v6963_v46  ;;  %v8111_v54 = vpack.c.bf16 %v7012_v56, %v7002_v39  ;;  %v5844_v46 = vld [vmem:[%s8077_s2 + $0x280] ss:$8 sps:$4 sm:$0xff]  }
 0x229   :  { %2319 = vmatprep.subr.bf16.mxu1 %v5825_v28  ;;  %v7180_v61 = vadd.f32 %v6825_v48, %v1290_v31  ;;  %v8106_v48 = vpack.c.bf16 %v6882_v1, %v6879_v63  ;;  %v5832_v63 = vld [vmem:[%s8077_s2 + $0x240] ss:$8 sps:$4 sm:$0xff]   ;;  %v5837_v1 = vld [vmem:[%s8077_s2 + $0x254] ss:$8 sps:$4 sm:$0xff]   ;;  %v5846_v28 = vld [vmem:[%s8077_s2 + $0x284] ss:$8 sps:$4 sm:$0xff]   ;;  %v8112_v39 = vpack.c.bf16 %v7008_v50, %v7005_v42  ;;  %v8113_v56 = vpack.c.bf16 %v7054_v55, %v7044_v25 }
 0x22a   :  { %v1396_v62 = vpack.c.bf16 %v7174_v60, %v7171_v22  ;;  %v5849_v47 = vld [vmem:[%s8077_s2 + $0x294] ss:$8 sps:$4 sm:$0xff]   ;;  %v5847_v26 = vld [vmem:[%s8077_s2 + $0x290] ss:$8 sps:$4 sm:$0xff]   ;;  %v5852_v35 = vld [vmem:[%s8077_s2 + $0x2a4] ss:$8 sps:$4 sm:$0xff]   ;;  %v8114_v25 = vpack.c.bf16 %v7050_v57, %v7047_v19  ;;  %v8115_v55 = vpack.c.bf16 %v7096_v30, %v7086_v6  ;;  %v8116_v6 = vpack.c.bf16 %v7092_v5, %v7089_v2 }
 0x22b   :  { %v1397_v3 = vpack.c.bf16 %v7180_v61, %v7177_v40  ;;  %v5850_v42 = vld [vmem:[%s8077_s2 + $0x2a0] ss:$8 sps:$4 sm:$0xff]   ;;  %v5855_v50 = vld [vmem:[%s8077_s2 + $0x2b4] ss:$8 sps:$4 sm:$0xff]   ;;  %v5853_v53 = vld [vmem:[%s8077_s2 + $0x2b0] ss:$8 sps:$4 sm:$0xff]  }
 0x22c   :  { %2320 = vmatpush1.bf16.msra.mxu1 %v5823_v4  ;;  %v5858_v10 = vld [vmem:[%s8077_s2 + $0x2c4] ss:$8 sps:$4 sm:$0xff]   ;;  %v5856_v19 = vld [vmem:[%s8077_s2 + $0x2c0] ss:$8 sps:$4 sm:$0xff]   ;;  %v5861_v57 = vld [vmem:[%s8077_s2 + $0x2d4] ss:$8 sps:$4 sm:$0xff]  }
 0x22d   :  { %2321 = vmatprep.subr.bf16.mxu1 %v5828_v36  ;;  %v5859_v30 = vld [vmem:[%s8077_s2 + $0x2d0] ss:$8 sps:$4 sm:$0xff]   ;;  %v5864_v32 = vld [vmem:[%s8077_s2 + $0x2e4] ss:$8 sps:$4 sm:$0xff]   ;;  %v5862_v2 = vld [vmem:[%s8077_s2 + $0x2e0] ss:$8 sps:$4 sm:$0xff]  }
 0x22e   :  { %v5867_v5 = vld [vmem:[%s8077_s2 + $0x2f4] ss:$8 sps:$4 sm:$0xff]   ;;  %v5870_v0 = vld [vmem:[%s8078_s3 + $0x4] ss:$8 sps:$4 sm:$0xff]   ;;  %v5880_v59 = vld [vmem:[%s8078_s3 + $0x40] ss:$8 sps:$4 sm:$0xff]  }
 0x22f   :  { %2247 = vmatmul.mubr.bf16.gmra.mrb[4].mxu1 %v8106_v48  ;;  %v5876_v20 = vld [vmem:[%s8078_s3 + $0x24] ss:$8 sps:$4 sm:$0xff]   ;;  %v5886_v36 = vld [vmem:[%s8078_s3 + $0x60] ss:$8 sps:$4 sm:$0xff]   ;;  %v5913_v40 = vld [vmem:[%s8078_s3 + $0xf0] ss:$8 sps:$4 sm:$0xff]  }
 0x230   :  { %2256 = vmatprep.mubr.bf16.mxu1 %v8107_v24  ;;  %2322 = vmatpush1.bf16.msra.mxu1 %v5826_v7  ;;  %v5882_v31 = vld [vmem:[%s8078_s3 + $0x44] ss:$8 sps:$4 sm:$0xff]   ;;  %v5895_v24 = vld [vmem:[%s8078_s3 + $0x90] ss:$8 sps:$4 sm:$0xff]   ;;  %v8120_v61 = vmov 0  }
 0x231   :  { %2323 = vmatprep.subr.bf16.mxu1 %v5831_v43  ;;  %v5888_v4 = vld [vmem:[%s8078_s3 + $0x64] ss:$8 sps:$4 sm:$0xff]   ;;  %v5892_v43 = vld [vmem:[%s8078_s3 + $0x80] ss:$8 sps:$4 sm:$0xff]   ;;  %v5921_v22 = vld [vmem:[%s8078_s3 + $0x114] ss:$8 sps:$4 sm:$0xff]  }
 0x232   :  { %v5894_v7 = vld [vmem:[%s8078_s3 + $0x84] ss:$8 sps:$4 sm:$0xff]   ;;  %v5919_v60 = vld [vmem:[%s8078_s3 + $0x110] ss:$8 sps:$4 sm:$0xff]  }
 0x233   :  { %v8118_v48 = vld [vmem:[#allocation12_spill] sm:$0xff] }
 0x234   :  { %2324 = vmatpush1.bf16.msra.mxu1 %v5829_v12  ;;  %v5900_v12 = vld [vmem:[%s8078_s3 + $0xa4] ss:$8 sps:$4 sm:$0xff]  }
 0x235   :  { %2325 = vmatprep.subr.bf16.mxu1 %v5834_v16  ;;  %v5898_v16 = vld [vmem:[%s8078_s3 + $0xa0] ss:$8 sps:$4 sm:$0xff]  }
 0x237   :  { %2257 = vmatmul.mubr.bf16.gmra.mrb[8].mxu1 %v8108_v13  ;;  %v5901_v13 = vld [vmem:[%s8078_s3 + $0xb0] ss:$8 sps:$4 sm:$0xff]  }
 0x238   :  { %2266 = vmatprep.mubr.bf16.mxu1 %v8109_v21  ;;  %2326 = vmatpush1.bf16.msra.mxu1 %v5832_v63  ;;  %v5903_v63 = vld [vmem:[%s8078_s3 + $0xb4] ss:$8 sps:$4 sm:$0xff]   ;;  %v5906_v21 = vld [vmem:[%s8078_s3 + $0xc4] ss:$8 sps:$4 sm:$0xff]  }
 0x239   :  { %2327 = vmatprep.subr.bf16.mxu1 %v5837_v1  ;;  %v8119_v1 = vld [vmem:[#allocation11_spill] sm:$0xff] }
 0x23c   :  { %2328 = vmatpush1.bf16.msra.mxu1 %v5835_v33  ;;  %v5904_v33 = vld [vmem:[%s8078_s3 + $0xc0] ss:$8 sps:$4 sm:$0xff]  }
 0x23d   :  { %2329 = vmatprep.subr.bf16.mxu1 %v5840_v11  ;;  %v5907_v11 = vld [vmem:[%s8078_s3 + $0xd0] ss:$8 sps:$4 sm:$0xff]  }
 0x23f   :  { %2267 = vmatmul.mubr.bf16.gmra.mrb[12].mxu1 %v8110_v44  ;;  %v5916_v44 = vld [vmem:[%s8078_s3 + $0x100] ss:$8 sps:$4 sm:$0xff]  }
 0x240   :  { %2276 = vmatprep.mubr.bf16.mxu1 %v8111_v54  ;;  %2330 = vmatpush1.bf16.msra.mxu1 %v5838_v15  ;;  %v5912_v15 = vld [vmem:[%s8078_s3 + $0xe4] ss:$8 sps:$4 sm:$0xff]   ;;  %v5922_v54 = vld [vmem:[%s8078_s3 + $0x120] ss:$8 sps:$4 sm:$0xff]  }
 0x241   :  { %2331 = vmatprep.subr.bf16.mxu1 %v5843_v17  ;;  %v5910_v17 = vld [vmem:[%s8078_s3 + $0xe0] ss:$8 sps:$4 sm:$0xff]  }
 0x244   :  { %2332 = vmatpush1.bf16.msra.mxu1 %v5841_v23  ;;  %v5927_v23 = vld [vmem:[%s8078_s3 + $0x134] ss:$8 sps:$4 sm:$0xff]  }
 0x245   :  { %2333 = vmatprep.subr.bf16.mxu1 %v5846_v28  ;;  %v5925_v28 = vld [vmem:[%s8078_s3 + $0x130] ss:$8 sps:$4 sm:$0xff]  }
 0x247   :  { %2277 = vmatmul.mubr.bf16.gmra.mrb[16].mxu1 %v8112_v39  ;;  %v5933_v39 = vld [vmem:[%s8078_s3 + $0x154] ss:$8 sps:$4 sm:$0xff]  }
 0x248   :  { %2286 = vmatprep.mubr.bf16.mxu1 %v8113_v56  ;;  %2334 = vmatpush1.bf16.msra.mxu1 %v5844_v46  ;;  %v5930_v46 = vld [vmem:[%s8078_s3 + $0x144] ss:$8 sps:$4 sm:$0xff]   ;;  %v5931_v56 = vld [vmem:[%s8078_s3 + $0x150] ss:$8 sps:$4 sm:$0xff]  }
 0x249   :  { %2335 = vmatprep.subr.bf16.mxu1 %v5849_v47  ;;  %v5928_v47 = vld [vmem:[%s8078_s3 + $0x140] ss:$8 sps:$4 sm:$0xff]  }
 0x24c   :  { %2336 = vmatpush1.bf16.msra.mxu1 %v5847_v26  ;;  %v5936_v26 = vld [vmem:[%s8078_s3 + $0x164] ss:$8 sps:$4 sm:$0xff]  }
 0x24d   :  { %2337 = vmatprep.subr.bf16.mxu1 %v5852_v35  ;;  %v5934_v35 = vld [vmem:[%s8078_s3 + $0x160] ss:$8 sps:$4 sm:$0xff]  }
 0x24f   :  { %2287 = vmatmul.mubr.bf16.gmra.mrb[20].mxu1 %v8114_v25  ;;  %v5942_v25 = vld [vmem:[%s8078_s3 + $0x184] ss:$8 sps:$4 sm:$0xff]  }
 0x250   :  { %2296 = vmatprep.mubr.bf16.mxu1 %v8115_v55  ;;  %2338 = vmatpush1.bf16.msra.mxu1 %v5850_v42  ;;  %v5939_v42 = vld [vmem:[%s8078_s3 + $0x174] ss:$8 sps:$4 sm:$0xff]   ;;  %v5940_v55 = vld [vmem:[%s8078_s3 + $0x180] ss:$8 sps:$4 sm:$0xff]  }
 0x251   :  { %2339 = vmatprep.subr.bf16.mxu1 %v5855_v50  ;;  %v5937_v50 = vld [vmem:[%s8078_s3 + $0x170] ss:$8 sps:$4 sm:$0xff]  }
 0x254   :  { %2340 = vmatpush1.bf16.msra.mxu1 %v5853_v53  ;;  %v5945_v53 = vld [vmem:[%s8078_s3 + $0x194] ss:$8 sps:$4 sm:$0xff]  }
 0x255   :  { %2341 = vmatprep.subr.bf16.mxu1 %v5858_v10  ;;  %v5943_v10 = vld [vmem:[%s8078_s3 + $0x190] ss:$8 sps:$4 sm:$0xff]  }
 0x257   :  { %2297 = vmatmul.mubr.bf16.gmra.mrb[24].mxu1 %v8116_v6  ;;  %v5951_v6 = vld [vmem:[%s8078_s3 + $0x1b4] ss:$8 sps:$4 sm:$0xff]  }
 0x258   :  { %2306 = vmatprep.mubr.bf16.mxu1 %v1395_v27  ;;  %2342 = vmatpush1.bf16.msra.mxu1 %v5856_v19  ;;  %v5868_v27 = vld [vmem:[%s8078_s3] ss:$8 sps:$4 sm:$0xff]   ;;  %v5948_v19 = vld [vmem:[%s8078_s3 + $0x1a4] ss:$8 sps:$4 sm:$0xff]  }
 0x259   :  { %2343 = vmatprep.subr.bf16.mxu1 %v5861_v57  ;;  %v5946_v57 = vld [vmem:[%s8078_s3 + $0x1a0] ss:$8 sps:$4 sm:$0xff]  }
 0x25c   :  { %2344 = vmatpush1.bf16.msra.mxu1 %v5859_v30  ;;  %v5949_v30 = vld [vmem:[%s8078_s3 + $0x1b0] ss:$8 sps:$4 sm:$0xff]  }
 0x25d   :  { %2345 = vmatprep.subr.bf16.mxu1 %v5864_v32  ;;  %v5954_v32 = vld [vmem:[%s8078_s3 + $0x1c4] ss:$8 sps:$4 sm:$0xff]  }
 0x25f   :  { %2307 = vmatmul.mubr.bf16.gmra.mrb[28].mxu1 %v1394_v34  ;;  %v5874_v34 = vld [vmem:[%s8078_s3 + $0x20] ss:$8 sps:$4 sm:$0xff]  }
 0x260   :  { %2346 = vmatpush1.bf16.msra.mxu1 %v5862_v2  ;;  %2349 = vmatprep.mubr.bf16.mxu1 %v6865_v45  ;;  %v5871_v45 = vld [vmem:[%s8078_s3 + $0x10] ss:$8 sps:$4 sm:$0xff]   ;;  %v5952_v2 = vld [vmem:[%s8078_s3 + $0x1c0] ss:$8 sps:$4 sm:$0xff]  }
 0x261   :  { %2347 = vmatprep.subr.bf16.mxu1 %v5867_v5  ;;  %v5957_v5 = vld [vmem:[%s8078_s3 + $0x1d4] ss:$8 sps:$4 sm:$0xff]  }
 0x264   :  { %2348 = vmatpush1.bf16.msra.mxu1 %v5865_v37  ;;  %v5955_v37 = vld [vmem:[%s8078_s3 + $0x1d0] ss:$8 sps:$4 sm:$0xff]  }
 0x265   :  { %3269 = vmatprep.subr.bf16.mxu1 %v5870_v0  ;;  %v5960_v0 = vld [vmem:[%s8078_s3 + $0x1e4] ss:$8 sps:$4 sm:$0xff]  }
 0x267   :  { %2350 = vmatmul.mubr.bf16.vlgmr.msra.gmra.mrb[0].mxu1 %v6863_v41  ;;  %v5879_v41 = vld [vmem:[%s8078_s3 + $0x34] ss:$8 sps:$4 sm:$0xff]  }
 0x268   :  { %2359 = vmatprep.mubr.bf16.mxu1 %v6907_v52  ;;  %3270 = vmatpush1.bf16.msra.mxu1 %v5868_v27  ;;  %v5877_v52 = vld [vmem:[%s8078_s3 + $0x30] ss:$8 sps:$4 sm:$0xff]   ;;  %v5958_v27 = vld [vmem:[%s8078_s3 + $0x1e0] ss:$8 sps:$4 sm:$0xff]  }
 0x269   :  { %3271 = vmatprep.subr.bf16.mxu1 %v5873_v38  ;;  %v5963_v38 = vld [vmem:[%s8078_s3 + $0x1f4] ss:$8 sps:$4 sm:$0xff]  }
 0x26c   :  { %3272 = vmatpush1.bf16.msra.mxu1 %v5871_v45  ;;  %v5961_v45 = vld [vmem:[%s8078_s3 + $0x1f0] ss:$8 sps:$4 sm:$0xff]  }
 0x26d   :  { %3273 = vmatprep.subr.bf16.mxu1 %v5876_v20  ;;  %v5966_v20 = vld [vmem:[%s8078_s3 + $0x204] ss:$8 sps:$4 sm:$0xff]  }
 0x26f   :  { %2360 = vmatmul.mubr.bf16.gmra.mrb[4].mxu1 %v6905_v49  ;;  %v5885_v49 = vld [vmem:[%s8078_s3 + $0x54] ss:$8 sps:$4 sm:$0xff]  }
 0x270   :  { %2369 = vmatprep.mubr.bf16.mxu1 %v6949_v18  ;;  %3274 = vmatpush1.bf16.msra.mxu1 %v5874_v34  ;;  %v5883_v18 = vld [vmem:[%s8078_s3 + $0x50] ss:$8 sps:$4 sm:$0xff]   ;;  %v1597_v34 = vld [vmem:[%s8081_s6] sm:$0x3] }
 0x271   :  { %3275 = vmatprep.subr.bf16.mxu1 %v5879_v41  ;;  %v8121_v41 = vld [vmem:[#allocation8_spill] sm:$0xff] }
 0x274   :  { %3276 = vmatpush1.bf16.msra.mxu1 %v5877_v52  ;;  %v7527_v52 = vrot.slane %v1597_v34, %v8121_v41 }
 0x275   :  { %3277 = vmatprep.subr.bf16.mxu1 %v5882_v31  ;;  %v8122_v31 = vld [vmem:[#allocation9_spill] sm:$0xff] }
 0x277   :  { %2370 = vmatmul.mubr.bf16.gmra.mrb[8].mxu1 %v6947_v8  ;;  %v5891_v8 = vld [vmem:[%s8078_s3 + $0x74] ss:$8 sps:$4 sm:$0xff]  }
 0x278   :  { %2379 = vmatprep.mubr.bf16.mxu1 %v6991_v9  ;;  %3278 = vmatpush1.bf16.msra.mxu1 %v5880_v59  ;;  %v5889_v9 = vld [vmem:[%s8078_s3 + $0x70] ss:$8 sps:$4 sm:$0xff]   ;;  %v7530_v59 = vrot.slane %v1597_v34, %v8122_v31 }
 0x279   :  { %3279 = vmatprep.subr.bf16.mxu1 %v5885_v49  ;;  %v1598_v49 = vld [vmem:[%s8081_s6 + $0x2] sm:$0x3] }
 0x27c   :  { %3280 = vmatpush1.bf16.msra.mxu1 %v5883_v18 }
 0x27d   :  { %3281 = vmatprep.subr.bf16.mxu1 %v5888_v4  ;;  %v1599_v4 = vld [vmem:[%s8081_s6 + $0x4] sm:$0x3] }
 0x27f   :  { %2380 = vmatmul.mubr.bf16.gmra.mrb[12].mxu1 %v6989_v58  ;;  %v5897_v58 = vld [vmem:[%s8078_s3 + $0x94] ss:$8 sps:$4 sm:$0xff]  }
 0x280   :  { %2389 = vmatprep.mubr.bf16.mxu1 %v7033_v51  ;;  %3282 = vmatpush1.bf16.msra.mxu1 %v5886_v36  ;;  %v8117_v51 = vld [vmem:[#allocation10_spill] sm:$0xff] }
 0x281   :  { %3283 = vmatprep.subr.bf16.mxu1 %v5891_v8 }
 0x284   :  { %3284 = vmatpush1.bf16.msra.mxu1 %v5889_v9  ;;  %v7540_v9 = vrot.slane %v1598_v49, %v8121_v41 }
 0x285   :  { %3285 = vmatprep.subr.bf16.mxu1 %v5894_v7 }
 0x287   :  { %2390 = vmatmul.mubr.bf16.gmra.mrb[16].mxu1 %v8117_v51  ;;  %v7544_v51 = vrot.slane %v1598_v49, %v8122_v31 }
 0x288   :  { %2399 = vmatprep.mubr.bf16.mxu1 %v8118_v48  ;;  %3286 = vmatpush1.bf16.msra.mxu1 %v5892_v43 }
 0x289   :  { %3287 = vmatprep.subr.bf16.mxu1 %v5897_v58 }
 0x28c   :  { %3288 = vmatpush1.bf16.msra.mxu1 %v5895_v24 }
 0x28d   :  { %3289 = vmatprep.subr.bf16.mxu1 %v5900_v12  ;;  %v7548_v12 = vrot.slane %v1599_v4, %v8121_v41 }
 0x28f   :  { %2400 = vmatmul.mubr.bf16.gmra.mrb[20].mxu1 %v8119_v1 }
 0x290   :  { %2409 = vmatprep.mubr.bf16.mxu1 %v7117_v14  ;;  %3290 = vmatpush1.bf16.msra.mxu1 %v5898_v16  ;;  %v5909_v14 = vld [vmem:[%s8078_s3 + $0xd4] ss:$8 sps:$4 sm:$0xff]  }
 0x291   :  { %3291 = vmatprep.subr.bf16.mxu1 %v5903_v63 }
 0x294   :  { %3292 = vmatpush1.bf16.msra.mxu1 %v5901_v13 }
 0x295   :  { %3293 = vmatprep.subr.bf16.mxu1 %v5906_v21  ;;  %v7552_v21 = vrot.slane %v1599_v4, %v8122_v31 }
 0x297   :  { %2410 = vmatmul.mubr.bf16.gmra.mrb[24].mxu1 %v7115_v29  ;;  %v5915_v29 = vld [vmem:[%s8078_s3 + $0xf4] ss:$8 sps:$4 sm:$0xff]  }
 0x298   :  { %2419 = vmatprep.mubr.bf16.mxu1 %v1397_v3  ;;  %3294 = vmatpush1.bf16.msra.mxu1 %v5904_v33  ;;  %v5918_v3 = vld [vmem:[%s8078_s3 + $0x104] ss:$8 sps:$4 sm:$0xff]  }
 0x299   :  { %3295 = vmatprep.subr.bf16.mxu1 %v5909_v14 }
 0x29c   :  { %3296 = vmatpush1.bf16.msra.mxu1 %v5907_v11 }
 0x29d   :  { %3297 = vmatprep.subr.bf16.mxu1 %v5912_v15 }
 0x29f   :  { %2420 = vmatmul.mubr.bf16.gmra.mrb[28].mxu1 %v1396_v62  ;;  %v5924_v62 = vld [vmem:[%s8078_s3 + $0x124] ss:$8 sps:$4 sm:$0xff]  }
 0x2a0   :  { %3298 = vmatpush1.bf16.msra.mxu1 %v5910_v17  ;;  %3301 = vmatprep.mubr.bf16.mxu1 %v8120_v61 }
 0x2a1   :  { %3299 = vmatprep.subr.bf16.mxu1 %v5915_v29 }
 0x2a4   :  { %3300 = vmatpush1.bf16.msra.mxu1 %v5913_v40 }
 0x2a5   :  { %3342 = vmatprep.subr.bf16.mxu1 %v5918_v3 }
 0x2a7   :  { %3302 = vmatmul.mubr.bf16.vlgmr.msra.gmra.mrb[32].mxu1 %v8120_v61 }
 0x2a8   :  { %3343 = vmatpush1.bf16.msra.mxu1 %v5916_v44 }
 0x2a9   :  { %3344 = vmatprep.subr.bf16.mxu1 %v5921_v22 }
 0x2ac   :  { %3345 = vmatpush1.bf16.msra.mxu1 %v5919_v60 }
 0x2ad   :  { %3346 = vmatprep.subr.bf16.mxu1 %v5924_v62 }
 0x2b0   :  { %3347 = vmatpush1.bf16.msra.mxu1 %v5922_v54 }
 0x2b1   :  { %3348 = vmatprep.subr.bf16.mxu1 %v5927_v23 }
 0x2b4   :  { %3349 = vmatpush1.bf16.msra.mxu1 %v5925_v28 }
 0x2b5   :  { %3350 = vmatprep.subr.bf16.mxu1 %v5930_v46 }
 0x2b8   :  { %3351 = vmatpush1.bf16.msra.mxu1 %v5928_v47 }
 0x2b9   :  { %3352 = vmatprep.subr.bf16.mxu1 %v5933_v39 }
 0x2bc   :  { %3353 = vmatpush1.bf16.msra.mxu1 %v5931_v56 }
 0x2bd   :  { %3354 = vmatprep.subr.bf16.mxu1 %v5936_v26 }
 0x2c0   :  { %3355 = vmatpush1.bf16.msra.mxu1 %v5934_v35 }
 0x2c1   :  { %3356 = vmatprep.subr.bf16.mxu1 %v5939_v42 }
 0x2c4   :  { %3357 = vmatpush1.bf16.msra.mxu1 %v5937_v50 }
 0x2c5   :  { %3358 = vmatprep.subr.bf16.mxu1 %v5942_v25 }
 0x2c8   :  { %3359 = vmatpush1.bf16.msra.mxu1 %v5940_v55 }
 0x2c9   :  { %3360 = vmatprep.subr.bf16.mxu1 %v5945_v53 }
 0x2cc   :  { %3361 = vmatpush1.bf16.msra.mxu1 %v5943_v10 }
 0x2cd   :  { %3362 = vmatprep.subr.bf16.mxu1 %v5948_v19 }
 0x2d0   :  { %3363 = vmatpush1.bf16.msra.mxu1 %v5946_v57 }
 0x2d1   :  { %3364 = vmatprep.subr.bf16.mxu1 %v5951_v6 }
 0x2d4   :  { %3365 = vmatpush1.bf16.msra.mxu1 %v5949_v30 }
 0x2d5   :  { %3366 = vmatprep.subr.bf16.mxu1 %v5954_v32 }
 0x2d8   :  { %3367 = vmatpush1.bf16.msra.mxu1 %v5952_v2 }
 0x2d9   :  { %3368 = vmatprep.subr.bf16.mxu1 %v5957_v5 }
 0x2dc   :  { %3369 = vmatpush1.bf16.msra.mxu1 %v5955_v37 }
 0x2dd   :  { %3370 = vmatprep.subr.bf16.mxu1 %v5960_v0 }
 0x2e0   :  { %3371 = vmatpush1.bf16.msra.mxu1 %v5958_v27 }
 0x2e1   :  { %3372 = vmatprep.subr.bf16.mxu1 %v5963_v38 }
 0x2e4   :  { %3373 = vmatpush1.bf16.msra.mxu1 %v5961_v45 }
 0x2e5   :  { %3415 = vmatprep.subr.bf16.mxu1 %v5966_v20 }
 0x33a   :  { %v2351_v18 = vpop.f32.mrb[0].mxu1 }
 0x33b   :  { %v5370_v36 = vadd.f32 %v2351_v18, %v7527_v52  ;;  %v2353_v8 = vpop.f32.mrb[1].mxu1 }
 0x33c   :  { %v5371_v7 = vadd.f32 %v2353_v8, %v7530_v59  ;;  %v2355_v43 = vpop.f32.mrb[2].mxu1 }
 0x33d   :  { %vm2430_vm1 = vcmp.ge.f32.partialorder %v5370_v36, 0.0  ;;  %v2462_v58 = vmul.f32 0.2, %v5370_v36  ;;  %v5372_v48 = vadd.f32 %v2355_v43, %v7527_v52  ;;  %v2357_v24 = vpop.f32.mrb[3].mxu1 }
 0x33e   :  { %vm2431_vm2 = vcmp.ge.f32.partialorder %v5371_v7, 0.0  ;;  %v2463_v16 = vmul.f32 0.2, %v5371_v7  ;;  %v5373_v63 = vadd.f32 %v2357_v24, %v7530_v59 }
 0x33f   :  { %v2494_v1 = vsel %vm2430_vm1, %v5370_v36, %v2462_v58  ;;  %vm2432_vm3 = vcmp.ge.f32.partialorder %v5372_v48, 0.0  ;;  %v2464_v13 = vmul.f32 0.2, %v5372_v48 }
 0x340   :  { %v2537_v33 = vmul.f32 %v7540_v9, %v2494_v1  ;;  %v2495_v14 = vsel %vm2431_vm2, %v5371_v7, %v2463_v16  ;;  %vm2433_vm4 = vcmp.ge.f32.partialorder %v5373_v63, 0.0  ;;  %v2465_v11 = vmul.f32 0.2, %v5373_v63 }
 0x341   :  { %v2538_v15 = vmul.f32 %v7544_v51, %v2495_v14  ;;  %v2496_v17 = vsel %vm2432_vm3, %v5372_v48, %v2464_v13 }
 0x342   :  { %v2539_v29 = vmul.f32 %v7540_v9, %v2496_v17  ;;  %v2497_v40 = vsel %vm2433_vm4, %v5373_v63, %v2465_v11  ;;  %v2361_v3 = vpop.f32.mrb[4].mxu1  ;;  %v7560_v62 = vadd.f32 %v7548_v12, %v2537_v33 }
 0x343   :  { %v2540_v44 = vmul.f32 %v7544_v51, %v2497_v40  ;;  %v5374_v22 = vadd.f32 %v2361_v3, %v7527_v52  ;;  %v2363_v60 = vpop.f32.mrb[5].mxu1  ;;  %v7567_v46 = vadd.f32 %v7552_v21, %v2538_v15  ;;  %v6014_v40 = vld [vmem:[#allocation5 + $0x4] ss:$8 sps:$4 sm:$0xff]  }
 0x344   :  { %v7563_v54 = vadd.f32 %v7548_v12, %v2539_v29  ;;  %v5375_v23 = vadd.f32 %v2363_v60, %v7530_v59  ;;  %v2365_v28 = vpop.f32.mrb[6].mxu1  ;;  %v6012_v29 = vld [vmem:[#allocation5] ss:$8 sps:$4 sm:$0xff]   ;;  %v6017_v60 = vld [vmem:[#allocation5 + $0x14] ss:$8 sps:$4 sm:$0xff]   ;;  %4213 = vmatprep.subr.bf16.mxu0 %v6014_v40 }
 0x345   :  { %vm2434_vm5 = vcmp.ge.f32.partialorder %v5374_v22, 0.0  ;;  %v2466_v47 = vmul.f32 0.2, %v5374_v22  ;;  %v5376_v39 = vadd.f32 %v2365_v28, %v7527_v52  ;;  %v2367_v56 = vpop.f32.mrb[7].mxu1  ;;  %v7571_v26 = vadd.f32 %v7552_v21, %v2540_v44  ;;  %4214 = vmatpush1.bf16.msra.mxu0 %v6012_v29 }
 0x346   :  { %v2612_v35 = vpack.c.bf16 %v7563_v54, %v7560_v62  ;;  %vm2435_vm6 = vcmp.ge.f32.partialorder %v5375_v23, 0.0  ;;  %v2467_v42 = vmul.f32 0.2, %v5375_v23  ;;  %v5377_v50 = vadd.f32 %v2367_v56, %v7530_v59  ;;  %4215 = vmatprep.subr.bf16.mxu0 %v6017_v60  ;;  %v5972_v62 = vld [vmem:[%s8078_s3 + $0x224] ss:$8 sps:$4 sm:$0xff]  }
 0x347   :  { %v2498_v25 = vsel %vm2434_vm5, %v5374_v22, %v2466_v47  ;;  %vm2436_vm7 = vcmp.ge.f32.partialorder %v5376_v39, 0.0  ;;  %v2468_v55 = vmul.f32 0.2, %v5376_v39  ;;  %v2613_v53 = vpack.c.bf16 %v7571_v26, %v7567_v46  ;;  %v6039_v46 = vld [vmem:[#allocation5 + $0x90] ss:$8 sps:$4 sm:$0xff]  }
 0x348   :  { %v2541_v10 = vmul.f32 %v7540_v9, %v2498_v25  ;;  %v2499_v19 = vsel %vm2435_vm6, %v5375_v23, %v2467_v42  ;;  %vm2437_vm8 = vcmp.ge.f32.partialorder %v5377_v50, 0.0  ;;  %v2469_v57 = vmul.f32 0.2, %v5377_v50 }
 0x349   :  { %v2542_v6 = vmul.f32 %v7544_v51, %v2499_v19  ;;  %v2500_v30 = vsel %vm2436_vm7, %v5376_v39, %v2468_v55 }
 0x34a   :  { %v2543_v32 = vmul.f32 %v7540_v9, %v2500_v30  ;;  %v2501_v2 = vsel %vm2437_vm8, %v5377_v50, %v2469_v57  ;;  %v2371_v5 = vpop.f32.mrb[8].mxu1  ;;  %v2584_v34 = vadd.f32 %v7548_v12, %v2541_v10  ;;  %v6015_v10 = vld [vmem:[#allocation5 + $0x10] ss:$8 sps:$4 sm:$0xff]   ;;  %v6020_v30 = vld [vmem:[#allocation5 + $0x24] ss:$8 sps:$4 sm:$0xff]  }
 0x34b   :  { %v2544_v37 = vmul.f32 %v7544_v51, %v2501_v2  ;;  %v5378_v0 = vadd.f32 %v2371_v5, %v7527_v52  ;;  %v2373_v27 = vpop.f32.mrb[9].mxu1  ;;  %v2585_v20 = vadd.f32 %v7552_v21, %v2542_v6  ;;  %4216 = vmatpush1.bf16.msra.mxu0 %v6015_v10  ;;  %v6024_v10 = vld [vmem:[#allocation5 + $0x40] ss:$8 sps:$4 sm:$0xff]  }
 0x34c   :  { %v5379_v38 = vadd.f32 %v2373_v27, %v7530_v59  ;;  %v2375_v45 = vpop.f32.mrb[10].mxu1  ;;  %v2586_v49 = vadd.f32 %v7548_v12, %v2543_v32  ;;  %4217 = vmatprep.subr.bf16.mxu0 %v6020_v30 }
 0x34d   :  { %vm2438_vm9 = vcmp.ge.f32.partialorder %v5378_v0, 0.0  ;;  %v2470_v18 = vmul.f32 0.2, %v5378_v0  ;;  %v5380_v4 = vadd.f32 %v2375_v45, %v7527_v52  ;;  %v2377_v36 = vpop.f32.mrb[11].mxu1  ;;  %v2587_v8 = vadd.f32 %v7552_v21, %v2544_v37 }
 0x34e   :  { %vm2439_vm10 = vcmp.ge.f32.partialorder %v5379_v38, 0.0  ;;  %v2471_v7 = vmul.f32 0.2, %v5379_v38  ;;  %v5381_v43 = vadd.f32 %v2377_v36, %v7530_v59  ;;  %v7590_v58 = vpack.c.bf16 %v2586_v49, %v2584_v34 }
 0x34f   :  { %v2502_v48 = vsel %vm2438_vm9, %v5378_v0, %v2470_v18  ;;  %vm2440_vm11 = vcmp.ge.f32.partialorder %v5380_v4, 0.0  ;;  %v2472_v24 = vmul.f32 0.2, %v5380_v4  ;;  %v7592_v16 = vpack.c.bf16 %v2587_v8, %v2585_v20  ;;  %v6018_v20 = vld [vmem:[#allocation5 + $0x20] ss:$8 sps:$4 sm:$0xff]  }
 0x350   :  { %v2545_v63 = vmul.f32 %v7540_v9, %v2502_v48  ;;  %v2503_v1 = vsel %vm2439_vm10, %v5379_v38, %v2471_v7  ;;  %vm2441_vm12 = vcmp.ge.f32.partialorder %v5381_v43, 0.0  ;;  %v2473_v13 = vmul.f32 0.2, %v5381_v43  ;;  %4218 = vmatpush1.bf16.msra.mxu0 %v6018_v20 }
 0x351   :  { %v2546_v33 = vmul.f32 %v7544_v51, %v2503_v1  ;;  %v2504_v14 = vsel %vm2440_vm11, %v5380_v4, %v2472_v24  ;;  %3311 = vmatprep.mubr.bf16.mxu1 %v7592_v16  ;;  %v6023_v4 = vld [vmem:[#allocation5 + $0x34] ss:$8 sps:$4 sm:$0xff]  }
 0x352   :  { %v2547_v11 = vmul.f32 %v7540_v9, %v2504_v14  ;;  %v2505_v15 = vsel %vm2441_vm12, %v5381_v43, %v2473_v13  ;;  %v2381_v17 = vpop.f32.mrb[12].mxu1  ;;  %3312 = vmatmul.mubr.bf16.gmra.mrb[36].mxu1 %v7590_v58  ;;  %v7606_v39 = vadd.f32 %v7548_v12, %v2545_v63  ;;  %4219 = vmatprep.subr.bf16.mxu0 %v6023_v4 }
 0x353   :  { %v2548_v3 = vmul.f32 %v7544_v51, %v2505_v15  ;;  %v5382_v44 = vadd.f32 %v2381_v17, %v7527_v52  ;;  %v2383_v22 = vpop.f32.mrb[13].mxu1  ;;  %v7603_v47 = vadd.f32 %v7552_v21, %v2546_v33  ;;  %v6021_v15 = vld [vmem:[#allocation5 + $0x30] ss:$8 sps:$4 sm:$0xff]  }
 0x354   :  { %v5383_v23 = vadd.f32 %v2383_v22, %v7530_v59  ;;  %v2385_v28 = vpop.f32.mrb[14].mxu1  ;;  %v7609_v56 = vadd.f32 %v7548_v12, %v2547_v11  ;;  %4220 = vmatpush1.bf16.msra.mxu0 %v6021_v15 }
 0x355   :  { %vm2442_vm13 = vcmp.ge.f32.partialorder %v5382_v44, 0.0  ;;  %v2474_v42 = vmul.f32 0.2, %v5382_v44  ;;  %v5384_v50 = vadd.f32 %v2385_v28, %v7527_v52  ;;  %v2387_v25 = vpop.f32.mrb[15].mxu1  ;;  %v7613_v55 = vadd.f32 %v7552_v21, %v2548_v3  ;;  %v6026_v3 = vld [vmem:[#allocation5 + $0x44] ss:$8 sps:$4 sm:$0xff]  }
 0x356   :  { %vm2443_vm14 = vcmp.ge.f32.partialorder %v5383_v23, 0.0  ;;  %v2475_v19 = vmul.f32 0.2, %v5383_v23  ;;  %v5385_v57 = vadd.f32 %v2387_v25, %v7530_v59  ;;  %v2616_v6 = vpack.c.bf16 %v7609_v56, %v7606_v39  ;;  %4221 = vmatprep.subr.bf16.mxu0 %v6026_v3  ;;  %v6056_v39 = vld [vmem:[#allocation5 + $0xe4] ss:$8 sps:$4 sm:$0xff]  }
 0x357   :  { %v2506_v32 = vsel %vm2442_vm13, %v5382_v44, %v2474_v42  ;;  %vm2444_vm15 = vcmp.ge.f32.partialorder %v5384_v50, 0.0  ;;  %v2476_v2 = vmul.f32 0.2, %v5384_v50  ;;  %v2617_v5 = vpack.c.bf16 %v7613_v55, %v7603_v47  ;;  %v6050_v55 = vld [vmem:[#allocation5 + $0xc4] ss:$8 sps:$4 sm:$0xff]  }
 0x358   :  { %v2549_v37 = vmul.f32 %v7540_v9, %v2506_v32  ;;  %v2507_v0 = vsel %vm2443_vm14, %v5383_v23, %v2475_v19  ;;  %vm2445_vm0 = vcmp.ge.f32.partialorder %v5385_v57, 0.0  ;;  %v2477_v27 = vmul.f32 0.2, %v5385_v57  ;;  %v6029_v32 = vld [vmem:[#allocation5 + $0x54] ss:$8 sps:$4 sm:$0xff]   ;;  %4222 = vmatpush1.bf16.msra.mxu0 %v6024_v10 }
 0x359   :  { %v2550_v38 = vmul.f32 %v7544_v51, %v2507_v0  ;;  %v2508_v45 = vsel %vm2444_vm15, %v5384_v50, %v2476_v2  ;;  %4223 = vmatprep.subr.bf16.mxu0 %v6029_v32  ;;  %v5976_v56 = vld [vmem:[%s8078_s3 + $0x240] ss:$8 sps:$4 sm:$0xff]  }
 0x35a   :  { %v2551_v34 = vmul.f32 %v7540_v9, %v2508_v45  ;;  %v2509_v49 = vsel %vm2445_vm0, %v5385_v57, %v2477_v27  ;;  %v2391_v18 = vpop.f32.mrb[16].mxu1  ;;  %v2592_v63 = vadd.f32 %v7548_v12, %v2549_v37 }
 0x35b   :  { %v2552_v36 = vmul.f32 %v7544_v51, %v2509_v49  ;;  %v5386_v8 = vadd.f32 %v2391_v18, %v7527_v52  ;;  %v2393_v7 = vpop.f32.mrb[17].mxu1  ;;  %v2593_v24 = vadd.f32 %v7552_v21, %v2550_v38 }
 0x35c   :  { %v5387_v43 = vadd.f32 %v2393_v7, %v7530_v59  ;;  %v2395_v48 = vpop.f32.mrb[18].mxu1  ;;  %v2594_v1 = vadd.f32 %v7548_v12, %v2551_v34 }
 0x35d   :  { %vm2446_vm1 = vcmp.ge.f32.partialorder %v5386_v8, 0.0  ;;  %v2478_v13 = vmul.f32 0.2, %v5386_v8  ;;  %v5388_v33 = vadd.f32 %v2395_v48, %v7527_v52  ;;  %v2397_v14 = vpop.f32.mrb[19].mxu1  ;;  %v2595_v11 = vadd.f32 %v7552_v21, %v2552_v36 }
 0x35e   :  { %vm2447_vm2 = vcmp.ge.f32.partialorder %v5387_v43, 0.0  ;;  %v2479_v17 = vmul.f32 0.2, %v5387_v43  ;;  %v5389_v29 = vadd.f32 %v2397_v14, %v7530_v59  ;;  %v7632_v40 = vpack.c.bf16 %v2594_v1, %v2592_v63 }
 0x35f   :  { %v2510_v44 = vsel %vm2446_vm1, %v5386_v8, %v2478_v13  ;;  %vm2448_vm3 = vcmp.ge.f32.partialorder %v5388_v33, 0.0  ;;  %v2480_v22 = vmul.f32 0.2, %v5388_v33  ;;  %v7634_v60 = vpack.c.bf16 %v2595_v11, %v2593_v24  ;;  %v6027_v8 = vld [vmem:[#allocation5 + $0x50] ss:$8 sps:$4 sm:$0xff]  }
 0x360   :  { %v2553_v23 = vmul.f32 %v7540_v9, %v2510_v44  ;;  %v2511_v28 = vsel %vm2447_vm2, %v5387_v43, %v2479_v17  ;;  %vm2449_vm4 = vcmp.ge.f32.partialorder %v5389_v29, 0.0  ;;  %v2481_v42 = vmul.f32 0.2, %v5389_v29  ;;  %v6032_v24 = vld [vmem:[#allocation5 + $0x64] ss:$8 sps:$4 sm:$0xff]   ;;  %4224 = vmatpush1.bf16.msra.mxu0 %v6027_v8 }
 0x361   :  { %v2554_v50 = vmul.f32 %v7544_v51, %v2511_v28  ;;  %v2512_v25 = vsel %vm2448_vm3, %v5388_v33, %v2480_v22  ;;  %3321 = vmatprep.mubr.bf16.mxu1 %v7634_v60  ;;  %4225 = vmatprep.subr.bf16.mxu0 %v6032_v24 }
 0x362   :  { %v2555_v19 = vmul.f32 %v7540_v9, %v2512_v25  ;;  %v2513_v57 = vsel %vm2449_vm4, %v5389_v29, %v2481_v42  ;;  %v2401_v30 = vpop.f32.mrb[20].mxu1  ;;  %3322 = vmatmul.mubr.bf16.gmra.mrb[40].mxu1 %v7632_v40  ;;  %v7648_v20 = vadd.f32 %v7548_v12, %v2553_v23  ;;  %v6030_v29 = vld [vmem:[#allocation5 + $0x60] ss:$8 sps:$4 sm:$0xff]   ;;  %v6035_v23 = vld [vmem:[#allocation5 + $0x74] ss:$8 sps:$4 sm:$0xff]  }
 0x363   :  { %v2556_v2 = vmul.f32 %v7544_v51, %v2513_v57  ;;  %v5390_v37 = vadd.f32 %v2401_v30, %v7527_v52  ;;  %v2403_v0 = vpop.f32.mrb[21].mxu1  ;;  %v7645_v45 = vadd.f32 %v7552_v21, %v2554_v50 }
 0x364   :  { %v5391_v27 = vadd.f32 %v2403_v0, %v7530_v59  ;;  %v2405_v38 = vpop.f32.mrb[22].mxu1  ;;  %v7651_v34 = vadd.f32 %v7548_v12, %v2555_v19  ;;  %4226 = vmatpush1.bf16.msra.mxu0 %v6030_v29 }
 0x365   :  { %vm2450_vm5 = vcmp.ge.f32.partialorder %v5390_v37, 0.0  ;;  %v2482_v49 = vmul.f32 0.2, %v5390_v37  ;;  %v5392_v18 = vadd.f32 %v2405_v38, %v7527_v52  ;;  %v2407_v4 = vpop.f32.mrb[23].mxu1  ;;  %v7655_v36 = vadd.f32 %v7552_v21, %v2556_v2  ;;  %4227 = vmatprep.subr.bf16.mxu0 %v6035_v23 }
 0x366   :  { %vm2451_vm6 = vcmp.ge.f32.partialorder %v5391_v27, 0.0  ;;  %v2483_v7 = vmul.f32 0.2, %v5391_v27  ;;  %v5393_v43 = vadd.f32 %v2407_v4, %v7530_v59  ;;  %v2620_v48 = vpack.c.bf16 %v7651_v34, %v7648_v20  ;;  %v6038_v4 = vld [vmem:[#allocation5 + $0x84] ss:$8 sps:$4 sm:$0xff]  }
 0x367   :  { %v2514_v63 = vsel %vm2450_vm5, %v5390_v37, %v2482_v49  ;;  %vm2452_vm7 = vcmp.ge.f32.partialorder %v5392_v18, 0.0  ;;  %v2484_v1 = vmul.f32 0.2, %v5392_v18  ;;  %v2621_v13 = vpack.c.bf16 %v7655_v36, %v7645_v45  ;;  %v6054_v45 = vld [vmem:[#allocation5 + $0xe0] ss:$8 sps:$4 sm:$0xff]  }
 0x368   :  { %v2557_v33 = vmul.f32 %v7540_v9, %v2514_v63  ;;  %v2515_v14 = vsel %vm2451_vm6, %v5391_v27, %v2483_v7  ;;  %vm2453_vm8 = vcmp.ge.f32.partialorder %v5393_v43, 0.0  ;;  %v2485_v11 = vmul.f32 0.2, %v5393_v43  ;;  %v6033_v27 = vld [vmem:[#allocation5 + $0x70] ss:$8 sps:$4 sm:$0xff]  }
 0x369   :  { %v2558_v15 = vmul.f32 %v7544_v51, %v2515_v14  ;;  %v2516_v17 = vsel %vm2452_vm7, %v5392_v18, %v2484_v1  ;;  %4228 = vmatpush1.bf16.msra.mxu0 %v6033_v27  ;;  %v6059_v36 = vld [vmem:[#allocation5 + $0xf4] ss:$8 sps:$4 sm:$0xff]   ;;  %v5982_v20 = vld [vmem:[%s8078_s3 + $0x260] ss:$8 sps:$4 sm:$0xff]  }
 0x36a   :  { %v2559_v3 = vmul.f32 %v7540_v9, %v2516_v17  ;;  %v2517_v44 = vsel %vm2453_vm8, %v5393_v43, %v2485_v11  ;;  %v2411_v22 = vpop.f32.mrb[24].mxu1  ;;  %v2600_v57 = vadd.f32 %v7548_v12, %v2557_v33  ;;  %v6036_v11 = vld [vmem:[#allocation5 + $0x80] ss:$8 sps:$4 sm:$0xff]   ;;  %4229 = vmatprep.subr.bf16.mxu0 %v6038_v4  ;;  %v5987_v34 = vld [vmem:[%s8078_s3 + $0x274] ss:$8 sps:$4 sm:$0xff]  }
 0x36b   :  { %v2560_v28 = vmul.f32 %v7544_v51, %v2517_v44  ;;  %v5394_v42 = vadd.f32 %v2411_v22, %v7527_v52  ;;  %v2413_v50 = vpop.f32.mrb[25].mxu1  ;;  %v2601_v19 = vadd.f32 %v7552_v21, %v2558_v15  ;;  %v6041_v44 = vld [vmem:[#allocation5 + $0x94] ss:$8 sps:$4 sm:$0xff]  }
 0x36c   :  { %v5395_v25 = vadd.f32 %v2413_v50, %v7530_v59  ;;  %v2415_v10 = vpop.f32.mrb[26].mxu1  ;;  %v2602_v30 = vadd.f32 %v7548_v12, %v2559_v3 }
 0x36d   :  { %vm2454_vm9 = vcmp.ge.f32.partialorder %v5394_v42, 0.0  ;;  %v2486_v32 = vmul.f32 0.2, %v5394_v42  ;;  %v5396_v2 = vadd.f32 %v2415_v10, %v7527_v52  ;;  %v2417_v37 = vpop.f32.mrb[27].mxu1  ;;  %v2603_v0 = vadd.f32 %v7552_v21, %v2560_v28  ;;  %4230 = vmatpush1.bf16.msra.mxu0 %v6036_v11  ;;  %v6047_v11 = vld [vmem:[#allocation5 + $0xb4] ss:$8 sps:$4 sm:$0xff]  }
 0x36e   :  { %vm2455_vm10 = vcmp.ge.f32.partialorder %v5395_v25, 0.0  ;;  %v2487_v38 = vmul.f32 0.2, %v5395_v25  ;;  %v5397_v49 = vadd.f32 %v2417_v37, %v7530_v59  ;;  %v7674_v18 = vpack.c.bf16 %v2602_v30, %v2600_v57  ;;  %4231 = vmatprep.subr.bf16.mxu0 %v6041_v44  ;;  %v6044_v37 = vld [vmem:[#allocation5 + $0xa4] ss:$8 sps:$4 sm:$0xff]  }
 0x36f   :  { %v2518_v8 = vsel %vm2454_vm9, %v5394_v42, %v2486_v32  ;;  %vm2456_vm11 = vcmp.ge.f32.partialorder %v5396_v2, 0.0  ;;  %v2488_v7 = vmul.f32 0.2, %v5396_v2  ;;  %v7676_v43 = vpack.c.bf16 %v2603_v0, %v2601_v19  ;;  %v6053_v44 = vld [vmem:[#allocation5 + $0xd4] ss:$8 sps:$4 sm:$0xff]  }
 0x370   :  { %v2561_v24 = vmul.f32 %v7540_v9, %v2518_v8  ;;  %v2519_v63 = vsel %vm2455_vm10, %v5395_v25, %v2487_v38  ;;  %vm2457_vm12 = vcmp.ge.f32.partialorder %v5397_v49, 0.0  ;;  %v2489_v1 = vmul.f32 0.2, %v5397_v49  ;;  %v5969_v8 = vld [vmem:[%s8078_s3 + $0x214] ss:$8 sps:$4 sm:$0xff]  }
 0x371   :  { %v2562_v33 = vmul.f32 %v7544_v51, %v2519_v63  ;;  %v2520_v14 = vsel %vm2456_vm11, %v5396_v2, %v2488_v7  ;;  %3331 = vmatprep.mubr.bf16.mxu1 %v7676_v43  ;;  %4232 = vmatpush1.bf16.msra.mxu0 %v6039_v46  ;;  %v6042_v63 = vld [vmem:[#allocation5 + $0xa0] ss:$8 sps:$4 sm:$0xff]  }
 0x372   :  { %v2563_v15 = vmul.f32 %v7540_v9, %v2520_v14  ;;  %v2521_v17 = vsel %vm2457_vm12, %v5397_v49, %v2489_v1  ;;  %v2421_v29 = vpop.f32.mrb[28].mxu1  ;;  %3332 = vmatmul.mubr.bf16.gmra.mrb[44].mxu1 %v7674_v18  ;;  %v7684_v3 = vadd.f32 %v7548_v12, %v2561_v24  ;;  %4233 = vmatprep.subr.bf16.mxu0 %v6044_v37  ;;  %v6066_v46 = vld [vmem:[#allocation5 + $0x120] ss:$8 sps:$4 sm:$0xff]   ;;  %v6074_v37 = vld [vmem:[#allocation5 + $0x144] ss:$8 sps:$4 sm:$0xff]  }
 0x373   :  { %v2564_v22 = vmul.f32 %v7544_v51, %v2521_v17  ;;  %v5398_v23 = vadd.f32 %v2421_v29, %v7527_v52  ;;  %v2423_v28 = vpop.f32.mrb[29].mxu1  ;;  %3374 = vmatprep.mubr.bf16.mxu1 %v2613_v53  ;;  %v7693_v25 = vadd.f32 %v7552_v21, %v2562_v33 }
 0x374   :  { %v5399_v42 = vadd.f32 %v2423_v28, %v7530_v59  ;;  %v2425_v50 = vpop.f32.mrb[30].mxu1  ;;  %v7696_v10 = vadd.f32 %v7548_v12, %v2563_v15  ;;  %v6051_v28 = vld [vmem:[#allocation5 + $0xd0] ss:$8 sps:$4 sm:$0xff]  }
 0x375   :  { %vm2458_vm13 = vcmp.ge.f32.partialorder %v5398_v23, 0.0  ;;  %v2490_v19 = vmul.f32 0.2, %v5398_v23  ;;  %v5400_v57 = vadd.f32 %v2425_v50, %v7527_v52  ;;  %v2427_v30 = vpop.f32.mrb[31].mxu1  ;;  %v7700_v32 = vadd.f32 %v7552_v21, %v2564_v22  ;;  %v5964_v52 = vld [vmem:[%s8078_s3 + $0x200] ss:$8 sps:$4 sm:$0xff]   ;;  %4234 = vmatpush1.bf16.msra.mxu0 %v6042_v63 }
 0x376   :  { %vm2459_vm14 = vcmp.ge.f32.partialorder %v5399_v42, 0.0  ;;  %v2491_v26 = vmul.f32 0.2, %v5399_v42  ;;  %v5401_v53 = vadd.f32 %v2427_v30, %v7530_v59  ;;  %v2624_v2 = vpack.c.bf16 %v7696_v10, %v7684_v3  ;;  %4235 = vmatprep.subr.bf16.mxu0 %v6047_v11  ;;  %v5973_v22 = vld [vmem:[%s8078_s3 + $0x230] ss:$8 sps:$4 sm:$0xff]  }
 0x377   :  { %v2522_v0 = vsel %vm2458_vm13, %v5398_v23, %v2490_v19  ;;  %vm2460_vm15 = vcmp.ge.f32.partialorder %v5400_v57, 0.0  ;;  %v2492_v27 = vmul.f32 0.2, %v5400_v57  ;;  %v2625_v38 = vpack.c.bf16 %v7700_v32, %v7693_v25  ;;  %v5978_v23 = vld [vmem:[%s8078_s3 + $0x244] ss:$8 sps:$4 sm:$0xff]  }
 0x378   :  { %v2565_v49 = vmul.f32 %v7540_v9, %v2522_v0  ;;  %v2523_v4 = vsel %vm2459_vm14, %v5399_v42, %v2491_v26  ;;  %vm2461_vm0 = vcmp.ge.f32.partialorder %v5401_v53, 0.0  ;;  %v2493_v59 = vmul.f32 0.2, %v5401_v53  ;;  %v5984_v42 = vld [vmem:[%s8078_s3 + $0x264] ss:$8 sps:$4 sm:$0xff]  }
 0x379   :  { %v2566_v7 = vmul.f32 %v7544_v51, %v2523_v4  ;;  %v2524_v24 = vsel %vm2460_vm15, %v5400_v57, %v2492_v27  ;;  %v6057_v50 = vld [vmem:[#allocation5 + $0xf0] ss:$8 sps:$4 sm:$0xff]   ;;  %v6062_v25 = vld [vmem:[#allocation5 + $0x104] ss:$8 sps:$4 sm:$0xff]   ;;  %v6065_v19 = vld [vmem:[#allocation5 + $0x114] ss:$8 sps:$4 sm:$0xff]  }
 0x37a   :  { %v2567_v1 = vmul.f32 %v7540_v9, %v2524_v24  ;;  %v2525_v33 = vsel %vm2461_vm0, %v5401_v53, %v2493_v59  ;;  %3375 = vmatmul.mubr.bf16.vlgmr.msra.gmra.mrb[32].mxu1 %v2612_v35  ;;  %v7720_v14 = vadd.f32 %v7548_v12, %v2565_v49  ;;  %v5967_v9 = vld [vmem:[%s8078_s3 + $0x210] ss:$8 sps:$4 sm:$0xff]   ;;  %v5990_v30 = vld [vmem:[%s8078_s3 + $0x284] ss:$8 sps:$4 sm:$0xff]   ;;  %v5993_v10 = vld [vmem:[%s8078_s3 + $0x294] ss:$8 sps:$4 sm:$0xff]  }
 0x37b   :  { %v2568_v15 = vmul.f32 %v7544_v51, %v2525_v33  ;;  %3416 = vmatpush1.bf16.msra.mxu1 %v5964_v52  ;;  %3384 = vmatprep.mubr.bf16.mxu1 %v2617_v5  ;;  %v7730_v17 = vadd.f32 %v7552_v21, %v2566_v7  ;;  %v6045_v35 = vld [vmem:[#allocation5 + $0xb0] ss:$8 sps:$4 sm:$0xff]   ;;  %v5970_v5 = vld [vmem:[%s8078_s3 + $0x220] ss:$8 sps:$4 sm:$0xff]   ;;  %v6068_v3 = vld [vmem:[#allocation5 + $0x124] ss:$8 sps:$4 sm:$0xff]  }
 0x37c   :  { %3417 = vmatprep.subr.bf16.mxu1 %v5969_v8  ;;  %v7736_v54 = vadd.f32 %v7548_v12, %v2567_v1  ;;  %v5975_v12 = vld [vmem:[%s8078_s3 + $0x234] ss:$8 sps:$4 sm:$0xff]   ;;  %4236 = vmatpush1.bf16.msra.mxu0 %v6045_v35  ;;  %v5985_v57 = vld [vmem:[%s8078_s3 + $0x270] ss:$8 sps:$4 sm:$0xff]   ;;  %v5996_v53 = vld [vmem:[%s8078_s3 + $0x2a4] ss:$8 sps:$4 sm:$0xff]  }
 0x37d   :  { %v7739_v51 = vadd.f32 %v7552_v21, %v2568_v15  ;;  %v6048_v21 = vld [vmem:[#allocation5 + $0xc0] ss:$8 sps:$4 sm:$0xff]   ;;  %4237 = vmatprep.subr.bf16.mxu0 %v6050_v55  ;;  %v6063_v32 = vld [vmem:[#allocation5 + $0x110] ss:$8 sps:$4 sm:$0xff]   ;;  %v6071_v26 = vld [vmem:[#allocation5 + $0x134] ss:$8 sps:$4 sm:$0xff]  }
 0x37e   :  { %v2626_v47 = vpack.c.bf16 %v7736_v54, %v7720_v14  ;;  %v5994_v0 = vld [vmem:[%s8078_s3 + $0x2a0] ss:$8 sps:$4 sm:$0xff]   ;;  %v5999_v27 = vld [vmem:[%s8078_s3 + $0x2b4] ss:$8 sps:$4 sm:$0xff]   ;;  %v5997_v49 = vld [vmem:[%s8078_s3 + $0x2b0] ss:$8 sps:$4 sm:$0xff]  }
 0x37f   :  { %3418 = vmatpush1.bf16.msra.mxu1 %v5967_v9  ;;  %v2627_v29 = vpack.c.bf16 %v7739_v51, %v7730_v17  ;;  %v6072_v52 = vld [vmem:[#allocation5 + $0x140] ss:$8 sps:$4 sm:$0xff]   ;;  %v6002_v4 = vld [vmem:[%s8078_s3 + $0x2c4] ss:$8 sps:$4 sm:$0xff]   ;;  %v6075_v59 = vld [vmem:[#allocation5 + $0x150] ss:$8 sps:$4 sm:$0xff]  }
 0x380   :  { %3419 = vmatprep.subr.bf16.mxu1 %v5972_v62  ;;  %4238 = vmatpush1.bf16.msra.mxu0 %v6048_v21  ;;  %v6080_v8 = vld [vmem:[#allocation5 + $0x164] ss:$8 sps:$4 sm:$0xff]   ;;  %v6000_v7 = vld [vmem:[%s8078_s3 + $0x2c0] ss:$8 sps:$4 sm:$0xff]   ;;  %v6005_v24 = vld [vmem:[%s8078_s3 + $0x2d4] ss:$8 sps:$4 sm:$0xff]  }
 0x381   :  { %4239 = vmatprep.subr.bf16.mxu0 %v6053_v44  ;;  %v6078_v63 = vld [vmem:[#allocation5 + $0x160] ss:$8 sps:$4 sm:$0xff]   ;;  %v6083_v1 = vld [vmem:[#allocation5 + $0x174] ss:$8 sps:$4 sm:$0xff]   ;;  %v6003_v33 = vld [vmem:[%s8078_s3 + $0x2d0] ss:$8 sps:$4 sm:$0xff]  }
 0x382   :  { %3385 = vmatmul.mubr.bf16.gmra.mrb[36].mxu1 %v2616_v6  ;;  %v5981_v6 = vld [vmem:[%s8078_s3 + $0x254] ss:$8 sps:$4 sm:$0xff]   ;;  %v6008_v11 = vld [vmem:[%s8078_s3 + $0x2e4] ss:$8 sps:$4 sm:$0xff]   ;;  %v6081_v15 = vld [vmem:[#allocation5 + $0x170] ss:$8 sps:$4 sm:$0xff]  }
 0x383   :  { %3420 = vmatpush1.bf16.msra.mxu1 %v5970_v5  ;;  %3394 = vmatprep.mubr.bf16.mxu1 %v2621_v13  ;;  %v5979_v13 = vld [vmem:[%s8078_s3 + $0x250] ss:$8 sps:$4 sm:$0xff]   ;;  %v6086_v9 = vld [vmem:[#allocation5 + $0x184] ss:$8 sps:$4 sm:$0xff]   ;;  %v6006_v62 = vld [vmem:[%s8078_s3 + $0x2e0] ss:$8 sps:$4 sm:$0xff]  }
 0x384   :  { %3421 = vmatprep.subr.bf16.mxu1 %v5975_v12  ;;  %4240 = vmatpush1.bf16.msra.mxu0 %v6051_v28  ;;  %v6011_v35 = vld [vmem:[%s8078_s3 + $0x2f4] ss:$8 sps:$4 sm:$0xff]   ;;  %v6084_v55 = vld [vmem:[#allocation5 + $0x180] ss:$8 sps:$4 sm:$0xff]   ;;  %v6009_v5 = vld [vmem:[%s8078_s3 + $0x2f0] ss:$8 sps:$4 sm:$0xff]  }
 0x385   :  { %4241 = vmatprep.subr.bf16.mxu0 %v6056_v39  ;;  %v6089_v12 = vld [vmem:[#allocation5 + $0x194] ss:$8 sps:$4 sm:$0xff]   ;;  %v6087_v21 = vld [vmem:[#allocation5 + $0x190] ss:$8 sps:$4 sm:$0xff]   ;;  %v6096_v44 = vld [vmem:[#allocation5 + $0x1c0] ss:$8 sps:$4 sm:$0xff]  }
 0x386   :  { %v6101_v17 = vld [vmem:[#allocation5 + $0x1d4] ss:$8 sps:$4 sm:$0xff]   ;;  %v6099_v51 = vld [vmem:[#allocation5 + $0x1d0] ss:$8 sps:$4 sm:$0xff]   ;;  %v6104_v14 = vld [vmem:[#allocation5 + $0x1e4] ss:$8 sps:$4 sm:$0xff]  }
 0x387   :  { %3422 = vmatpush1.bf16.msra.mxu1 %v5973_v22  ;;  %v6102_v54 = vld [vmem:[#allocation5 + $0x1e0] ss:$8 sps:$4 sm:$0xff]   ;;  %v6110_v22 = vld [vmem:[#allocation5 + $0x204] ss:$8 sps:$4 sm:$0xff]  }
 0x388   :  { %3423 = vmatprep.subr.bf16.mxu1 %v5978_v23  ;;  %4242 = vmatpush1.bf16.msra.mxu0 %v6054_v45  ;;  %v6156_v23 = vld [vmem:[%s8084_s9 + $0x40] sm:$0xff]   ;;  %v6158_v39 = vld [vmem:[%s8084_s9 + $0x48] sm:$0xff]   ;;  %v6161_v45 = vld [vmem:[%s8084_s9 + $0x10] sm:$0xff]  }
 0x389   :  { %4243 = vmatprep.subr.bf16.mxu0 %v6059_v36  ;;  %v6157_v28 = vld [vmem:[%s8084_s9] sm:$0xff]   ;;  %v6162_v36 = vld [vmem:[%s8084_s9 + $0x58] sm:$0xff]  }
 0x38a   :  { %3395 = vmatmul.mubr.bf16.gmra.mrb[40].mxu1 %v2620_v48  ;;  %v6060_v48 = vld [vmem:[#allocation5 + $0x100] ss:$8 sps:$4 sm:$0xff]  }
 0x38b   :  { %3424 = vmatpush1.bf16.msra.mxu1 %v5976_v56  ;;  %3404 = vmatprep.mubr.bf16.mxu1 %v2625_v38  ;;  %v6077_v38 = vld [vmem:[#allocation5 + $0x154] ss:$8 sps:$4 sm:$0xff]   ;;  %v6159_v56 = vld [vmem:[%s8084_s9 + $0x8] sm:$0xff]  }
 0x38c   :  { %3425 = vmatprep.subr.bf16.mxu1 %v5981_v6  ;;  %4244 = vmatpush1.bf16.msra.mxu0 %v6057_v50  ;;  %v6160_v6 = vld [vmem:[%s8084_s9 + $0x50] sm:$0xff]   ;;  %v2775_v50 = vld [vmem:[%s8082_s7] sm:$0x3] }
 0x38d   :  { %4266 = vmatprep.subr.bf16.mxu0 %v6062_v25  ;;  %v7882_v25 = vrot.slane %v2775_v50, %v8121_v41 }
 0x38f   :  { %3426 = vmatpush1.bf16.msra.mxu1 %v5979_v13  ;;  %4246 = vmatmul.mubr.bf16.vlgmr.msra.gmra.mrb[64].mxu0 %v8120_v61  ;;  %v5991_v61 = vld [vmem:[%s8078_s3 + $0x290] ss:$8 sps:$4 sm:$0xff]  }
 0x390   :  { %3427 = vmatprep.subr.bf16.mxu1 %v5984_v42  ;;  %4267 = vmatpush1.bf16.msra.mxu0 %v6060_v48  ;;  %v6163_v13 = vld [vmem:[%s8084_s9 + $0x18] sm:$0xff]   ;;  %v6164_v42 = vld [vmem:[%s8084_s9 + $0x60] sm:$0xff]  }
 0x391   :  { %4268 = vmatprep.subr.bf16.mxu0 %v6065_v19  ;;  %v2777_v19 = vld [vmem:[%s8082_s7 + $0x4] sm:$0x3] }
 0x392   :  { %3405 = vmatmul.mubr.bf16.gmra.mrb[44].mxu1 %v2624_v2  ;;  %v6069_v2 = vld [vmem:[#allocation5 + $0x130] ss:$8 sps:$4 sm:$0xff]  }
 0x393   :  { %3428 = vmatpush1.bf16.msra.mxu1 %v5982_v20  ;;  %3447 = vmatprep.mubr.bf16.mxu1 %v7592_v16  ;;  %v5988_v16 = vld [vmem:[%s8078_s3 + $0x280] ss:$8 sps:$4 sm:$0xff]   ;;  %v7885_v20 = vrot.slane %v2775_v50, %v8122_v31 }
 0x394   :  { %3429 = vmatprep.subr.bf16.mxu1 %v5987_v34  ;;  %4269 = vmatpush1.bf16.msra.mxu0 %v6063_v32  ;;  %v2776_v34 = vld [vmem:[%s8082_s7 + $0x2] sm:$0x3] }
 0x395   :  { %4270 = vmatprep.subr.bf16.mxu0 %v6068_v3  ;;  %v7895_v32 = vrot.slane %v2776_v34, %v8121_v41 }
 0x397   :  { %3430 = vmatpush1.bf16.msra.mxu1 %v5985_v57 }
 0x398   :  { %3431 = vmatprep.subr.bf16.mxu1 %v5990_v30  ;;  %4271 = vmatpush1.bf16.msra.mxu0 %v6066_v46  ;;  %v7899_v46 = vrot.slane %v2776_v34, %v8122_v31 }
 0x399   :  { %4272 = vmatprep.subr.bf16.mxu0 %v6071_v26 }
 0x39b   :  { %3432 = vmatpush1.bf16.msra.mxu1 %v5988_v16 }
 0x39c   :  { %3433 = vmatprep.subr.bf16.mxu1 %v5993_v10  ;;  %4273 = vmatpush1.bf16.msra.mxu0 %v6069_v2 }
 0x39d   :  { %4274 = vmatprep.subr.bf16.mxu0 %v6074_v37 }
 0x39f   :  { %3434 = vmatpush1.bf16.msra.mxu1 %v5991_v61 }
 0x3a0   :  { %3435 = vmatprep.subr.bf16.mxu1 %v5996_v53  ;;  %4275 = vmatpush1.bf16.msra.mxu0 %v6072_v52  ;;  %v7903_v53 = vrot.slane %v2777_v19, %v8121_v41  ;;  %v7907_v52 = vrot.slane %v2777_v19, %v8122_v31 }
 0x3a1   :  { %4276 = vmatprep.subr.bf16.mxu0 %v6077_v38 }
 0x3a3   :  { %3436 = vmatpush1.bf16.msra.mxu1 %v5994_v0 }
 0x3a4   :  { %3437 = vmatprep.subr.bf16.mxu1 %v5999_v27  ;;  %4277 = vmatpush1.bf16.msra.mxu0 %v6075_v59 }
 0x3a5   :  { %4278 = vmatprep.subr.bf16.mxu0 %v6080_v8 }
 0x3a7   :  { %3438 = vmatpush1.bf16.msra.mxu1 %v5997_v49 }
 0x3a8   :  { %3439 = vmatprep.subr.bf16.mxu1 %v6002_v4  ;;  %4279 = vmatpush1.bf16.msra.mxu0 %v6078_v63 }
 0x3a9   :  { %4280 = vmatprep.subr.bf16.mxu0 %v6083_v1 }
 0x3ab   :  { %3440 = vmatpush1.bf16.msra.mxu1 %v6000_v7 }
 0x3ac   :  { %3441 = vmatprep.subr.bf16.mxu1 %v6005_v24  ;;  %4281 = vmatpush1.bf16.msra.mxu0 %v6081_v15 }
 0x3ad   :  { %4282 = vmatprep.subr.bf16.mxu0 %v6086_v9 }
 0x3af   :  { %3442 = vmatpush1.bf16.msra.mxu1 %v6003_v33 }
 0x3b0   :  { %3443 = vmatprep.subr.bf16.mxu1 %v6008_v11  ;;  %4283 = vmatpush1.bf16.msra.mxu0 %v6084_v55 }
 0x3b1   :  { %4284 = vmatprep.subr.bf16.mxu0 %v6089_v12 }
 0x3b3   :  { %3444 = vmatpush1.bf16.msra.mxu1 %v6006_v62 }
 0x3b4   :  { %3445 = vmatprep.subr.bf16.mxu1 %v6011_v35  ;;  %4285 = vmatpush1.bf16.msra.mxu0 %v6087_v21 }
 0x3b7   :  { %3446 = vmatpush1.bf16.msra.mxu1 %v6009_v5 }
 0x3b8   :  { %5262 = vmatprep.subr.bf16.mxu1 %v6156_v23 }
 0x3ba   :  { %3448 = vmatmul.mubr.bf16.vlgmr.msra.gmra.mrb[32].mxu1 %v7590_v58  ;;  %v6092_v58 = vld [vmem:[#allocation5 + $0x1a4] ss:$8 sps:$4 sm:$0xff]  }
 0x3bb   :  { %3457 = vmatprep.mubr.bf16.mxu1 %v7634_v60  ;;  %v6090_v60 = vld [vmem:[#allocation5 + $0x1a0] ss:$8 sps:$4 sm:$0xff]   ;;  %4286 = vmatprep.subr.bf16.mxu0 %v6092_v58 }
 0x3bc   :  { %4287 = vmatpush1.bf16.msra.mxu0 %v6090_v60  ;;  %5263 = vmatpush3.bf16.msra.mxu1 %v6157_v28 }
 0x3bd   :  { %5264 = vmatprep.subr.bf16.mxu1 %v6158_v39 }
 0x3c0   :  { %5265 = vmatpush3.bf16.msra.mxu1 %v6159_v56 }
 0x3c1   :  { %5266 = vmatprep.subr.bf16.mxu1 %v6160_v6 }
 0x3c2   :  { %3458 = vmatmul.mubr.bf16.gmra.mrb[36].mxu1 %v7632_v40  ;;  %v6095_v40 = vld [vmem:[#allocation5 + $0x1b4] ss:$8 sps:$4 sm:$0xff]  }
 0x3c3   :  { %3467 = vmatprep.mubr.bf16.mxu1 %v7676_v43  ;;  %v6093_v43 = vld [vmem:[#allocation5 + $0x1b0] ss:$8 sps:$4 sm:$0xff]   ;;  %4288 = vmatprep.subr.bf16.mxu0 %v6095_v40 }
 0x3c4   :  { %4289 = vmatpush1.bf16.msra.mxu0 %v6093_v43  ;;  %5267 = vmatpush3.bf16.msra.mxu1 %v6161_v45 }
 0x3c5   :  { %5268 = vmatprep.subr.bf16.mxu1 %v6162_v36 }
 0x3c8   :  { %5269 = vmatpush3.bf16.msra.mxu1 %v6163_v13 }
 0x3c9   :  { %5270 = vmatprep.subr.bf16.mxu1 %v6164_v42 }
 0x3ca   :  { %3468 = vmatmul.mubr.bf16.gmra.mrb[40].mxu1 %v7674_v18  ;;  %v6098_v18 = vld [vmem:[#allocation5 + $0x1c4] ss:$8 sps:$4 sm:$0xff]  }
 0x3cb   :  { %3477 = vmatprep.mubr.bf16.mxu1 %v2627_v29  ;;  %4290 = vmatprep.subr.bf16.mxu0 %v6098_v18  ;;  %v6105_v29 = vld [vmem:[#allocation5 + $0x1f0] ss:$8 sps:$4 sm:$0xff]  }
 0x3cc   :  { %4291 = vmatpush1.bf16.msra.mxu0 %v6096_v44 }
 0x3cd   :  { %4292 = vmatprep.subr.bf16.mxu0 %v6101_v17 }
 0x3d0   :  { %4293 = vmatpush1.bf16.msra.mxu0 %v6099_v51 }
 0x3d1   :  { %4294 = vmatprep.subr.bf16.mxu0 %v6104_v14 }
 0x3d2   :  { %3478 = vmatmul.mubr.bf16.gmra.mrb[44].mxu1 %v2626_v47  ;;  %v6107_v47 = vld [vmem:[#allocation5 + $0x1f4] ss:$8 sps:$4 sm:$0xff]  }
 0x3d4   :  { %4295 = vmatpush1.bf16.msra.mxu0 %v6102_v54 }
 0x3d5   :  { %4296 = vmatprep.subr.bf16.mxu0 %v6107_v47 }
 0x3d8   :  { %4297 = vmatpush1.bf16.msra.mxu0 %v6105_v29 }
 0x3d9   :  { %4319 = vmatprep.subr.bf16.mxu0 %v6110_v22 }
 0x48d   :  { %v3449_v48 = vpop.f32.mrb[32].mxu1 }
 0x48e   :  { %v5402_v57 = vadd.f32 %v3449_v48, %v7882_v25  ;;  %v3451_v30 = vpop.f32.mrb[33].mxu1 }
 0x48f   :  { %v5403_v3 = vadd.f32 %v3451_v30, %v7885_v20  ;;  %v3453_v16 = vpop.f32.mrb[34].mxu1 }
 0x490   :  { %vm3488_vm1 = vcmp.ge.f32.partialorder %v5402_v57, 0.0  ;;  %v3504_v10 = vmul.f32 0.2, %v5402_v57  ;;  %v5404_v26 = vadd.f32 %v3453_v16, %v7882_v25  ;;  %v3455_v61 = vpop.f32.mrb[35].mxu1 }
 0x491   :  { %vm3489_vm2 = vcmp.ge.f32.partialorder %v5403_v3, 0.0  ;;  %v3505_v2 = vmul.f32 0.2, %v5403_v3  ;;  %v5405_v37 = vadd.f32 %v3455_v61, %v7885_v20 }
 0x492   :  { %v3520_v0 = vsel %vm3488_vm1, %v5402_v57, %v3504_v10  ;;  %vm3490_vm3 = vcmp.ge.f32.partialorder %v5404_v26, 0.0  ;;  %v3506_v27 = vmul.f32 0.2, %v5404_v26 }
 0x493   :  { %v3547_v38 = vmul.f32 %v7895_v32, %v3520_v0  ;;  %v3521_v49 = vsel %vm3489_vm2, %v5403_v3, %v3505_v2  ;;  %vm3491_vm4 = vcmp.ge.f32.partialorder %v5405_v37, 0.0  ;;  %v3507_v4 = vmul.f32 0.2, %v5405_v37 }
 0x494   :  { %v3548_v59 = vmul.f32 %v7899_v46, %v3521_v49  ;;  %v3522_v8 = vsel %vm3490_vm3, %v5404_v26, %v3506_v27 }
 0x495   :  { %v3549_v7 = vmul.f32 %v7895_v32, %v3522_v8  ;;  %v3523_v24 = vsel %vm3491_vm4, %v5405_v37, %v3507_v4  ;;  %v3459_v63 = vpop.f32.mrb[36].mxu1  ;;  %v7915_v15 = vadd.f32 %v7903_v53, %v3547_v38 }
 0x496   :  { %v3550_v1 = vmul.f32 %v7899_v46, %v3523_v24  ;;  %v5406_v33 = vadd.f32 %v3459_v63, %v7882_v25  ;;  %v3461_v11 = vpop.f32.mrb[37].mxu1  ;;  %v3575_v55 = vadd.f32 %v7907_v52, %v3548_v59 }
 0x497   :  { %v7918_v9 = vadd.f32 %v7903_v53, %v3549_v7  ;;  %v5407_v62 = vadd.f32 %v3461_v11, %v7885_v20  ;;  %v3463_v35 = vpop.f32.mrb[38].mxu1 }
 0x498   :  { %vm3492_vm5 = vcmp.ge.f32.partialorder %v5406_v33, 0.0  ;;  %v3508_v5 = vmul.f32 0.2, %v5406_v33  ;;  %v5408_v12 = vadd.f32 %v3463_v35, %v7882_v25  ;;  %v3465_v21 = vpop.f32.mrb[39].mxu1  ;;  %v3577_v58 = vadd.f32 %v7907_v52, %v3550_v1 }
 0x499   :  { %v3590_v60 = vpack.c.bf16 %v7918_v9, %v7915_v15  ;;  %vm3493_vm6 = vcmp.ge.f32.partialorder %v5407_v62, 0.0  ;;  %v3509_v40 = vmul.f32 0.2, %v5407_v62  ;;  %v5409_v43 = vadd.f32 %v3465_v21, %v7885_v20  ;;  %v6114_v9 = vld [vmem:[#allocation5 + $0x220] ss:$8 sps:$4 sm:$0xff]  }
 0x49a   :  { %v3524_v18 = vsel %vm3492_vm5, %v5406_v33, %v3508_v5  ;;  %vm3494_vm7 = vcmp.ge.f32.partialorder %v5408_v12, 0.0  ;;  %v3510_v44 = vmul.f32 0.2, %v5408_v12  ;;  %v3591_v17 = vpack.c.bf16 %v3577_v58, %v3575_v55 }
 0x49b   :  { %v3551_v51 = vmul.f32 %v7895_v32, %v3524_v18  ;;  %v3525_v14 = vsel %vm3493_vm6, %v5407_v62, %v3509_v40  ;;  %vm3495_vm8 = vcmp.ge.f32.partialorder %v5409_v43, 0.0  ;;  %v3511_v54 = vmul.f32 0.2, %v5409_v43 }
 0x49c   :  { %v3552_v47 = vmul.f32 %v7899_v46, %v3525_v14  ;;  %v3526_v29 = vsel %vm3494_vm7, %v5408_v12, %v3510_v44  ;;  %v6108_v44 = vld [vmem:[#allocation5 + $0x200] ss:$8 sps:$4 sm:$0xff]  }
 0x49d   :  { %v3553_v22 = vmul.f32 %v7895_v32, %v3526_v29  ;;  %v3527_v23 = vsel %vm3495_vm8, %v5409_v43, %v3511_v54  ;;  %v3469_v28 = vpop.f32.mrb[40].mxu1  ;;  %v3578_v42 = vadd.f32 %v7903_v53, %v3551_v51 }
 0x49e   :  { %v3554_v39 = vmul.f32 %v7899_v46, %v3527_v23  ;;  %v5410_v56 = vadd.f32 %v3469_v28, %v7882_v25  ;;  %v3471_v6 = vpop.f32.mrb[41].mxu1  ;;  %v3579_v13 = vadd.f32 %v7907_v52, %v3552_v47  ;;  %v6113_v47 = vld [vmem:[#allocation5 + $0x214] ss:$8 sps:$4 sm:$0xff]  }
 0x49f   :  { %v5411_v45 = vadd.f32 %v3471_v6, %v7885_v20  ;;  %v3473_v36 = vpop.f32.mrb[42].mxu1  ;;  %v3580_v50 = vadd.f32 %v7903_v53, %v3553_v22  ;;  %v6116_v6 = vld [vmem:[#allocation5 + $0x224] ss:$8 sps:$4 sm:$0xff]  }
 0x4a0   :  { %vm3496_vm9 = vcmp.ge.f32.partialorder %v5410_v56, 0.0  ;;  %v3512_v34 = vmul.f32 0.2, %v5410_v56  ;;  %v5412_v48 = vadd.f32 %v3473_v36, %v7882_v25  ;;  %v3475_v19 = vpop.f32.mrb[43].mxu1  ;;  %v3581_v57 = vadd.f32 %v7907_v52, %v3554_v39  ;;  %v6111_v39 = vld [vmem:[#allocation5 + $0x210] ss:$8 sps:$4 sm:$0xff]  }
 0x4a1   :  { %vm3497_vm10 = vcmp.ge.f32.partialorder %v5411_v45, 0.0  ;;  %v3513_v30 = vmul.f32 0.2, %v5411_v45  ;;  %v5413_v3 = vadd.f32 %v3475_v19, %v7885_v20  ;;  %v7939_v16 = vpack.c.bf16 %v3580_v50, %v3578_v42  ;;  %v6117_v36 = vld [vmem:[#allocation5 + $0x230] ss:$8 sps:$4 sm:$0xff]  }
 0x4a2   :  { %v3528_v10 = vsel %vm3496_vm9, %v5410_v56, %v3512_v34  ;;  %vm3498_vm11 = vcmp.ge.f32.partialorder %v5412_v48, 0.0  ;;  %v3514_v26 = vmul.f32 0.2, %v5412_v48  ;;  %v3593_v61 = vpack.c.bf16 %v3581_v57, %v3579_v13  ;;  %v6122_v13 = vld [vmem:[#allocation5 + $0x244] ss:$8 sps:$4 sm:$0xff]  }
 0x4a3   :  { %v3555_v2 = vmul.f32 %v7895_v32, %v3528_v10  ;;  %v3529_v37 = vsel %vm3497_vm10, %v5411_v45, %v3513_v30  ;;  %vm3499_vm12 = vcmp.ge.f32.partialorder %v5413_v3, 0.0  ;;  %v3515_v0 = vmul.f32 0.2, %v5413_v3  ;;  %v6125_v42 = vld [vmem:[#allocation5 + $0x254] ss:$8 sps:$4 sm:$0xff]  }
 0x4a4   :  { %v3556_v27 = vmul.f32 %v7899_v46, %v3529_v37  ;;  %v3530_v38 = vsel %vm3498_vm11, %v5412_v48, %v3514_v26  ;;  %4255 = vmatprep.mubr.bf16.mxu0 %v3593_v61  ;;  %v6128_v50 = vld [vmem:[#allocation5 + $0x264] ss:$8 sps:$4 sm:$0xff]   ;;  %v6126_v34 = vld [vmem:[#allocation5 + $0x260] ss:$8 sps:$4 sm:$0xff]   ;;  %v6131_v48 = vld [vmem:[#allocation5 + $0x274] ss:$8 sps:$4 sm:$0xff]  }
 0x4a5   :  { %v3557_v49 = vmul.f32 %v7895_v32, %v3530_v38  ;;  %v3531_v4 = vsel %vm3499_vm12, %v5413_v3, %v3515_v0  ;;  %v3479_v59 = vpop.f32.mrb[44].mxu1  ;;  %4256 = vmatmul.mubr.bf16.gmra.mrb[68].mxu0 %v7939_v16  ;;  %v3582_v11 = vadd.f32 %v7903_v53, %v3555_v2  ;;  %v6129_v19 = vld [vmem:[#allocation5 + $0x270] ss:$8 sps:$4 sm:$0xff]   ;;  %v6134_v57 = vld [vmem:[#allocation5 + $0x284] ss:$8 sps:$4 sm:$0xff]  }
 0x4a6   :  { %v3558_v8 = vmul.f32 %v7899_v46, %v3531_v4  ;;  %v5414_v7 = vadd.f32 %v3479_v59, %v7882_v25  ;;  %v3481_v24 = vpop.f32.mrb[45].mxu1  ;;  %4298 = vmatprep.mubr.bf16.mxu0 %v3591_v17  ;;  %v3583_v33 = vadd.f32 %v7907_v52, %v3556_v27  ;;  %v6132_v30 = vld [vmem:[#allocation5 + $0x280] ss:$8 sps:$4 sm:$0xff]   ;;  %v6137_v3 = vld [vmem:[#allocation5 + $0x294] ss:$8 sps:$4 sm:$0xff]  }
 0x4a7   :  { %v5415_v63 = vadd.f32 %v3481_v24, %v7885_v20  ;;  %v3483_v1 = vpop.f32.mrb[46].mxu1  ;;  %v3584_v62 = vadd.f32 %v7903_v53, %v3557_v49  ;;  %v6135_v10 = vld [vmem:[#allocation5 + $0x290] ss:$8 sps:$4 sm:$0xff]   ;;  %v6140_v26 = vld [vmem:[#allocation5 + $0x2a4] ss:$8 sps:$4 sm:$0xff]  }
 0x4a8   :  { %vm3500_vm13 = vcmp.ge.f32.partialorder %v5414_v7, 0.0  ;;  %v3516_v35 = vmul.f32 0.2, %v5414_v7  ;;  %v5416_v55 = vadd.f32 %v3483_v1, %v7882_v25  ;;  %v3485_v5 = vpop.f32.mrb[47].mxu1  ;;  %v3585_v12 = vadd.f32 %v7907_v52, %v3558_v8  ;;  %v6143_v2 = vld [vmem:[#allocation5 + $0x2b4] ss:$8 sps:$4 sm:$0xff]  }
 0x4a9   :  { %vm3501_vm14 = vcmp.ge.f32.partialorder %v5415_v63, 0.0  ;;  %v3517_v21 = vmul.f32 0.2, %v5415_v63  ;;  %v5417_v58 = vadd.f32 %v3485_v5, %v7885_v20  ;;  %v3594_v40 = vpack.c.bf16 %v3584_v62, %v3582_v11  ;;  %v6141_v37 = vld [vmem:[#allocation5 + $0x2b0] ss:$8 sps:$4 sm:$0xff]   ;;  %v6165_v24 = vld [vmem:[%s8084_s9 + $0x20] sm:$0xff]  }
 0x4aa   :  { %v3532_v43 = vsel %vm3500_vm13, %v5414_v7, %v3516_v35  ;;  %vm3502_vm15 = vcmp.ge.f32.partialorder %v5416_v55, 0.0  ;;  %v3518_v18 = vmul.f32 0.2, %v5416_v55  ;;  %v3595_v17 = vpack.c.bf16 %v3585_v12, %v3583_v33  ;;  %v6146_v0 = vld [vmem:[#allocation5 + $0x2c4] ss:$8 sps:$4 sm:$0xff]   ;;  %5271 = vmatpush3.bf16.msra.mxu1 %v6165_v24  ;;  %v6169_v33 = vld [vmem:[%s8084_s9 + $0x30] sm:$0xff]  }
 0x4ab   :  { %v3559_v51 = vmul.f32 %v7895_v32, %v3532_v43  ;;  %v3533_v14 = vsel %vm3501_vm14, %v5415_v63, %v3517_v21  ;;  %vm3503_vm0 = vcmp.ge.f32.partialorder %v5417_v58, 0.0  ;;  %v3519_v54 = vmul.f32 0.2, %v5417_v58  ;;  %v6144_v27 = vld [vmem:[#allocation5 + $0x2c0] ss:$8 sps:$4 sm:$0xff]   ;;  %v6170_v11 = vld [vmem:[%s8084_s9 + $0x78] sm:$0xff]  }
 0x4ac   :  { %v3560_v25 = vmul.f32 %v7899_v46, %v3533_v14  ;;  %v3534_v29 = vsel %vm3502_vm15, %v5416_v55, %v3518_v18  ;;  %v6149_v38 = vld [vmem:[#allocation5 + $0x2d4] ss:$8 sps:$4 sm:$0xff]   ;;  %v6147_v49 = vld [vmem:[#allocation5 + $0x2d0] ss:$8 sps:$4 sm:$0xff]   ;;  %v6152_v4 = vld [vmem:[#allocation5 + $0x2e4] ss:$8 sps:$4 sm:$0xff]  }
 0x4ad   :  { %v3561_v22 = vmul.f32 %v7895_v32, %v3534_v29  ;;  %v3535_v23 = vsel %vm3503_vm0, %v5417_v58, %v3519_v54  ;;  %4299 = vmatmul.mubr.bf16.vlgmr.msra.gmra.mrb[64].mxu0 %v3590_v60  ;;  %v7961_v20 = vadd.f32 %v7903_v53, %v3559_v51  ;;  %v6119_v60 = vld [vmem:[#allocation5 + $0x234] ss:$8 sps:$4 sm:$0xff]   ;;  %v6150_v59 = vld [vmem:[#allocation5 + $0x2e0] ss:$8 sps:$4 sm:$0xff]   ;;  %v6153_v7 = vld [vmem:[#allocation5 + $0x2f0] ss:$8 sps:$4 sm:$0xff]  }
 0x4ae   :  { %v3562_v28 = vmul.f32 %v7899_v46, %v3535_v23  ;;  %4320 = vmatpush1.bf16.msra.mxu0 %v6108_v44  ;;  %4308 = vmatprep.mubr.bf16.mxu0 %v3595_v17  ;;  %v7965_v56 = vadd.f32 %v7907_v52, %v3560_v25  ;;  %v6155_v8 = vld [vmem:[#allocation5 + $0x2f4] ss:$8 sps:$4 sm:$0xff]   ;;  %v6166_v63 = vld [vmem:[%s8084_s9 + $0x68] sm:$0xff]   ;;  %v6172_v35 = vld [vmem:[%s8084_s9 + $0xc0] sm:$0xff]  }
 0x4af   :  { %4321 = vmatprep.subr.bf16.mxu0 %v6113_v47  ;;  %v7968_v32 = vadd.f32 %v7903_v53, %v3561_v22  ;;  %v6120_v53 = vld [vmem:[#allocation5 + $0x240] ss:$8 sps:$4 sm:$0xff]   ;;  %5272 = vmatprep.subr.bf16.mxu1 %v6166_v63  ;;  %v6171_v62 = vld [vmem:[%s8084_s9 + $0x38] sm:$0xff]  }
 0x4b0   :  { %v3589_v45 = vadd.f32 %v7907_v52, %v3562_v28  ;;  %v6123_v52 = vld [vmem:[#allocation5 + $0x250] ss:$8 sps:$4 sm:$0xff]   ;;  %v6167_v1 = vld [vmem:[%s8084_s9 + $0x28] sm:$0xff]   ;;  %v3719_v55 = vld [vmem:[%s8083_s8] sm:$0x3] }
 0x4b1   :  { %v3596_v15 = vpack.c.bf16 %v7968_v32, %v7961_v20  ;;  %5273 = vmatpush3.bf16.msra.mxu1 %v6167_v1  ;;  %v3726_v5 = vrot.slane %v3719_v55, %v8121_v41  ;;  %v3730_v12 = vrot.slane %v3719_v55, %v8122_v31  ;;  %v3720_v21 = vld [vmem:[%s8083_s8 + $0x2] sm:$0x3]  ;;  %v6175_v63 = vld [vmem:[%s8084_s9 + $0x88] sm:$0xff]  }
 0x4b2   :  { %4322 = vmatpush1.bf16.msra.mxu0 %v6111_v39  ;;  %v3597_v46 = vpack.c.bf16 %v3589_v45, %v7965_v56  ;;  %v4400_v44 = vrot.slane %v3720_v21, %v8121_v41  ;;  %v4404_v54 = vrot.slane %v3720_v21, %v8122_v31  ;;  %v6179_v21 = vld [vmem:[%s8084_s9 + $0x98] sm:$0xff]  }
 0x4b3   :  { %4323 = vmatprep.subr.bf16.mxu0 %v6116_v6 }
 0x4b5   :  { %4309 = vmatmul.mubr.bf16.gmra.mrb[68].mxu0 %v3594_v40  ;;  %v3721_v40 = vld [vmem:[%s8083_s8 + $0x4] sm:$0x3] }
 0x4b6   :  { %4324 = vmatpush1.bf16.msra.mxu0 %v6114_v9  ;;  %4351 = vmatprep.mubr.bf16.mxu0 %v3593_v61  ;;  %v6138_v61 = vld [vmem:[#allocation5 + $0x2a0] ss:$8 sps:$4 sm:$0xff]   ;;  %v4419_v29 = vrot.slane %v3721_v40, %v8121_v41  ;;  %v4423_v39 = vrot.slane %v3721_v40, %v8122_v31 }
 0x4b7   :  { %4325 = vmatprep.subr.bf16.mxu0 %v6119_v60  ;;  %v6181_v40 = vld [vmem:[%s8084_s9 + $0xa0] sm:$0xff]  }
 0x4ba   :  { %4326 = vmatpush1.bf16.msra.mxu0 %v6117_v36 }
 0x4bb   :  { %4327 = vmatprep.subr.bf16.mxu0 %v6122_v13 }
 0x4be   :  { %4328 = vmatpush1.bf16.msra.mxu0 %v6120_v53 }
 0x4bf   :  { %4329 = vmatprep.subr.bf16.mxu0 %v6125_v42 }
 0x4c2   :  { %4330 = vmatpush1.bf16.msra.mxu0 %v6123_v52 }
 0x4c3   :  { %4331 = vmatprep.subr.bf16.mxu0 %v6128_v50 }
 0x4c6   :  { %4332 = vmatpush1.bf16.msra.mxu0 %v6126_v34 }
 0x4c7   :  { %4333 = vmatprep.subr.bf16.mxu0 %v6131_v48 }
 0x4ca   :  { %4334 = vmatpush1.bf16.msra.mxu0 %v6129_v19 }
 0x4cb   :  { %4335 = vmatprep.subr.bf16.mxu0 %v6134_v57 }
 0x4ce   :  { %4336 = vmatpush1.bf16.msra.mxu0 %v6132_v30 }
 0x4cf   :  { %4337 = vmatprep.subr.bf16.mxu0 %v6137_v3 }
 0x4d2   :  { %4338 = vmatpush1.bf16.msra.mxu0 %v6135_v10 }
 0x4d3   :  { %4339 = vmatprep.subr.bf16.mxu0 %v6140_v26 }
 0x4d6   :  { %4340 = vmatpush1.bf16.msra.mxu0 %v6138_v61 }
 0x4d7   :  { %4341 = vmatprep.subr.bf16.mxu0 %v6143_v2 }
 0x4da   :  { %4342 = vmatpush1.bf16.msra.mxu0 %v6141_v37  ;;  %v6173_v37 = vld [vmem:[%s8084_s9 + $0x80] sm:$0xff]  }
 0x4db   :  { %4343 = vmatprep.subr.bf16.mxu0 %v6146_v0 }
 0x4de   :  { %4344 = vmatpush1.bf16.msra.mxu0 %v6144_v27 }
 0x4df   :  { %4345 = vmatprep.subr.bf16.mxu0 %v6149_v38 }
 0x4e2   :  { %4346 = vmatpush1.bf16.msra.mxu0 %v6147_v49  ;;  %v6174_v49 = vld [vmem:[%s8084_s9 + $0xc8] sm:$0xff]  }
 0x4e3   :  { %4347 = vmatprep.subr.bf16.mxu0 %v6152_v4 }
 0x4e6   :  { %4348 = vmatpush1.bf16.msra.mxu0 %v6150_v59 }
 0x4e7   :  { %4349 = vmatprep.subr.bf16.mxu0 %v6155_v8 }
 0x4ea   :  { %4350 = vmatpush1.bf16.msra.mxu0 %v6153_v7 }
 0x4ed   :  { %4352 = vmatmul.mubr.bf16.vlgmr.msra.gmra.mrb[64].mxu0 %v7939_v16  ;;  %v6168_v16 = vld [vmem:[%s8084_s9 + $0x70] sm:$0xff]  }
 0x4ee   :  { %4361 = vmatprep.mubr.bf16.mxu0 %v3597_v46  ;;  %5274 = vmatprep.subr.bf16.mxu1 %v6168_v16 }
 0x4ef   :  { %5275 = vmatpush3.bf16.msra.mxu1 %v6169_v33  ;;  %v6176_v33 = vld [vmem:[%s8084_s9 + $0xd0] sm:$0xff]  }
 0x4f0   :  { %5276 = vmatprep.subr.bf16.mxu1 %v6170_v11 }
 0x4f3   :  { %5277 = vmatpush3.bf16.msra.mxu1 %v6171_v62 }
 0x4f4   :  { %5284 = vmatprep.subr.bf16.mxu1 %v6172_v35 }
 0x4f5   :  { %4362 = vmatmul.mubr.bf16.gmra.mrb[68].mxu0 %v3596_v15 }
 0x5c0   :  { %v4353_v58 = vpop.f32.mrb[64].mxu0 }
 0x5c1   :  { %v5418_v43 = vadd.f32 %v4353_v58, %v3726_v5  ;;  %v4355_v18 = vpop.f32.mrb[65].mxu0  ;;  %v6180_v58 = vld [vmem:[%s8084_s9 + $0xe0] sm:$0xff]  }
 0x5c2   :  { %v5419_v17 = vadd.f32 %v4355_v18, %v3730_v12  ;;  %v4357_v51 = vpop.f32.mrb[66].mxu0  ;;  %v6183_v18 = vld [vmem:[%s8084_s9 + $0xa8] sm:$0xff]  }
 0x5c3   :  { %vm4372_vm1 = vcmp.ge.f32.partialorder %v5418_v43, 0.0  ;;  %v4380_v14 = vmul.f32 0.2, %v5418_v43  ;;  %v5420_v47 = vadd.f32 %v4357_v51, %v3726_v5  ;;  %v4359_v25 = vpop.f32.mrb[67].mxu0  ;;  %v6186_v51 = vld [vmem:[%s8084_s9 + $0xf8] sm:$0xff]  }
 0x5c4   :  { %vm4373_vm2 = vcmp.ge.f32.partialorder %v5419_v17, 0.0  ;;  %v4381_v22 = vmul.f32 0.2, %v5419_v17  ;;  %v5421_v23 = vadd.f32 %v4359_v25, %v3730_v12 }
 0x5c5   :  { %v4388_v20 = vsel %vm4372_vm1, %v5418_v43, %v4380_v14  ;;  %vm4374_vm3 = vcmp.ge.f32.partialorder %v5420_v47, 0.0  ;;  %v4382_v28 = vmul.f32 0.2, %v5420_v47  ;;  %v6182_v43 = vld [vmem:[%s8084_s9 + $0xe8] sm:$0xff]   ;;  %v6187_v14 = vld [vmem:[%s8084_s9 + $0xb8] sm:$0xff]  }
 0x5c6   :  { %v4407_v56 = vmul.f32 %v4400_v44, %v4388_v20  ;;  %v4389_v6 = vsel %vm4373_vm2, %v5419_v17, %v4381_v22  ;;  %vm4375_vm4 = vcmp.ge.f32.partialorder %v5421_v23, 0.0  ;;  %v4383_v32 = vmul.f32 0.2, %v5421_v23  ;;  %v6185_v17 = vld [vmem:[%s8084_s9 + $0xb0] sm:$0xff]  }
 0x5c7   :  { %v4408_v45 = vmul.f32 %v4404_v54, %v4389_v6  ;;  %v4390_v15 = vsel %vm4374_vm3, %v5420_v47, %v4382_v28  ;;  %v8123_v20 = vlaneseq }
 0x5c8   :  { %v4409_v9 = vmul.f32 %v4400_v44, %v4390_v15  ;;  %v4391_v46 = vsel %vm4375_vm4, %v5421_v23, %v4383_v32  ;;  %v4363_v60 = vpop.f32.mrb[68].mxu0  ;;  %v4426_v53 = vadd.f32 %v4419_v29, %v4407_v56 }
 0x5c9   :  { %v4410_v36 = vmul.f32 %v4404_v54, %v4391_v46  ;;  %v5422_v13 = vadd.f32 %v4363_v60, %v3726_v5  ;;  %v4365_v41 = vpop.f32.mrb[69].mxu0  ;;  %v4427_v34 = vadd.f32 %v4423_v39, %v4408_v45  ;;  %v4806_v28 = vand.u32 127, %v8123_v20 }
 0x5ca   :  { %v4428_v42 = vadd.f32 %v4419_v29, %v4409_v9  ;;  %v5423_v52 = vadd.f32 %v4365_v41, %v3730_v12  ;;  %v4367_v50 = vpop.f32.mrb[70].mxu0 }
 0x5cb   :  { %vm4376_vm5 = vcmp.ge.f32.partialorder %v5422_v13, 0.0  ;;  %v4384_v48 = vmul.f32 0.2, %v5422_v13  ;;  %v5424_v31 = vadd.f32 %v4367_v50, %v3726_v5  ;;  %v4369_v19 = vpop.f32.mrb[71].mxu0  ;;  %v4429_v57 = vadd.f32 %v4423_v39, %v4410_v36  ;;  %v6177_v5 = vld [vmem:[%s8084_s9 + $0x90] sm:$0xff]  }
 0x5cc   :  { %v4434_v30 = vpack.c.bf16 %v4428_v42, %v4426_v53  ;;  %vm4377_vm6 = vcmp.ge.f32.partialorder %v5423_v52, 0.0  ;;  %v4385_v3 = vmul.f32 0.2, %v5423_v52  ;;  %v5425_v10 = vadd.f32 %v4369_v19, %v3730_v12  ;;  %v6178_v12 = vld [vmem:[%s8084_s9 + $0xd8] sm:$0xff]  }
 0x5cd   :  { %v4392_v26 = vsel %vm4376_vm5, %v5422_v13, %v4384_v48  ;;  %vm4378_vm7 = vcmp.ge.f32.partialorder %v5424_v31, 0.0  ;;  %v4386_v61 = vmul.f32 0.2, %v5424_v31  ;;  %v4435_v2 = vpack.c.bf16 %v4429_v57, %v4427_v34 }
 0x5ce   :  { %v4411_v0 = vmul.f32 %v4400_v44, %v4392_v26  ;;  %v4393_v27 = vsel %vm4377_vm6, %v5423_v52, %v4385_v3  ;;  %vm4379_vm8 = vcmp.ge.f32.partialorder %v5425_v10, 0.0  ;;  %v4387_v38 = vmul.f32 0.2, %v5425_v10 }
 0x5cf   :  { %v4412_v4 = vmul.f32 %v4404_v54, %v4393_v27  ;;  %v4394_v59 = vsel %vm4378_vm7, %v5424_v31, %v4386_v61  ;;  %4733 = vmatprep.mubr.bf16.mxu1 %v4435_v2  ;;  %vm4807_vm9 = vcmp.ge.s32.totalorder %v4806_v28, 1  ;;  %vm4808_vm10 = vcmp.lt.s32.totalorder %v4806_v28, 11 }
 0x5d0   :  { %v4413_v8 = vmul.f32 %v4400_v44, %v4394_v59  ;;  %v4395_v7 = vsel %vm4379_vm8, %v5425_v10, %v4387_v38  ;;  %4734 = vmatmul.mubr.bf16.vlgmr.msra.gmra.mrb[48].mxu1 %v4434_v30  ;;  %v4430_v1 = vadd.f32 %v4419_v29, %v4411_v0  ;;  %v6184_v44 = vld [vmem:[%s8084_s9 + $0xf0] sm:$0xff]   ;;  %vm4809_vm11 = vmand %vm4807_vm9, %vm4808_vm10 }
 0x5d1   :  { %v4414_v24 = vmul.f32 %v4404_v54, %v4395_v7  ;;  %5285 = vmatpush3.bf16.msra.mxu1 %v6173_v37  ;;  %v4431_v11 = vadd.f32 %v4423_v39, %v4412_v4 }
 0x5d2   :  { %v4432_v16 = vadd.f32 %v4419_v29, %v4413_v8  ;;  %5286 = vmatprep.subr.bf16.mxu1 %v6174_v49 }
 0x5d3   :  { %v4433_v62 = vadd.f32 %v4423_v39, %v4414_v24  ;;  %v5229_v39 = vld [vmem:[%s8085_s10] ss:$0 sm:$0xff] }
 0x5d4   :  { %v4436_v35 = vpack.c.bf16 %v4432_v16, %v4430_v1 }
 0x5d5   :  { %5287 = vmatpush3.bf16.msra.mxu1 %v6175_v63  ;;  %v4437_v55 = vpack.c.bf16 %v4433_v62, %v4431_v11 }
 0x5d6   :  { %5288 = vmatprep.subr.bf16.mxu1 %v6176_v33 }
 0x5d7   :  { %4774 = vmatprep.mubr.bf16.mxu1 %v4437_v55 }
 0x5d9   :  { %5289 = vmatpush3.bf16.msra.mxu1 %v6177_v5 }
 0x5da   :  { %5290 = vmatprep.subr.bf16.mxu1 %v6178_v12 }
 0x5dd   :  { %5291 = vmatpush3.bf16.msra.mxu1 %v6179_v21 }
 0x5de   :  { %5292 = vmatprep.subr.bf16.mxu1 %v6180_v58 }
 0x5e1   :  { %5293 = vmatpush3.bf16.msra.mxu1 %v6181_v40 }
 0x5e2   :  { %5294 = vmatprep.subr.bf16.mxu1 %v6182_v43 }
 0x5e5   :  { %5295 = vmatpush3.bf16.msra.mxu1 %v6183_v18 }
 0x5e6   :  { %5296 = vmatprep.subr.bf16.mxu1 %v6184_v44 }
 0x5e9   :  { %5297 = vmatpush3.bf16.msra.mxu1 %v6185_v17 }
 0x5ea   :  { %5298 = vmatprep.subr.bf16.mxu1 %v6186_v51 }
 0x5ed   :  { %5299 = vmatpush3.bf16.msra.mxu1 %v6187_v14 }
 0x5f0   :  { %4775 = vmatmul.mubr.bf16.vlgmr.msra.gmra.mrb[52].mxu1 %v4436_v35 }
 0x6a3   :  { %v5278_v54 = vpop.f32.mrb[48].mxu1 }
 0x6a4   :  { %v5279_v47 = vpop.f32.mrb[49].mxu1 }
 0x6a5   :  { %v5280_v25 = vadd.f32 %v5279_v47, %v5278_v54  ;;  %v5281_v29 = vpop.f32.mrb[50].mxu1 }
 0x6a6   :  { %v5282_v22 = vpop.f32.mrb[51].mxu1 }
 0x6a7   :  { %v5283_v23 = vadd.f32 %v5282_v22, %v5281_v29  ;;  %v4736_v32 = vadd.f32 %v5280_v25, %v5229_v39 }
 0x6a9   :  { %v4739_v46 = vadd.f32 %v5283_v23, %v5229_v39 }
 0x6c3   :  { %v5300_v56 = vpop.f32.mrb[52].mxu1 }
 0x6c4   :  { %v5301_v6 = vpop.f32.mrb[53].mxu1 }
 0x6c5   :  { %v5302_v45 = vadd.f32 %v5301_v6, %v5300_v56  ;;  %v5303_v15 = vpop.f32.mrb[54].mxu1 }
 0x6c6   :  { %v5304_v9 = vpop.f32.mrb[55].mxu1 }
 0x6c7   :  { %v4777_v60 = vadd.f32 %v5302_v45, %v4736_v32  ;;  %v5305_v36 = vadd.f32 %v5304_v9, %v5303_v15 }
 0x6c9   :  { %v4783_v13 = vand.u32 2147483647, %v4777_v60  ;;  %v4780_v41 = vadd.f32 %v5305_v36, %v4739_v46  ;;  %v4810_v53 = vsel %vm4809_vm11, %v4777_v60, -1e+30  ;;  %vm4791_vm12 = vcmp.ge.f32.partialorder %v4777_v60, 0.0 }
 0x6ca   :  { %4812 = vmax.xlane.f32.xlu0 %v4810_v53 }
 0x6cb   :  { %v4785_v42 = vsub.f32 0.0, %v4783_v13  ;;  %v4784_v52 = vand.u32 2147483647, %v4780_v41  ;;  %v4811_v48 = vsel %vm4809_vm11, %v4780_v41, -1e+30  ;;  %vm4792_vm13 = vcmp.ge.f32.partialorder %v4780_v41, 0.0 }
 0x6cd   :  { %v4787_v50 = vmul.f32 1.442695, %v4785_v42  ;;  %v4786_v34 = vsub.f32 0.0, %v4784_v52 }
 0x6ce   :  { %4814 = vmax.xlane.f32.xlu0 %v4811_v48 }
 0x6cf   :  { %6188 = vpow2.f32 %v4787_v50  ;;  %v4789_v31 = vmul.f32 1.442695, %v4786_v34 }
 0x6d1   :  { %6190 = vpow2.f32 %v4789_v31 }
 0x6d9   :  { %v6189_v19 = vpop.eup %6188 }
 0x6da   :  { %v4793_v57 = vadd.f32 1.0, %v6189_v19 }
 0x6db   :  { %v6191_v30 = vpop.eup %6190 }
 0x6dc   :  { %6192 = vrcp.f32 %v4793_v57  ;;  %v4794_v3 = vadd.f32 1.0, %v6191_v30 }
 0x6de   :  { %6194 = vrcp.f32 %v4794_v3 }
 0x6e6   :  { %v6193_v10 = vpop.eup %6192 }
 0x6e7   :  { %v4799_v26 = vmul.f32 %v6193_v10, %v6189_v19 }
 0x6e8   :  { %v6195_v61 = vpop.eup %6194 }
 0x6e9   :  { %v4801_v2 = vsel %vm4791_vm12, %v6193_v10, %v4799_v26  ;;  %v4800_v37 = vmul.f32 %v6195_v61, %v6191_v30 }
 0x6ea   :  { %4803 = vst [vmem:[%s8086_s11] sm:$0xff] %v4801_v2 }
 0x6eb   :  { %v4802_v0 = vsel %vm4792_vm13, %v6195_v61, %v4800_v37 }
 0x6ec   :  { %4804 = vst [vmem:[%s8086_s11 + $0x8] sm:$0xff] %v4802_v0 }
 0x757   :  { %v4813_v27 = vpop.xlane.xlu0 %4812 }
 0x758   :  { %v4816_v38 = vsub.f32 %v4810_v53, %v4813_v27 }
 0x75a   :  { %v4818_v49 = vmul.f32 1.442695, %v4816_v38 }
 0x75b   :  { %v4815_v4 = vpop.xlane.xlu0 %4814 }
 0x75c   :  { %6196 = vpow2.f32 %v4818_v49  ;;  %v4817_v59 = vsub.f32 %v4811_v48, %v4815_v4 }
 0x75e   :  { %v4820_v8 = vmul.f32 1.442695, %v4817_v59 }
 0x760   :  { %6198 = vpow2.f32 %v4820_v8 }
 0x766   :  { %v6197_v7 = vpop.eup %6196 }
 0x767   :  { %4822 = vadd.xlane.f32.xlu1 %v6197_v7 }
 0x76a   :  { %v6199_v24 = vpop.eup %6198 }
 0x76b   :  { %4824 = vadd.xlane.f32.xlu1 %v6199_v24 }
 0x7f4   :  { %v4823_v63 = vpop.xlane.xlu1 %4822 }
 0x7f5   :  { %6200 = vrcp.f32 %v4823_v63 }
 0x7f8   :  { %v4825_v1 = vpop.xlane.xlu1 %4824 }
 0x7f9   :  { %6202 = vrcp.f32 %v4825_v1 }
 0x7ff   :  { %v6201_v16 = vpop.eup %6200 }
 0x800   :  { %v4827_v33 = vmul.f32 %v6201_v16, %v6197_v7 }
 0x802   :  { %4830 = vst [vmem:[%s8087_s12] sm:$0xff] %v4827_v33 }
 0x803   :  { %v6203_v11 = vpop.eup %6202 }
 0x804   :  { %v4829_v62 = vmul.f32 %v6203_v11, %v6199_v24 }
 0x806   :  { %4831 = vst [vmem:[%s8087_s12 + $0x8] sm:$0xff] %v4829_v62 }
 0x807   :  { %4840 = vsyncpa [#allocation6], 1 }

</bundles_post_ra>
